<compile_context>
chip_gen: v6e
topology: v6e:2x2x1
jax: 0.10.0
libtpu: 0.0.40
codegen_flags: <defaults>
</compile_context>

<pallas_src>
import functools

import jax
import jax.numpy as jnp
from jax.experimental import pallas as pl
from jax.experimental.pallas import tpu as pltpu


def _round_up(x, m):
    return ((x + m - 1) // m) * m


# --------------------------- fused LSTM + FC kernel ---------------------------
def _make_fused_rnn_kernel(n_layers, tb, hidden_dim):
    H = hidden_dim

    def kernel(x_ref, len_ref, *refs):
        # refs = [w_ih_l, w_hh_l, b_l]*L, fc_w, fc_b, out_ref, h_sc*L, c_sc*L
        wih_refs, whh_refs, b_refs = [], [], []
        idx = 0
        for _ in range(n_layers):
            wih_refs.append(refs[idx])
            whh_refs.append(refs[idx + 1])
            b_refs.append(refs[idx + 2])
            idx += 3
        fc_w_ref, fc_b_ref = refs[idx], refs[idx + 1]
        idx += 2
        out_ref = refs[idx]
        idx += 1
        h_refs = list(refs[idx:idx + n_layers])
        idx += n_layers
        c_refs = list(refs[idx:idx + n_layers])

        blk_t = pl.program_id(1)

        @pl.when(blk_t == 0)
        def _init():
            for l in range(n_layers):
                h_refs[l][...] = jnp.zeros_like(h_refs[l])
                c_refs[l][...] = jnp.zeros_like(c_refs[l])

        lengths = len_ref[...]                       # (bblk, 1) int32
        t0 = blk_t * tb

        # ---- hoisted, off the serial h-dependence chain ----
        wih = [r[...] for r in wih_refs]             # bf16
        whh = [r[...] for r in whh_refs]             # bf16
        bias = [r[...] for r in b_refs]              # f32
        # layer-0 input projection for the whole time block (bias folded in)
        xp0 = [jnp.dot(x_ref[ts].astype(jnp.bfloat16), wih[0],
                       preferred_element_type=jnp.float32) + bias[0]
               for ts in range(tb)]
        # pack_padded_sequence semantics: validity mask per timestep
        valid = [(t0 + ts) < lengths for ts in range(tb)]

        # ---- serial recurrence, Tb steps statically unrolled ----
        for ts in range(tb):
            v = valid[ts]
            pre = xp0[ts]                            # (bblk, 4H) f32, layer 0
            for l in range(n_layers):
                h = h_refs[l][...]
                c = c_refs[l][...]
                gates = pre + jnp.dot(h.astype(jnp.bfloat16), whh[l],
                                      preferred_element_type=jnp.float32)
                # full-width activations: 2 EUP passes (not 5) per gate set
                sig = jax.nn.sigmoid(gates)          # (bblk, 4H)
                tnh = jnp.tanh(gates)                # (bblk, 4H)
                i_g = sig[:, 0 * H:1 * H]
                f_g = sig[:, 1 * H:2 * H]
                g_g = tnh[:, 2 * H:3 * H]
                o_g = sig[:, 3 * H:4 * H]
                c_new = f_g * c + i_g * g_g
                h_new = o_g * jnp.tanh(c_new)
                # padded steps never update the state (masked carry)
                h_upd = jnp.where(v, h_new, h)
                c_upd = jnp.where(v, c_new, c)
                h_refs[l][...] = h_upd
                c_refs[l][...] = c_upd
                if l + 1 < n_layers:
                    # next layer's lane-dense (bblk, 4H) pre-activation;
                    # inter-layer dropout is identity in eval mode.
                    pre = (jnp.dot(h_upd.astype(jnp.bfloat16), wih[l + 1],
                                   preferred_element_type=jnp.float32)
                           + bias[l + 1])

        @pl.when(blk_t == pl.num_programs(1) - 1)
        def _finalize():
            # masked-carry invariant: h_refs[-1] == hidden at t = lengths-1
            # == PyTorch hidden[-1, :, :]; dropout(hidden) is identity in eval.
            h_fin = h_refs[n_layers - 1][...]
            out_ref[...] = jax.nn.sigmoid(
                jnp.dot(h_fin, fc_w_ref[...],
                        preferred_element_type=jnp.float32) + fc_b_ref[...])

    return kernel


# ------------------------------- Full forward ---------------------------------
@functools.partial(jax.jit, static_argnames=("tb",))
def rnn_model_forward(params, text, lengths, *, tb=8):
    B, T = text.shape
    E = params["embedding"].shape[-1]
    H = params["lstm"][0]["w_hh"].shape[0]
    O = params["fc_w"].shape[-1]
    L = len(params["lstm"])

    # Embedding lookup + time-major layout (glue ops).
    emb = jnp.take(params["embedding"], text, axis=0)            # (B, T, E)
    x = jnp.transpose(emb, (1, 0, 2)).astype(jnp.float32)        # (T, B, E)

    Bp = _round_up(B, 8)                     # sublane padding
    bblk = Bp if Bp <= 256 else 256          # batch rows per grid block
    Bp = _round_up(Bp, bblk)
    Tp = _round_up(T, tb)                    # whole number of time blocks

    x = jnp.pad(x, ((0, Tp - T), (0, Bp - B), (0, 0)))
    lengths_b1 = jnp.pad(lengths.astype(jnp.int32), (0, Bp - B)).reshape(Bp, 1)

    # Weights: bf16 for MXU operands; biases / FC / recurrent state stay f32.
    weight_args, weight_specs = [], []
    for layer in params["lstm"]:
        for name, dt in (("w_ih", jnp.bfloat16), ("w_hh", jnp.bfloat16),
                         ("b", jnp.float32)):
            w = layer[name].astype(dt)
            weight_args.append(w)
            weight_specs.append(pl.BlockSpec(w.shape, lambda b, t: (0, 0)))
    for name in ("fc_w", "fc_b"):
        w = params[name].astype(jnp.float32)
        weight_args.append(w)
        weight_specs.append(pl.BlockSpec(w.shape, lambda b, t: (0, 0)))

    kernel = _make_fused_rnn_kernel(L, tb, H)

    out = pl.pallas_call(
        kernel,
        out_shape=jax.ShapeDtypeStruct((Bp, O), jnp.float32),
        grid_spec=pltpu.PrefetchScalarGridSpec(
            num_scalar_prefetch=0,
            grid=(Bp // bblk, Tp // tb),
            in_specs=[
                pl.BlockSpec((tb, bblk, E), lambda b, t: (t, b, 0)),
                pl.BlockSpec((bblk, 1), lambda b, t: (b, 0)),
                *weight_specs,
            ],
            out_specs=pl.BlockSpec((bblk, O), lambda b, t: (b, 0)),
            scratch_shapes=[pltpu.VMEM((bblk, H), jnp.float32)] * (2 * L),
        ),
        compiler_params=pltpu.CompilerParams(
            dimension_semantics=("parallel", "arbitrary")),
    )(x, lengths_b1, *weight_args)
    return out[:B]


# ------------------------------ Pure-JAX reference ----------------------------
def rnn_model_reference(params, text, lengths):
    emb = jnp.take(params["embedding"], text, axis=0).astype(jnp.float32)
    B, T, _ = emb.shape
    x = emb
    h_fin = None
    for layer in params["lstm"]:
        H = layer["w_hh"].shape[0]
        h0 = jnp.zeros((B, H), jnp.float32)
        c0 = jnp.zeros((B, H), jnp.float32)

        def step(carry, inp, layer=layer, H=H):
            h, c = carry
            x_t, t = inp
            gates = x_t @ layer["w_ih"] + h @ layer["w_hh"] + layer["b"]
            i_g = jax.nn.sigmoid(gates[:, 0 * H:1 * H])
            f_g = jax.nn.sigmoid(gates[:, 1 * H:2 * H])
            g_g = jnp.tanh(gates[:, 2 * H:3 * H])
            o_g = jax.nn.sigmoid(gates[:, 3 * H:4 * H])
            c_new = f_g * c + i_g * g_g
            h_new = o_g * jnp.tanh(c_new)
            valid = (t < lengths)[:, None]
            h2 = jnp.where(valid, h_new, h)
            c2 = jnp.where(valid, c_new, c)
            return (h2, c2), h2

        (h, _), ys = jax.lax.scan(step, (h0, c0),
                                  (jnp.transpose(x, (1, 0, 2)), jnp.arange(T)))
        x = jnp.transpose(ys, (1, 0, 2))
        h_fin = h
    return jax.nn.sigmoid(h_fin @ params["fc_w"] + params["fc_b"])


# ---------------------------------- Setup -------------------------------------
def init_params(key, vocab_size, embedding_dim, hidden_dim, n_layers, output_dim):
    keys = jax.random.split(key, 3 + 3 * n_layers)
    H = hidden_dim
    k = 1.0 / jnp.sqrt(H)
    params = {
        "embedding": jax.random.normal(keys[0], (vocab_size, embedding_dim),
                                       jnp.float32),
        "fc_w": jax.random.uniform(keys[1], (H, output_dim), jnp.float32, -k, k),
        "fc_b": jax.random.uniform(keys[2], (1, output_dim), jnp.float32, -k, k),
        "lstm": [],
    }
    for l in range(n_layers):
        in_dim = embedding_dim if l == 0 else H
        kw = keys[3 + 3 * l:3 + 3 * (l + 1)]
        params["lstm"].append({
            # gate-stacked along last dim in PyTorch gate order (i, f, g, o)
            "w_ih": jax.random.uniform(kw[0], (in_dim, 4 * H), jnp.float32, -k, k),
            "w_hh": jax.random.uniform(kw[1], (H, 4 * H), jnp.float32, -k, k),
            # combined b_ih + b_hh
            "b": jax.random.uniform(kw[2], (1, 4 * H), jnp.float32, -2 * k, 2 * k),
        })
    return params


if __name__ == "__main__":
    VOCAB, EMB, HID, NLAYERS, OUT = 50, 16, 32, 2, 1
    B, T = 2, 8

    key = jax.random.PRNGKey(0)
    k_params, k_text = jax.random.split(key)
    params = init_params(k_params, VOCAB, EMB, HID, NLAYERS, OUT)

    text = jax.random.randint(k_text, (B, T), 0, VOCAB, dtype=jnp.int32)
    lengths = jnp.array([T, 5], dtype=jnp.int32)

    out = jax.block_until_ready(rnn_model_forward(params, text, lengths))

    ref = rnn_model_reference(params, text, lengths)
    assert out.shape == (B, OUT)
    # Kernel uses bf16 MXU operands with f32 accumulation/state (reference is
    # pure f32), so allow a slightly looser tolerance than 1e-3.
    assert jnp.allclose(out, ref, atol=1e-2, rtol=1e-2), (out, ref)

    print("KERNEL_OK")
</pallas_src>

<mosaic_0001>
module attributes {stable_mosaic.version = 11 : i64} {
  func.func @kernel(%arg0: i32, %arg1: i32, %arg2: memref<8x8x16xf32, #tpu.memory_space<vmem>>, %arg3: memref<8x1xi32, #tpu.memory_space<vmem>>, %arg4: memref<16x128xbf16, #tpu.memory_space<vmem>>, %arg5: memref<32x128xbf16, #tpu.memory_space<vmem>>, %arg6: memref<1x128xf32, #tpu.memory_space<vmem>>, %arg7: memref<32x128xbf16, #tpu.memory_space<vmem>>, %arg8: memref<32x128xbf16, #tpu.memory_space<vmem>>, %arg9: memref<1x128xf32, #tpu.memory_space<vmem>>, %arg10: memref<32x1xf32, #tpu.memory_space<vmem>>, %arg11: memref<1x1xf32, #tpu.memory_space<vmem>>, %arg12: memref<8x1xf32, #tpu.memory_space<vmem>>, %arg13: memref<8x32xf32, #tpu.memory_space<vmem>>, %arg14: memref<8x32xf32, #tpu.memory_space<vmem>>, %arg15: memref<8x32xf32, #tpu.memory_space<vmem>>, %arg16: memref<8x32xf32, #tpu.memory_space<vmem>>) attributes {dimension_semantics = [#tpu.dimension_semantics<parallel>, #tpu.dimension_semantics<arbitrary>], iteration_bounds = array<i64: 1, 1>, scalar_prefetch = 0 : i64, scratch_operands = 4 : i64, tpu.core_type = #tpu.core_type<tc>, window_params = [{transform_indices = @transform_0, window_bounds = array<i64: 8, 8, 16>}, {transform_indices = @transform_1, window_bounds = array<i64: 8, 1>}, {pipeline_mode = #tpu.pipeline_mode<synchronous>, transform_indices = @transform_2, window_bounds = array<i64: 16, 128>}, {pipeline_mode = #tpu.pipeline_mode<synchronous>, transform_indices = @transform_3, window_bounds = array<i64: 32, 128>}, {pipeline_mode = #tpu.pipeline_mode<synchronous>, transform_indices = @transform_4, window_bounds = array<i64: 1, 128>}, {pipeline_mode = #tpu.pipeline_mode<synchronous>, transform_indices = @transform_5, window_bounds = array<i64: 32, 128>}, {pipeline_mode = #tpu.pipeline_mode<synchronous>, transform_indices = @transform_6, window_bounds = array<i64: 32, 128>}, {pipeline_mode = #tpu.pipeline_mode<synchronous>, transform_indices = @transform_7, window_bounds = array<i64: 1, 128>}, {pipeline_mode = #tpu.pipeline_mode<synchronous>, transform_indices = @transform_8, window_bounds = array<i64: 32, 1>}, {pipeline_mode = #tpu.pipeline_mode<synchronous>, transform_indices = @transform_9, window_bounds = array<i64: 1, 1>}, {transform_indices = @transform_10, window_bounds = array<i64: 8, 1>}]} {
    %c0_i32 = arith.constant 0 : i32
    %0 = arith.cmpi eq, %arg1, %c0_i32 : i32
    %1 = arith.extui %0 : i1 to i32
    %c0_i32_0 = arith.constant 0 : i32
    %2 = arith.cmpi ne, %1, %c0_i32_0 : i32
    scf.if %2 {
      %cst_209 = arith.constant 0.000000e+00 : f32
      %566 = vector.broadcast %cst_209 : f32 to vector<8x32xf32>
      %c0_210 = arith.constant 0 : index
      %c0_211 = arith.constant 0 : index
      %567 = vector.load %arg13[%c0_210, %c0_211] : memref<8x32xf32, #tpu.memory_space<vmem>>, vector<8x32xf32>
      tpu.vector_store %arg13[%c0_210, %c0_211], %566 {strides = array<i32>} : memref<8x32xf32, #tpu.memory_space<vmem>>, vector<8x32xf32>,
      %cst_212 = arith.constant 0.000000e+00 : f32
      %568 = vector.broadcast %cst_212 : f32 to vector<8x32xf32>
      %c0_213 = arith.constant 0 : index
      %c0_214 = arith.constant 0 : index
      %569 = vector.load %arg15[%c0_213, %c0_214] : memref<8x32xf32, #tpu.memory_space<vmem>>, vector<8x32xf32>
      tpu.vector_store %arg15[%c0_213, %c0_214], %568 {strides = array<i32>} : memref<8x32xf32, #tpu.memory_space<vmem>>, vector<8x32xf32>,
      %cst_215 = arith.constant 0.000000e+00 : f32
      %570 = vector.broadcast %cst_215 : f32 to vector<8x32xf32>
      %c0_216 = arith.constant 0 : index
      %c0_217 = arith.constant 0 : index
      %571 = vector.load %arg14[%c0_216, %c0_217] : memref<8x32xf32, #tpu.memory_space<vmem>>, vector<8x32xf32>
      tpu.vector_store %arg14[%c0_216, %c0_217], %570 {strides = array<i32>} : memref<8x32xf32, #tpu.memory_space<vmem>>, vector<8x32xf32>,
      %cst_218 = arith.constant 0.000000e+00 : f32
      %572 = vector.broadcast %cst_218 : f32 to vector<8x32xf32>
      %c0_219 = arith.constant 0 : index
      %c0_220 = arith.constant 0 : index
      %573 = vector.load %arg16[%c0_219, %c0_220] : memref<8x32xf32, #tpu.memory_space<vmem>>, vector<8x32xf32>
      tpu.vector_store %arg16[%c0_219, %c0_220], %572 {strides = array<i32>} : memref<8x32xf32, #tpu.memory_space<vmem>>, vector<8x32xf32>,
    } else {
    }
    %c0 = arith.constant 0 : index
    %c0_1 = arith.constant 0 : index
    %3 = vector.load %arg3[%c0, %c0_1] : memref<8x1xi32, #tpu.memory_space<vmem>>, vector<8x1xi32>
    %c8_i32 = arith.constant 8 : i32
    %4 = arith.muli %arg1, %c8_i32 : i32
    %c0_2 = arith.constant 0 : index
    %c0_3 = arith.constant 0 : index
    %5 = vector.load %arg4[%c0_2, %c0_3] : memref<16x128xbf16, #tpu.memory_space<vmem>>, vector<16x128xbf16>
    %c0_4 = arith.constant 0 : index
    %c0_5 = arith.constant 0 : index
    %6 = vector.load %arg7[%c0_4, %c0_5] : memref<32x128xbf16, #tpu.memory_space<vmem>>, vector<32x128xbf16>
    %c0_6 = arith.constant 0 : index
    %c0_7 = arith.constant 0 : index
    %7 = vector.load %arg5[%c0_6, %c0_7] : memref<32x128xbf16, #tpu.memory_space<vmem>>, vector<32x128xbf16>
    %c0_8 = arith.constant 0 : index
    %c0_9 = arith.constant 0 : index
    %8 = vector.load %arg8[%c0_8, %c0_9] : memref<32x128xbf16, #tpu.memory_space<vmem>>, vector<32x128xbf16>
    %c0_10 = arith.constant 0 : index
    %c0_11 = arith.constant 0 : index
    %9 = vector.load %arg6[%c0_10, %c0_11] : memref<1x128xf32, #tpu.memory_space<vmem>>, vector<1x128xf32>
    %c0_12 = arith.constant 0 : index
    %c0_13 = arith.constant 0 : index
    %10 = vector.load %arg9[%c0_12, %c0_13] : memref<1x128xf32, #tpu.memory_space<vmem>>, vector<1x128xf32>
    %c0_14 = arith.constant 0 : index
    %c0_15 = arith.constant 0 : index
    %c0_16 = arith.constant 0 : index
    %11 = vector.load %arg2[%c0_14, %c0_15, %c0_16] : memref<8x8x16xf32, #tpu.memory_space<vmem>>, vector<1x8x16xf32>
    %12 = vector.shape_cast %11 : vector<1x8x16xf32> to vector<8x16xf32>
    %13 = arith.truncf %12 : vector<8x16xf32> to vector<8x16xbf16>
    %cst = arith.constant dense<0.000000e+00> : vector<8x128xf32>
    %14 = tpu.matmul %13, %5, %cst {dimension_numbers = #tpu.dot_dimension_numbers<[1], [0], [0], [1], [0, 0, 1, 1], [], []>} : vector<8x16xbf16>, vector<16x128xbf16>, vector<8x128xf32> -> vector<8x128xf32>
    %15 = vector.broadcast %9 : vector<1x128xf32> to vector<8x128xf32>
    %16 = arith.addf %14, %15 : vector<8x128xf32>
    %c1 = arith.constant 1 : index
    %c0_17 = arith.constant 0 : index
    %c0_18 = arith.constant 0 : index
    %17 = vector.load %arg2[%c1, %c0_17, %c0_18] : memref<8x8x16xf32, #tpu.memory_space<vmem>>, vector<1x8x16xf32>
    %18 = vector.shape_cast %17 : vector<1x8x16xf32> to vector<8x16xf32>
    %19 = arith.truncf %18 : vector<8x16xf32> to vector<8x16xbf16>
    %cst_19 = arith.constant dense<0.000000e+00> : vector<8x128xf32>
    %20 = tpu.matmul %19, %5, %cst_19 {dimension_numbers = #tpu.dot_dimension_numbers<[1], [0], [0], [1], [0, 0, 1, 1], [], []>} : vector<8x16xbf16>, vector<16x128xbf16>, vector<8x128xf32> -> vector<8x128xf32>
    %21 = vector.broadcast %9 : vector<1x128xf32> to vector<8x128xf32>
    %22 = arith.addf %20, %21 : vector<8x128xf32>
    %c2 = arith.constant 2 : index
    %c0_20 = arith.constant 0 : index
    %c0_21 = arith.constant 0 : index
    %23 = vector.load %arg2[%c2, %c0_20, %c0_21] : memref<8x8x16xf32, #tpu.memory_space<vmem>>, vector<1x8x16xf32>
    %24 = vector.shape_cast %23 : vector<1x8x16xf32> to vector<8x16xf32>
    %25 = arith.truncf %24 : vector<8x16xf32> to vector<8x16xbf16>
    %cst_22 = arith.constant dense<0.000000e+00> : vector<8x128xf32>
    %26 = tpu.matmul %25, %5, %cst_22 {dimension_numbers = #tpu.dot_dimension_numbers<[1], [0], [0], [1], [0, 0, 1, 1], [], []>} : vector<8x16xbf16>, vector<16x128xbf16>, vector<8x128xf32> -> vector<8x128xf32>
    %27 = vector.broadcast %9 : vector<1x128xf32> to vector<8x128xf32>
    %28 = arith.addf %26, %27 : vector<8x128xf32>
    %c3 = arith.constant 3 : index
    %c0_23 = arith.constant 0 : index
    %c0_24 = arith.constant 0 : index
    %29 = vector.load %arg2[%c3, %c0_23, %c0_24] : memref<8x8x16xf32, #tpu.memory_space<vmem>>, vector<1x8x16xf32>
    %30 = vector.shape_cast %29 : vector<1x8x16xf32> to vector<8x16xf32>
    %31 = arith.truncf %30 : vector<8x16xf32> to vector<8x16xbf16>
    %cst_25 = arith.constant dense<0.000000e+00> : vector<8x128xf32>
    %32 = tpu.matmul %31, %5, %cst_25 {dimension_numbers = #tpu.dot_dimension_numbers<[1], [0], [0], [1], [0, 0, 1, 1], [], []>} : vector<8x16xbf16>, vector<16x128xbf16>, vector<8x128xf32> -> vector<8x128xf32>
    %33 = vector.broadcast %9 : vector<1x128xf32> to vector<8x128xf32>
    %34 = arith.addf %32, %33 : vector<8x128xf32>
    %c4 = arith.constant 4 : index
    %c0_26 = arith.constant 0 : index
    %c0_27 = arith.constant 0 : index
    %35 = vector.load %arg2[%c4, %c0_26, %c0_27] : memref<8x8x16xf32, #tpu.memory_space<vmem>>, vector<1x8x16xf32>
    %36 = vector.shape_cast %35 : vector<1x8x16xf32> to vector<8x16xf32>
    %37 = arith.truncf %36 : vector<8x16xf32> to vector<8x16xbf16>
    %cst_28 = arith.constant dense<0.000000e+00> : vector<8x128xf32>
    %38 = tpu.matmul %37, %5, %cst_28 {dimension_numbers = #tpu.dot_dimension_numbers<[1], [0], [0], [1], [0, 0, 1, 1], [], []>} : vector<8x16xbf16>, vector<16x128xbf16>, vector<8x128xf32> -> vector<8x128xf32>
    %39 = vector.broadcast %9 : vector<1x128xf32> to vector<8x128xf32>
    %40 = arith.addf %38, %39 : vector<8x128xf32>
    %c5 = arith.constant 5 : index
    %c0_29 = arith.constant 0 : index
    %c0_30 = arith.constant 0 : index
    %41 = vector.load %arg2[%c5, %c0_29, %c0_30] : memref<8x8x16xf32, #tpu.memory_space<vmem>>, vector<1x8x16xf32>
    %42 = vector.shape_cast %41 : vector<1x8x16xf32> to vector<8x16xf32>
    %43 = arith.truncf %42 : vector<8x16xf32> to vector<8x16xbf16>
    %cst_31 = arith.constant dense<0.000000e+00> : vector<8x128xf32>
    %44 = tpu.matmul %43, %5, %cst_31 {dimension_numbers = #tpu.dot_dimension_numbers<[1], [0], [0], [1], [0, 0, 1, 1], [], []>} : vector<8x16xbf16>, vector<16x128xbf16>, vector<8x128xf32> -> vector<8x128xf32>
    %45 = vector.broadcast %9 : vector<1x128xf32> to vector<8x128xf32>
    %46 = arith.addf %44, %45 : vector<8x128xf32>
    %c6 = arith.constant 6 : index
    %c0_32 = arith.constant 0 : index
    %c0_33 = arith.constant 0 : index
    %47 = vector.load %arg2[%c6, %c0_32, %c0_33] : memref<8x8x16xf32, #tpu.memory_space<vmem>>, vector<1x8x16xf32>
    %48 = vector.shape_cast %47 : vector<1x8x16xf32> to vector<8x16xf32>
    %49 = arith.truncf %48 : vector<8x16xf32> to vector<8x16xbf16>
    %cst_34 = arith.constant dense<0.000000e+00> : vector<8x128xf32>
    %50 = tpu.matmul %49, %5, %cst_34 {dimension_numbers = #tpu.dot_dimension_numbers<[1], [0], [0], [1], [0, 0, 1, 1], [], []>} : vector<8x16xbf16>, vector<16x128xbf16>, vector<8x128xf32> -> vector<8x128xf32>
    %51 = vector.broadcast %9 : vector<1x128xf32> to vector<8x128xf32>
    %52 = arith.addf %50, %51 : vector<8x128xf32>
    %c7 = arith.constant 7 : index
    %c0_35 = arith.constant 0 : index
    %c0_36 = arith.constant 0 : index
    %53 = vector.load %arg2[%c7, %c0_35, %c0_36] : memref<8x8x16xf32, #tpu.memory_space<vmem>>, vector<1x8x16xf32>
    %54 = vector.shape_cast %53 : vector<1x8x16xf32> to vector<8x16xf32>
    %55 = arith.truncf %54 : vector<8x16xf32> to vector<8x16xbf16>
    %cst_37 = arith.constant dense<0.000000e+00> : vector<8x128xf32>
    %56 = tpu.matmul %55, %5, %cst_37 {dimension_numbers = #tpu.dot_dimension_numbers<[1], [0], [0], [1], [0, 0, 1, 1], [], []>} : vector<8x16xbf16>, vector<16x128xbf16>, vector<8x128xf32> -> vector<8x128xf32>
    %57 = vector.broadcast %9 : vector<1x128xf32> to vector<8x128xf32>
    %58 = arith.addf %56, %57 : vector<8x128xf32>
    %c0_i32_38 = arith.constant 0 : i32
    %59 = arith.addi %4, %c0_i32_38 : i32
    %60 = vector.broadcast %59 : i32 to vector<8x1xi32>
    %61 = arith.cmpi slt, %60, %3 : vector<8x1xi32>
    %c1_i32 = arith.constant 1 : i32
    %62 = arith.addi %4, %c1_i32 : i32
    %63 = vector.broadcast %62 : i32 to vector<8x1xi32>
    %64 = arith.cmpi slt, %63, %3 : vector<8x1xi32>
    %c2_i32 = arith.constant 2 : i32
    %65 = arith.addi %4, %c2_i32 : i32
    %66 = vector.broadcast %65 : i32 to vector<8x1xi32>
    %67 = arith.cmpi slt, %66, %3 : vector<8x1xi32>
    %c3_i32 = arith.constant 3 : i32
    %68 = arith.addi %4, %c3_i32 : i32
    %69 = vector.broadcast %68 : i32 to vector<8x1xi32>
    %70 = arith.cmpi slt, %69, %3 : vector<8x1xi32>
    %c4_i32 = arith.constant 4 : i32
    %71 = arith.addi %4, %c4_i32 : i32
    %72 = vector.broadcast %71 : i32 to vector<8x1xi32>
    %73 = arith.cmpi slt, %72, %3 : vector<8x1xi32>
    %c5_i32 = arith.constant 5 : i32
    %74 = arith.addi %4, %c5_i32 : i32
    %75 = vector.broadcast %74 : i32 to vector<8x1xi32>
    %76 = arith.cmpi slt, %75, %3 : vector<8x1xi32>
    %c6_i32 = arith.constant 6 : i32
    %77 = arith.addi %4, %c6_i32 : i32
    %78 = vector.broadcast %77 : i32 to vector<8x1xi32>
    %79 = arith.cmpi slt, %78, %3 : vector<8x1xi32>
    %c7_i32 = arith.constant 7 : i32
    %80 = arith.addi %4, %c7_i32 : i32
    %81 = vector.broadcast %80 : i32 to vector<8x1xi32>
    %82 = arith.cmpi slt, %81, %3 : vector<8x1xi32>
    %c0_39 = arith.constant 0 : index
    %c0_40 = arith.constant 0 : index
    %83 = vector.load %arg13[%c0_39, %c0_40] : memref<8x32xf32, #tpu.memory_space<vmem>>, vector<8x32xf32>
    %c0_41 = arith.constant 0 : index
    %c0_42 = arith.constant 0 : index
    %84 = vector.load %arg15[%c0_41, %c0_42] : memref<8x32xf32, #tpu.memory_space<vmem>>, vector<8x32xf32>
    %85 = arith.truncf %83 : vector<8x32xf32> to vector<8x32xbf16>
    %cst_43 = arith.constant dense<0.000000e+00> : vector<8x128xf32>
    %86 = tpu.matmul %85, %7, %cst_43 {dimension_numbers = #tpu.dot_dimension_numbers<[1], [0], [0], [1], [0, 0, 1, 1], [], []>} : vector<8x32xbf16>, vector<32x128xbf16>, vector<8x128xf32> -> vector<8x128xf32>
    %87 = arith.addf %16, %86 : vector<8x128xf32>
    %88 = arith.negf %87 : vector<8x128xf32>
    %89 = math.exp %88 : vector<8x128xf32>
    %cst_44 = arith.constant 1.000000e+00 : f32
    %90 = vector.broadcast %cst_44 : f32 to vector<8x128xf32>
    %91 = arith.addf %90, %89 : vector<8x128xf32>
    %92 = arith.divf %90, %91 : vector<8x128xf32>
    %93 = math.tanh %87 : vector<8x128xf32>
    %94 = vector.extract_strided_slice %92 {offsets = [0, 0], sizes = [8, 32], strides = [1, 1]} : vector<8x128xf32> to vector<8x32xf32>
    %95 = vector.extract_strided_slice %92 {offsets = [0, 32], sizes = [8, 32], strides = [1, 1]} : vector<8x128xf32> to vector<8x32xf32>
    %96 = vector.extract_strided_slice %93 {offsets = [0, 64], sizes = [8, 32], strides = [1, 1]} : vector<8x128xf32> to vector<8x32xf32>
    %97 = vector.extract_strided_slice %92 {offsets = [0, 96], sizes = [8, 32], strides = [1, 1]} : vector<8x128xf32> to vector<8x32xf32>
    %98 = arith.mulf %95, %84 : vector<8x32xf32>
    %99 = arith.mulf %94, %96 : vector<8x32xf32>
    %100 = arith.addf %98, %99 : vector<8x32xf32>
    %101 = math.tanh %100 : vector<8x32xf32>
    %102 = arith.mulf %97, %101 : vector<8x32xf32>
    %103 = vector.shape_cast %61 : vector<8x1xi1> to vector<8x1xi1>
    %104 = vector.broadcast %103 : vector<8x1xi1> to vector<8x32xi1>
    %105 = arith.select %104, %102, %83 : vector<8x32xi1>, vector<8x32xf32>
    %106 = vector.shape_cast %61 : vector<8x1xi1> to vector<8x1xi1>
    %107 = vector.broadcast %106 : vector<8x1xi1> to vector<8x32xi1>
    %108 = arith.select %107, %100, %84 : vector<8x32xi1>, vector<8x32xf32>
    %c0_45 = arith.constant 0 : index
    %c0_46 = arith.constant 0 : index
    %109 = vector.load %arg13[%c0_45, %c0_46] : memref<8x32xf32, #tpu.memory_space<vmem>>, vector<8x32xf32>
    tpu.vector_store %arg13[%c0_45, %c0_46], %105 {strides = array<i32>} : memref<8x32xf32, #tpu.memory_space<vmem>>, vector<8x32xf32>,
    %c0_47 = arith.constant 0 : index
    %c0_48 = arith.constant 0 : index
    %110 = vector.load %arg15[%c0_47, %c0_48] : memref<8x32xf32, #tpu.memory_space<vmem>>, vector<8x32xf32>
    tpu.vector_store %arg15[%c0_47, %c0_48], %108 {strides = array<i32>} : memref<8x32xf32, #tpu.memory_space<vmem>>, vector<8x32xf32>,
    %111 = arith.truncf %105 : vector<8x32xf32> to vector<8x32xbf16>
    %cst_49 = arith.constant dense<0.000000e+00> : vector<8x128xf32>
    %112 = tpu.matmul %111, %6, %cst_49 {dimension_numbers = #tpu.dot_dimension_numbers<[1], [0], [0], [1], [0, 0, 1, 1], [], []>} : vector<8x32xbf16>, vector<32x128xbf16>, vector<8x128xf32> -> vector<8x128xf32>
    %113 = vector.broadcast %10 : vector<1x128xf32> to vector<8x128xf32>
    %114 = arith.addf %112, %113 : vector<8x128xf32>
    %c0_50 = arith.constant 0 : index
    %c0_51 = arith.constant 0 : index
    %115 = vector.load %arg14[%c0_50, %c0_51] : memref<8x32xf32, #tpu.memory_space<vmem>>, vector<8x32xf32>
    %c0_52 = arith.constant 0 : index
    %c0_53 = arith.constant 0 : index
    %116 = vector.load %arg16[%c0_52, %c0_53] : memref<8x32xf32, #tpu.memory_space<vmem>>, vector<8x32xf32>
    %117 = arith.truncf %115 : vector<8x32xf32> to vector<8x32xbf16>
    %cst_54 = arith.constant dense<0.000000e+00> : vector<8x128xf32>
    %118 = tpu.matmul %117, %8, %cst_54 {dimension_numbers = #tpu.dot_dimension_numbers<[1], [0], [0], [1], [0, 0, 1, 1], [], []>} : vector<8x32xbf16>, vector<32x128xbf16>, vector<8x128xf32> -> vector<8x128xf32>
    %119 = arith.addf %114, %118 : vector<8x128xf32>
    %120 = arith.negf %119 : vector<8x128xf32>
    %121 = math.exp %120 : vector<8x128xf32>
    %cst_55 = arith.constant 1.000000e+00 : f32
    %122 = vector.broadcast %cst_55 : f32 to vector<8x128xf32>
    %123 = arith.addf %122, %121 : vector<8x128xf32>
    %124 = arith.divf %122, %123 : vector<8x128xf32>
    %125 = math.tanh %119 : vector<8x128xf32>
    %126 = vector.extract_strided_slice %124 {offsets = [0, 0], sizes = [8, 32], strides = [1, 1]} : vector<8x128xf32> to vector<8x32xf32>
    %127 = vector.extract_strided_slice %124 {offsets = [0, 32], sizes = [8, 32], strides = [1, 1]} : vector<8x128xf32> to vector<8x32xf32>
    %128 = vector.extract_strided_slice %125 {offsets = [0, 64], sizes = [8, 32], strides = [1, 1]} : vector<8x128xf32> to vector<8x32xf32>
    %129 = vector.extract_strided_slice %124 {offsets = [0, 96], sizes = [8, 32], strides = [1, 1]} : vector<8x128xf32> to vector<8x32xf32>
    %130 = arith.mulf %127, %116 : vector<8x32xf32>
    %131 = arith.mulf %126, %128 : vector<8x32xf32>
    %132 = arith.addf %130, %131 : vector<8x32xf32>
    %133 = math.tanh %132 : vector<8x32xf32>
    %134 = arith.mulf %129, %133 : vector<8x32xf32>
    %135 = vector.shape_cast %61 : vector<8x1xi1> to vector<8x1xi1>
    %136 = vector.broadcast %135 : vector<8x1xi1> to vector<8x32xi1>
    %137 = arith.select %136, %134, %115 : vector<8x32xi1>, vector<8x32xf32>
    %138 = vector.shape_cast %61 : vector<8x1xi1> to vector<8x1xi1>
    %139 = vector.broadcast %138 : vector<8x1xi1> to vector<8x32xi1>
    %140 = arith.select %139, %132, %116 : vector<8x32xi1>, vector<8x32xf32>
    %c0_56 = arith.constant 0 : index
    %c0_57 = arith.constant 0 : index
    %141 = vector.load %arg14[%c0_56, %c0_57] : memref<8x32xf32, #tpu.memory_space<vmem>>, vector<8x32xf32>
    tpu.vector_store %arg14[%c0_56, %c0_57], %137 {strides = array<i32>} : memref<8x32xf32, #tpu.memory_space<vmem>>, vector<8x32xf32>,
    %c0_58 = arith.constant 0 : index
    %c0_59 = arith.constant 0 : index
    %142 = vector.load %arg16[%c0_58, %c0_59] : memref<8x32xf32, #tpu.memory_space<vmem>>, vector<8x32xf32>
    tpu.vector_store %arg16[%c0_58, %c0_59], %140 {strides = array<i32>} : memref<8x32xf32, #tpu.memory_space<vmem>>, vector<8x32xf32>,
    %c0_60 = arith.constant 0 : index
    %c0_61 = arith.constant 0 : index
    %143 = vector.load %arg13[%c0_60, %c0_61] : memref<8x32xf32, #tpu.memory_space<vmem>>, vector<8x32xf32>
    %c0_62 = arith.constant 0 : index
    %c0_63 = arith.constant 0 : index
    %144 = vector.load %arg15[%c0_62, %c0_63] : memref<8x32xf32, #tpu.memory_space<vmem>>, vector<8x32xf32>
    %145 = arith.truncf %143 : vector<8x32xf32> to vector<8x32xbf16>
    %cst_64 = arith.constant dense<0.000000e+00> : vector<8x128xf32>
    %146 = tpu.matmul %145, %7, %cst_64 {dimension_numbers = #tpu.dot_dimension_numbers<[1], [0], [0], [1], [0, 0, 1, 1], [], []>} : vector<8x32xbf16>, vector<32x128xbf16>, vector<8x128xf32> -> vector<8x128xf32>
    %147 = arith.addf %22, %146 : vector<8x128xf32>
    %148 = arith.negf %147 : vector<8x128xf32>
    %149 = math.exp %148 : vector<8x128xf32>
    %cst_65 = arith.constant 1.000000e+00 : f32
    %150 = vector.broadcast %cst_65 : f32 to vector<8x128xf32>
    %151 = arith.addf %150, %149 : vector<8x128xf32>
    %152 = arith.divf %150, %151 : vector<8x128xf32>
    %153 = math.tanh %147 : vector<8x128xf32>
    %154 = vector.extract_strided_slice %152 {offsets = [0, 0], sizes = [8, 32], strides = [1, 1]} : vector<8x128xf32> to vector<8x32xf32>
    %155 = vector.extract_strided_slice %152 {offsets = [0, 32], sizes = [8, 32], strides = [1, 1]} : vector<8x128xf32> to vector<8x32xf32>
    %156 = vector.extract_strided_slice %153 {offsets = [0, 64], sizes = [8, 32], strides = [1, 1]} : vector<8x128xf32> to vector<8x32xf32>
    %157 = vector.extract_strided_slice %152 {offsets = [0, 96], sizes = [8, 32], strides = [1, 1]} : vector<8x128xf32> to vector<8x32xf32>
    %158 = arith.mulf %155, %144 : vector<8x32xf32>
    %159 = arith.mulf %154, %156 : vector<8x32xf32>
    %160 = arith.addf %158, %159 : vector<8x32xf32>
    %161 = math.tanh %160 : vector<8x32xf32>
    %162 = arith.mulf %157, %161 : vector<8x32xf32>
    %163 = vector.shape_cast %64 : vector<8x1xi1> to vector<8x1xi1>
    %164 = vector.broadcast %163 : vector<8x1xi1> to vector<8x32xi1>
    %165 = arith.select %164, %162, %143 : vector<8x32xi1>, vector<8x32xf32>
    %166 = vector.shape_cast %64 : vector<8x1xi1> to vector<8x1xi1>
    %167 = vector.broadcast %166 : vector<8x1xi1> to vector<8x32xi1>
    %168 = arith.select %167, %160, %144 : vector<8x32xi1>, vector<8x32xf32>
    %c0_66 = arith.constant 0 : index
    %c0_67 = arith.constant 0 : index
    %169 = vector.load %arg13[%c0_66, %c0_67] : memref<8x32xf32, #tpu.memory_space<vmem>>, vector<8x32xf32>
    tpu.vector_store %arg13[%c0_66, %c0_67], %165 {strides = array<i32>} : memref<8x32xf32, #tpu.memory_space<vmem>>, vector<8x32xf32>,
    %c0_68 = arith.constant 0 : index
    %c0_69 = arith.constant 0 : index
    %170 = vector.load %arg15[%c0_68, %c0_69] : memref<8x32xf32, #tpu.memory_space<vmem>>, vector<8x32xf32>
    tpu.vector_store %arg15[%c0_68, %c0_69], %168 {strides = array<i32>} : memref<8x32xf32, #tpu.memory_space<vmem>>, vector<8x32xf32>,
    %171 = arith.truncf %165 : vector<8x32xf32> to vector<8x32xbf16>
    %cst_70 = arith.constant dense<0.000000e+00> : vector<8x128xf32>
    %172 = tpu.matmul %171, %6, %cst_70 {dimension_numbers = #tpu.dot_dimension_numbers<[1], [0], [0], [1], [0, 0, 1, 1], [], []>} : vector<8x32xbf16>, vector<32x128xbf16>, vector<8x128xf32> -> vector<8x128xf32>
    %173 = vector.broadcast %10 : vector<1x128xf32> to vector<8x128xf32>
    %174 = arith.addf %172, %173 : vector<8x128xf32>
    %c0_71 = arith.constant 0 : index
    %c0_72 = arith.constant 0 : index
    %175 = vector.load %arg14[%c0_71, %c0_72] : memref<8x32xf32, #tpu.memory_space<vmem>>, vector<8x32xf32>
    %c0_73 = arith.constant 0 : index
    %c0_74 = arith.constant 0 : index
    %176 = vector.load %arg16[%c0_73, %c0_74] : memref<8x32xf32, #tpu.memory_space<vmem>>, vector<8x32xf32>
    %177 = arith.truncf %175 : vector<8x32xf32> to vector<8x32xbf16>
    %cst_75 = arith.constant dense<0.000000e+00> : vector<8x128xf32>
    %178 = tpu.matmul %177, %8, %cst_75 {dimension_numbers = #tpu.dot_dimension_numbers<[1], [0], [0], [1], [0, 0, 1, 1], [], []>} : vector<8x32xbf16>, vector<32x128xbf16>, vector<8x128xf32> -> vector<8x128xf32>
    %179 = arith.addf %174, %178 : vector<8x128xf32>
    %180 = arith.negf %179 : vector<8x128xf32>
    %181 = math.exp %180 : vector<8x128xf32>
    %cst_76 = arith.constant 1.000000e+00 : f32
    %182 = vector.broadcast %cst_76 : f32 to vector<8x128xf32>
    %183 = arith.addf %182, %181 : vector<8x128xf32>
    %184 = arith.divf %182, %183 : vector<8x128xf32>
    %185 = math.tanh %179 : vector<8x128xf32>
    %186 = vector.extract_strided_slice %184 {offsets = [0, 0], sizes = [8, 32], strides = [1, 1]} : vector<8x128xf32> to vector<8x32xf32>
    %187 = vector.extract_strided_slice %184 {offsets = [0, 32], sizes = [8, 32], strides = [1, 1]} : vector<8x128xf32> to vector<8x32xf32>
    %188 = vector.extract_strided_slice %185 {offsets = [0, 64], sizes = [8, 32], strides = [1, 1]} : vector<8x128xf32> to vector<8x32xf32>
    %189 = vector.extract_strided_slice %184 {offsets = [0, 96], sizes = [8, 32], strides = [1, 1]} : vector<8x128xf32> to vector<8x32xf32>
    %190 = arith.mulf %187, %176 : vector<8x32xf32>
    %191 = arith.mulf %186, %188 : vector<8x32xf32>
    %192 = arith.addf %190, %191 : vector<8x32xf32>
    %193 = math.tanh %192 : vector<8x32xf32>
    %194 = arith.mulf %189, %193 : vector<8x32xf32>
    %195 = vector.shape_cast %64 : vector<8x1xi1> to vector<8x1xi1>
    %196 = vector.broadcast %195 : vector<8x1xi1> to vector<8x32xi1>
    %197 = arith.select %196, %194, %175 : vector<8x32xi1>, vector<8x32xf32>
    %198 = vector.shape_cast %64 : vector<8x1xi1> to vector<8x1xi1>
    %199 = vector.broadcast %198 : vector<8x1xi1> to vector<8x32xi1>
    %200 = arith.select %199, %192, %176 : vector<8x32xi1>, vector<8x32xf32>
    %c0_77 = arith.constant 0 : index
    %c0_78 = arith.constant 0 : index
    %201 = vector.load %arg14[%c0_77, %c0_78] : memref<8x32xf32, #tpu.memory_space<vmem>>, vector<8x32xf32>
    tpu.vector_store %arg14[%c0_77, %c0_78], %197 {strides = array<i32>} : memref<8x32xf32, #tpu.memory_space<vmem>>, vector<8x32xf32>,
    %c0_79 = arith.constant 0 : index
    %c0_80 = arith.constant 0 : index
    %202 = vector.load %arg16[%c0_79, %c0_80] : memref<8x32xf32, #tpu.memory_space<vmem>>, vector<8x32xf32>
    tpu.vector_store %arg16[%c0_79, %c0_80], %200 {strides = array<i32>} : memref<8x32xf32, #tpu.memory_space<vmem>>, vector<8x32xf32>,
    %c0_81 = arith.constant 0 : index
    %c0_82 = arith.constant 0 : index
    %203 = vector.load %arg13[%c0_81, %c0_82] : memref<8x32xf32, #tpu.memory_space<vmem>>, vector<8x32xf32>
    %c0_83 = arith.constant 0 : index
    %c0_84 = arith.constant 0 : index
    %204 = vector.load %arg15[%c0_83, %c0_84] : memref<8x32xf32, #tpu.memory_space<vmem>>, vector<8x32xf32>
    %205 = arith.truncf %203 : vector<8x32xf32> to vector<8x32xbf16>
    %cst_85 = arith.constant dense<0.000000e+00> : vector<8x128xf32>
    %206 = tpu.matmul %205, %7, %cst_85 {dimension_numbers = #tpu.dot_dimension_numbers<[1], [0], [0], [1], [0, 0, 1, 1], [], []>} : vector<8x32xbf16>, vector<32x128xbf16>, vector<8x128xf32> -> vector<8x128xf32>
    %207 = arith.addf %28, %206 : vector<8x128xf32>
    %208 = arith.negf %207 : vector<8x128xf32>
    %209 = math.exp %208 : vector<8x128xf32>
    %cst_86 = arith.constant 1.000000e+00 : f32
    %210 = vector.broadcast %cst_86 : f32 to vector<8x128xf32>
    %211 = arith.addf %210, %209 : vector<8x128xf32>
    %212 = arith.divf %210, %211 : vector<8x128xf32>
    %213 = math.tanh %207 : vector<8x128xf32>
    %214 = vector.extract_strided_slice %212 {offsets = [0, 0], sizes = [8, 32], strides = [1, 1]} : vector<8x128xf32> to vector<8x32xf32>
    %215 = vector.extract_strided_slice %212 {offsets = [0, 32], sizes = [8, 32], strides = [1, 1]} : vector<8x128xf32> to vector<8x32xf32>
    %216 = vector.extract_strided_slice %213 {offsets = [0, 64], sizes = [8, 32], strides = [1, 1]} : vector<8x128xf32> to vector<8x32xf32>
    %217 = vector.extract_strided_slice %212 {offsets = [0, 96], sizes = [8, 32], strides = [1, 1]} : vector<8x128xf32> to vector<8x32xf32>
    %218 = arith.mulf %215, %204 : vector<8x32xf32>
    %219 = arith.mulf %214, %216 : vector<8x32xf32>
    %220 = arith.addf %218, %219 : vector<8x32xf32>
    %221 = math.tanh %220 : vector<8x32xf32>
    %222 = arith.mulf %217, %221 : vector<8x32xf32>
    %223 = vector.shape_cast %67 : vector<8x1xi1> to vector<8x1xi1>
    %224 = vector.broadcast %223 : vector<8x1xi1> to vector<8x32xi1>
    %225 = arith.select %224, %222, %203 : vector<8x32xi1>, vector<8x32xf32>
    %226 = vector.shape_cast %67 : vector<8x1xi1> to vector<8x1xi1>
    %227 = vector.broadcast %226 : vector<8x1xi1> to vector<8x32xi1>
    %228 = arith.select %227, %220, %204 : vector<8x32xi1>, vector<8x32xf32>
    %c0_87 = arith.constant 0 : index
    %c0_88 = arith.constant 0 : index
    %229 = vector.load %arg13[%c0_87, %c0_88] : memref<8x32xf32, #tpu.memory_space<vmem>>, vector<8x32xf32>
    tpu.vector_store %arg13[%c0_87, %c0_88], %225 {strides = array<i32>} : memref<8x32xf32, #tpu.memory_space<vmem>>, vector<8x32xf32>,
    %c0_89 = arith.constant 0 : index
    %c0_90 = arith.constant 0 : index
    %230 = vector.load %arg15[%c0_89, %c0_90] : memref<8x32xf32, #tpu.memory_space<vmem>>, vector<8x32xf32>
    tpu.vector_store %arg15[%c0_89, %c0_90], %228 {strides = array<i32>} : memref<8x32xf32, #tpu.memory_space<vmem>>, vector<8x32xf32>,
    %231 = arith.truncf %225 : vector<8x32xf32> to vector<8x32xbf16>
    %cst_91 = arith.constant dense<0.000000e+00> : vector<8x128xf32>
    %232 = tpu.matmul %231, %6, %cst_91 {dimension_numbers = #tpu.dot_dimension_numbers<[1], [0], [0], [1], [0, 0, 1, 1], [], []>} : vector<8x32xbf16>, vector<32x128xbf16>, vector<8x128xf32> -> vector<8x128xf32>
    %233 = vector.broadcast %10 : vector<1x128xf32> to vector<8x128xf32>
    %234 = arith.addf %232, %233 : vector<8x128xf32>
    %c0_92 = arith.constant 0 : index
    %c0_93 = arith.constant 0 : index
    %235 = vector.load %arg14[%c0_92, %c0_93] : memref<8x32xf32, #tpu.memory_space<vmem>>, vector<8x32xf32>
    %c0_94 = arith.constant 0 : index
    %c0_95 = arith.constant 0 : index
    %236 = vector.load %arg16[%c0_94, %c0_95] : memref<8x32xf32, #tpu.memory_space<vmem>>, vector<8x32xf32>
    %237 = arith.truncf %235 : vector<8x32xf32> to vector<8x32xbf16>
    %cst_96 = arith.constant dense<0.000000e+00> : vector<8x128xf32>
    %238 = tpu.matmul %237, %8, %cst_96 {dimension_numbers = #tpu.dot_dimension_numbers<[1], [0], [0], [1], [0, 0, 1, 1], [], []>} : vector<8x32xbf16>, vector<32x128xbf16>, vector<8x128xf32> -> vector<8x128xf32>
    %239 = arith.addf %234, %238 : vector<8x128xf32>
    %240 = arith.negf %239 : vector<8x128xf32>
    %241 = math.exp %240 : vector<8x128xf32>
    %cst_97 = arith.constant 1.000000e+00 : f32
    %242 = vector.broadcast %cst_97 : f32 to vector<8x128xf32>
    %243 = arith.addf %242, %241 : vector<8x128xf32>
    %244 = arith.divf %242, %243 : vector<8x128xf32>
    %245 = math.tanh %239 : vector<8x128xf32>
    %246 = vector.extract_strided_slice %244 {offsets = [0, 0], sizes = [8, 32], strides = [1, 1]} : vector<8x128xf32> to vector<8x32xf32>
    %247 = vector.extract_strided_slice %244 {offsets = [0, 32], sizes = [8, 32], strides = [1, 1]} : vector<8x128xf32> to vector<8x32xf32>
    %248 = vector.extract_strided_slice %245 {offsets = [0, 64], sizes = [8, 32], strides = [1, 1]} : vector<8x128xf32> to vector<8x32xf32>
    %249 = vector.extract_strided_slice %244 {offsets = [0, 96], sizes = [8, 32], strides = [1, 1]} : vector<8x128xf32> to vector<8x32xf32>
    %250 = arith.mulf %247, %236 : vector<8x32xf32>
    %251 = arith.mulf %246, %248 : vector<8x32xf32>
    %252 = arith.addf %250, %251 : vector<8x32xf32>
    %253 = math.tanh %252 : vector<8x32xf32>
    %254 = arith.mulf %249, %253 : vector<8x32xf32>
    %255 = vector.shape_cast %67 : vector<8x1xi1> to vector<8x1xi1>
    %256 = vector.broadcast %255 : vector<8x1xi1> to vector<8x32xi1>
    %257 = arith.select %256, %254, %235 : vector<8x32xi1>, vector<8x32xf32>
    %258 = vector.shape_cast %67 : vector<8x1xi1> to vector<8x1xi1>
    %259 = vector.broadcast %258 : vector<8x1xi1> to vector<8x32xi1>
    %260 = arith.select %259, %252, %236 : vector<8x32xi1>, vector<8x32xf32>
    %c0_98 = arith.constant 0 : index
    %c0_99 = arith.constant 0 : index
    %261 = vector.load %arg14[%c0_98, %c0_99] : memref<8x32xf32, #tpu.memory_space<vmem>>, vector<8x32xf32>
    tpu.vector_store %arg14[%c0_98, %c0_99], %257 {strides = array<i32>} : memref<8x32xf32, #tpu.memory_space<vmem>>, vector<8x32xf32>,
    %c0_100 = arith.constant 0 : index
    %c0_101 = arith.constant 0 : index
    %262 = vector.load %arg16[%c0_100, %c0_101] : memref<8x32xf32, #tpu.memory_space<vmem>>, vector<8x32xf32>
    tpu.vector_store %arg16[%c0_100, %c0_101], %260 {strides = array<i32>} : memref<8x32xf32, #tpu.memory_space<vmem>>, vector<8x32xf32>,
    %c0_102 = arith.constant 0 : index
    %c0_103 = arith.constant 0 : index
    %263 = vector.load %arg13[%c0_102, %c0_103] : memref<8x32xf32, #tpu.memory_space<vmem>>, vector<8x32xf32>
    %c0_104 = arith.constant 0 : index
    %c0_105 = arith.constant 0 : index
    %264 = vector.load %arg15[%c0_104, %c0_105] : memref<8x32xf32, #tpu.memory_space<vmem>>, vector<8x32xf32>
    %265 = arith.truncf %263 : vector<8x32xf32> to vector<8x32xbf16>
    %cst_106 = arith.constant dense<0.000000e+00> : vector<8x128xf32>
    %266 = tpu.matmul %265, %7, %cst_106 {dimension_numbers = #tpu.dot_dimension_numbers<[1], [0], [0], [1], [0, 0, 1, 1], [], []>} : vector<8x32xbf16>, vector<32x128xbf16>, vector<8x128xf32> -> vector<8x128xf32>
    %267 = arith.addf %34, %266 : vector<8x128xf32>
    %268 = arith.negf %267 : vector<8x128xf32>
    %269 = math.exp %268 : vector<8x128xf32>
    %cst_107 = arith.constant 1.000000e+00 : f32
    %270 = vector.broadcast %cst_107 : f32 to vector<8x128xf32>
    %271 = arith.addf %270, %269 : vector<8x128xf32>
    %272 = arith.divf %270, %271 : vector<8x128xf32>
    %273 = math.tanh %267 : vector<8x128xf32>
    %274 = vector.extract_strided_slice %272 {offsets = [0, 0], sizes = [8, 32], strides = [1, 1]} : vector<8x128xf32> to vector<8x32xf32>
    %275 = vector.extract_strided_slice %272 {offsets = [0, 32], sizes = [8, 32], strides = [1, 1]} : vector<8x128xf32> to vector<8x32xf32>
    %276 = vector.extract_strided_slice %273 {offsets = [0, 64], sizes = [8, 32], strides = [1, 1]} : vector<8x128xf32> to vector<8x32xf32>
    %277 = vector.extract_strided_slice %272 {offsets = [0, 96], sizes = [8, 32], strides = [1, 1]} : vector<8x128xf32> to vector<8x32xf32>
    %278 = arith.mulf %275, %264 : vector<8x32xf32>
    %279 = arith.mulf %274, %276 : vector<8x32xf32>
    %280 = arith.addf %278, %279 : vector<8x32xf32>
    %281 = math.tanh %280 : vector<8x32xf32>
    %282 = arith.mulf %277, %281 : vector<8x32xf32>
    %283 = vector.shape_cast %70 : vector<8x1xi1> to vector<8x1xi1>
    %284 = vector.broadcast %283 : vector<8x1xi1> to vector<8x32xi1>
    %285 = arith.select %284, %282, %263 : vector<8x32xi1>, vector<8x32xf32>
    %286 = vector.shape_cast %70 : vector<8x1xi1> to vector<8x1xi1>
    %287 = vector.broadcast %286 : vector<8x1xi1> to vector<8x32xi1>
    %288 = arith.select %287, %280, %264 : vector<8x32xi1>, vector<8x32xf32>
    %c0_108 = arith.constant 0 : index
    %c0_109 = arith.constant 0 : index
    %289 = vector.load %arg13[%c0_108, %c0_109] : memref<8x32xf32, #tpu.memory_space<vmem>>, vector<8x32xf32>
    tpu.vector_store %arg13[%c0_108, %c0_109], %285 {strides = array<i32>} : memref<8x32xf32, #tpu.memory_space<vmem>>, vector<8x32xf32>,
    %c0_110 = arith.constant 0 : index
    %c0_111 = arith.constant 0 : index
    %290 = vector.load %arg15[%c0_110, %c0_111] : memref<8x32xf32, #tpu.memory_space<vmem>>, vector<8x32xf32>
    tpu.vector_store %arg15[%c0_110, %c0_111], %288 {strides = array<i32>} : memref<8x32xf32, #tpu.memory_space<vmem>>, vector<8x32xf32>,
    %291 = arith.truncf %285 : vector<8x32xf32> to vector<8x32xbf16>
    %cst_112 = arith.constant dense<0.000000e+00> : vector<8x128xf32>
    %292 = tpu.matmul %291, %6, %cst_112 {dimension_numbers = #tpu.dot_dimension_numbers<[1], [0], [0], [1], [0, 0, 1, 1], [], []>} : vector<8x32xbf16>, vector<32x128xbf16>, vector<8x128xf32> -> vector<8x128xf32>
    %293 = vector.broadcast %10 : vector<1x128xf32> to vector<8x128xf32>
    %294 = arith.addf %292, %293 : vector<8x128xf32>
    %c0_113 = arith.constant 0 : index
    %c0_114 = arith.constant 0 : index
    %295 = vector.load %arg14[%c0_113, %c0_114] : memref<8x32xf32, #tpu.memory_space<vmem>>, vector<8x32xf32>
    %c0_115 = arith.constant 0 : index
    %c0_116 = arith.constant 0 : index
    %296 = vector.load %arg16[%c0_115, %c0_116] : memref<8x32xf32, #tpu.memory_space<vmem>>, vector<8x32xf32>
    %297 = arith.truncf %295 : vector<8x32xf32> to vector<8x32xbf16>
    %cst_117 = arith.constant dense<0.000000e+00> : vector<8x128xf32>
    %298 = tpu.matmul %297, %8, %cst_117 {dimension_numbers = #tpu.dot_dimension_numbers<[1], [0], [0], [1], [0, 0, 1, 1], [], []>} : vector<8x32xbf16>, vector<32x128xbf16>, vector<8x128xf32> -> vector<8x128xf32>
    %299 = arith.addf %294, %298 : vector<8x128xf32>
    %300 = arith.negf %299 : vector<8x128xf32>
    %301 = math.exp %300 : vector<8x128xf32>
    %cst_118 = arith.constant 1.000000e+00 : f32
    %302 = vector.broadcast %cst_118 : f32 to vector<8x128xf32>
    %303 = arith.addf %302, %301 : vector<8x128xf32>
    %304 = arith.divf %302, %303 : vector<8x128xf32>
    %305 = math.tanh %299 : vector<8x128xf32>
    %306 = vector.extract_strided_slice %304 {offsets = [0, 0], sizes = [8, 32], strides = [1, 1]} : vector<8x128xf32> to vector<8x32xf32>
    %307 = vector.extract_strided_slice %304 {offsets = [0, 32], sizes = [8, 32], strides = [1, 1]} : vector<8x128xf32> to vector<8x32xf32>
    %308 = vector.extract_strided_slice %305 {offsets = [0, 64], sizes = [8, 32], strides = [1, 1]} : vector<8x128xf32> to vector<8x32xf32>
    %309 = vector.extract_strided_slice %304 {offsets = [0, 96], sizes = [8, 32], strides = [1, 1]} : vector<8x128xf32> to vector<8x32xf32>
    %310 = arith.mulf %307, %296 : vector<8x32xf32>
    %311 = arith.mulf %306, %308 : vector<8x32xf32>
    %312 = arith.addf %310, %311 : vector<8x32xf32>
    %313 = math.tanh %312 : vector<8x32xf32>
    %314 = arith.mulf %309, %313 : vector<8x32xf32>
    %315 = vector.shape_cast %70 : vector<8x1xi1> to vector<8x1xi1>
    %316 = vector.broadcast %315 : vector<8x1xi1> to vector<8x32xi1>
    %317 = arith.select %316, %314, %295 : vector<8x32xi1>, vector<8x32xf32>
    %318 = vector.shape_cast %70 : vector<8x1xi1> to vector<8x1xi1>
    %319 = vector.broadcast %318 : vector<8x1xi1> to vector<8x32xi1>
    %320 = arith.select %319, %312, %296 : vector<8x32xi1>, vector<8x32xf32>
    %c0_119 = arith.constant 0 : index
    %c0_120 = arith.constant 0 : index
    %321 = vector.load %arg14[%c0_119, %c0_120] : memref<8x32xf32, #tpu.memory_space<vmem>>, vector<8x32xf32>
    tpu.vector_store %arg14[%c0_119, %c0_120], %317 {strides = array<i32>} : memref<8x32xf32, #tpu.memory_space<vmem>>, vector<8x32xf32>,
    %c0_121 = arith.constant 0 : index
    %c0_122 = arith.constant 0 : index
    %322 = vector.load %arg16[%c0_121, %c0_122] : memref<8x32xf32, #tpu.memory_space<vmem>>, vector<8x32xf32>
    tpu.vector_store %arg16[%c0_121, %c0_122], %320 {strides = array<i32>} : memref<8x32xf32, #tpu.memory_space<vmem>>, vector<8x32xf32>,
    %c0_123 = arith.constant 0 : index
    %c0_124 = arith.constant 0 : index
    %323 = vector.load %arg13[%c0_123, %c0_124] : memref<8x32xf32, #tpu.memory_space<vmem>>, vector<8x32xf32>
    %c0_125 = arith.constant 0 : index
    %c0_126 = arith.constant 0 : index
    %324 = vector.load %arg15[%c0_125, %c0_126] : memref<8x32xf32, #tpu.memory_space<vmem>>, vector<8x32xf32>
    %325 = arith.truncf %323 : vector<8x32xf32> to vector<8x32xbf16>
    %cst_127 = arith.constant dense<0.000000e+00> : vector<8x128xf32>
    %326 = tpu.matmul %325, %7, %cst_127 {dimension_numbers = #tpu.dot_dimension_numbers<[1], [0], [0], [1], [0, 0, 1, 1], [], []>} : vector<8x32xbf16>, vector<32x128xbf16>, vector<8x128xf32> -> vector<8x128xf32>
    %327 = arith.addf %40, %326 : vector<8x128xf32>
    %328 = arith.negf %327 : vector<8x128xf32>
    %329 = math.exp %328 : vector<8x128xf32>
    %cst_128 = arith.constant 1.000000e+00 : f32
    %330 = vector.broadcast %cst_128 : f32 to vector<8x128xf32>
    %331 = arith.addf %330, %329 : vector<8x128xf32>
    %332 = arith.divf %330, %331 : vector<8x128xf32>
    %333 = math.tanh %327 : vector<8x128xf32>
    %334 = vector.extract_strided_slice %332 {offsets = [0, 0], sizes = [8, 32], strides = [1, 1]} : vector<8x128xf32> to vector<8x32xf32>
    %335 = vector.extract_strided_slice %332 {offsets = [0, 32], sizes = [8, 32], strides = [1, 1]} : vector<8x128xf32> to vector<8x32xf32>
    %336 = vector.extract_strided_slice %333 {offsets = [0, 64], sizes = [8, 32], strides = [1, 1]} : vector<8x128xf32> to vector<8x32xf32>
    %337 = vector.extract_strided_slice %332 {offsets = [0, 96], sizes = [8, 32], strides = [1, 1]} : vector<8x128xf32> to vector<8x32xf32>
    %338 = arith.mulf %335, %324 : vector<8x32xf32>
    %339 = arith.mulf %334, %336 : vector<8x32xf32>
    %340 = arith.addf %338, %339 : vector<8x32xf32>
    %341 = math.tanh %340 : vector<8x32xf32>
    %342 = arith.mulf %337, %341 : vector<8x32xf32>
    %343 = vector.shape_cast %73 : vector<8x1xi1> to vector<8x1xi1>
    %344 = vector.broadcast %343 : vector<8x1xi1> to vector<8x32xi1>
    %345 = arith.select %344, %342, %323 : vector<8x32xi1>, vector<8x32xf32>
    %346 = vector.shape_cast %73 : vector<8x1xi1> to vector<8x1xi1>
    %347 = vector.broadcast %346 : vector<8x1xi1> to vector<8x32xi1>
    %348 = arith.select %347, %340, %324 : vector<8x32xi1>, vector<8x32xf32>
    %c0_129 = arith.constant 0 : index
    %c0_130 = arith.constant 0 : index
    %349 = vector.load %arg13[%c0_129, %c0_130] : memref<8x32xf32, #tpu.memory_space<vmem>>, vector<8x32xf32>
    tpu.vector_store %arg13[%c0_129, %c0_130], %345 {strides = array<i32>} : memref<8x32xf32, #tpu.memory_space<vmem>>, vector<8x32xf32>,
    %c0_131 = arith.constant 0 : index
    %c0_132 = arith.constant 0 : index
    %350 = vector.load %arg15[%c0_131, %c0_132] : memref<8x32xf32, #tpu.memory_space<vmem>>, vector<8x32xf32>
    tpu.vector_store %arg15[%c0_131, %c0_132], %348 {strides = array<i32>} : memref<8x32xf32, #tpu.memory_space<vmem>>, vector<8x32xf32>,
    %351 = arith.truncf %345 : vector<8x32xf32> to vector<8x32xbf16>
    %cst_133 = arith.constant dense<0.000000e+00> : vector<8x128xf32>
    %352 = tpu.matmul %351, %6, %cst_133 {dimension_numbers = #tpu.dot_dimension_numbers<[1], [0], [0], [1], [0, 0, 1, 1], [], []>} : vector<8x32xbf16>, vector<32x128xbf16>, vector<8x128xf32> -> vector<8x128xf32>
    %353 = vector.broadcast %10 : vector<1x128xf32> to vector<8x128xf32>
    %354 = arith.addf %352, %353 : vector<8x128xf32>
    %c0_134 = arith.constant 0 : index
    %c0_135 = arith.constant 0 : index
    %355 = vector.load %arg14[%c0_134, %c0_135] : memref<8x32xf32, #tpu.memory_space<vmem>>, vector<8x32xf32>
    %c0_136 = arith.constant 0 : index
    %c0_137 = arith.constant 0 : index
    %356 = vector.load %arg16[%c0_136, %c0_137] : memref<8x32xf32, #tpu.memory_space<vmem>>, vector<8x32xf32>
    %357 = arith.truncf %355 : vector<8x32xf32> to vector<8x32xbf16>
    %cst_138 = arith.constant dense<0.000000e+00> : vector<8x128xf32>
    %358 = tpu.matmul %357, %8, %cst_138 {dimension_numbers = #tpu.dot_dimension_numbers<[1], [0], [0], [1], [0, 0, 1, 1], [], []>} : vector<8x32xbf16>, vector<32x128xbf16>, vector<8x128xf32> -> vector<8x128xf32>
    %359 = arith.addf %354, %358 : vector<8x128xf32>
    %360 = arith.negf %359 : vector<8x128xf32>
    %361 = math.exp %360 : vector<8x128xf32>
    %cst_139 = arith.constant 1.000000e+00 : f32
    %362 = vector.broadcast %cst_139 : f32 to vector<8x128xf32>
    %363 = arith.addf %362, %361 : vector<8x128xf32>
    %364 = arith.divf %362, %363 : vector<8x128xf32>
    %365 = math.tanh %359 : vector<8x128xf32>
    %366 = vector.extract_strided_slice %364 {offsets = [0, 0], sizes = [8, 32], strides = [1, 1]} : vector<8x128xf32> to vector<8x32xf32>
    %367 = vector.extract_strided_slice %364 {offsets = [0, 32], sizes = [8, 32], strides = [1, 1]} : vector<8x128xf32> to vector<8x32xf32>
    %368 = vector.extract_strided_slice %365 {offsets = [0, 64], sizes = [8, 32], strides = [1, 1]} : vector<8x128xf32> to vector<8x32xf32>
    %369 = vector.extract_strided_slice %364 {offsets = [0, 96], sizes = [8, 32], strides = [1, 1]} : vector<8x128xf32> to vector<8x32xf32>
    %370 = arith.mulf %367, %356 : vector<8x32xf32>
    %371 = arith.mulf %366, %368 : vector<8x32xf32>
    %372 = arith.addf %370, %371 : vector<8x32xf32>
    %373 = math.tanh %372 : vector<8x32xf32>
    %374 = arith.mulf %369, %373 : vector<8x32xf32>
    %375 = vector.shape_cast %73 : vector<8x1xi1> to vector<8x1xi1>
    %376 = vector.broadcast %375 : vector<8x1xi1> to vector<8x32xi1>
    %377 = arith.select %376, %374, %355 : vector<8x32xi1>, vector<8x32xf32>
    %378 = vector.shape_cast %73 : vector<8x1xi1> to vector<8x1xi1>
    %379 = vector.broadcast %378 : vector<8x1xi1> to vector<8x32xi1>
    %380 = arith.select %379, %372, %356 : vector<8x32xi1>, vector<8x32xf32>
    %c0_140 = arith.constant 0 : index
    %c0_141 = arith.constant 0 : index
    %381 = vector.load %arg14[%c0_140, %c0_141] : memref<8x32xf32, #tpu.memory_space<vmem>>, vector<8x32xf32>
    tpu.vector_store %arg14[%c0_140, %c0_141], %377 {strides = array<i32>} : memref<8x32xf32, #tpu.memory_space<vmem>>, vector<8x32xf32>,
    %c0_142 = arith.constant 0 : index
    %c0_143 = arith.constant 0 : index
    %382 = vector.load %arg16[%c0_142, %c0_143] : memref<8x32xf32, #tpu.memory_space<vmem>>, vector<8x32xf32>
    tpu.vector_store %arg16[%c0_142, %c0_143], %380 {strides = array<i32>} : memref<8x32xf32, #tpu.memory_space<vmem>>, vector<8x32xf32>,
    %c0_144 = arith.constant 0 : index
    %c0_145 = arith.constant 0 : index
    %383 = vector.load %arg13[%c0_144, %c0_145] : memref<8x32xf32, #tpu.memory_space<vmem>>, vector<8x32xf32>
    %c0_146 = arith.constant 0 : index
    %c0_147 = arith.constant 0 : index
    %384 = vector.load %arg15[%c0_146, %c0_147] : memref<8x32xf32, #tpu.memory_space<vmem>>, vector<8x32xf32>
    %385 = arith.truncf %383 : vector<8x32xf32> to vector<8x32xbf16>
    %cst_148 = arith.constant dense<0.000000e+00> : vector<8x128xf32>
    %386 = tpu.matmul %385, %7, %cst_148 {dimension_numbers = #tpu.dot_dimension_numbers<[1], [0], [0], [1], [0, 0, 1, 1], [], []>} : vector<8x32xbf16>, vector<32x128xbf16>, vector<8x128xf32> -> vector<8x128xf32>
    %387 = arith.addf %46, %386 : vector<8x128xf32>
    %388 = arith.negf %387 : vector<8x128xf32>
    %389 = math.exp %388 : vector<8x128xf32>
    %cst_149 = arith.constant 1.000000e+00 : f32
    %390 = vector.broadcast %cst_149 : f32 to vector<8x128xf32>
    %391 = arith.addf %390, %389 : vector<8x128xf32>
    %392 = arith.divf %390, %391 : vector<8x128xf32>
    %393 = math.tanh %387 : vector<8x128xf32>
    %394 = vector.extract_strided_slice %392 {offsets = [0, 0], sizes = [8, 32], strides = [1, 1]} : vector<8x128xf32> to vector<8x32xf32>
    %395 = vector.extract_strided_slice %392 {offsets = [0, 32], sizes = [8, 32], strides = [1, 1]} : vector<8x128xf32> to vector<8x32xf32>
    %396 = vector.extract_strided_slice %393 {offsets = [0, 64], sizes = [8, 32], strides = [1, 1]} : vector<8x128xf32> to vector<8x32xf32>
    %397 = vector.extract_strided_slice %392 {offsets = [0, 96], sizes = [8, 32], strides = [1, 1]} : vector<8x128xf32> to vector<8x32xf32>
    %398 = arith.mulf %395, %384 : vector<8x32xf32>
    %399 = arith.mulf %394, %396 : vector<8x32xf32>
    %400 = arith.addf %398, %399 : vector<8x32xf32>
    %401 = math.tanh %400 : vector<8x32xf32>
    %402 = arith.mulf %397, %401 : vector<8x32xf32>
    %403 = vector.shape_cast %76 : vector<8x1xi1> to vector<8x1xi1>
    %404 = vector.broadcast %403 : vector<8x1xi1> to vector<8x32xi1>
    %405 = arith.select %404, %402, %383 : vector<8x32xi1>, vector<8x32xf32>
    %406 = vector.shape_cast %76 : vector<8x1xi1> to vector<8x1xi1>
    %407 = vector.broadcast %406 : vector<8x1xi1> to vector<8x32xi1>
    %408 = arith.select %407, %400, %384 : vector<8x32xi1>, vector<8x32xf32>
    %c0_150 = arith.constant 0 : index
    %c0_151 = arith.constant 0 : index
    %409 = vector.load %arg13[%c0_150, %c0_151] : memref<8x32xf32, #tpu.memory_space<vmem>>, vector<8x32xf32>
    tpu.vector_store %arg13[%c0_150, %c0_151], %405 {strides = array<i32>} : memref<8x32xf32, #tpu.memory_space<vmem>>, vector<8x32xf32>,
    %c0_152 = arith.constant 0 : index
    %c0_153 = arith.constant 0 : index
    %410 = vector.load %arg15[%c0_152, %c0_153] : memref<8x32xf32, #tpu.memory_space<vmem>>, vector<8x32xf32>
    tpu.vector_store %arg15[%c0_152, %c0_153], %408 {strides = array<i32>} : memref<8x32xf32, #tpu.memory_space<vmem>>, vector<8x32xf32>,
    %411 = arith.truncf %405 : vector<8x32xf32> to vector<8x32xbf16>
    %cst_154 = arith.constant dense<0.000000e+00> : vector<8x128xf32>
    %412 = tpu.matmul %411, %6, %cst_154 {dimension_numbers = #tpu.dot_dimension_numbers<[1], [0], [0], [1], [0, 0, 1, 1], [], []>} : vector<8x32xbf16>, vector<32x128xbf16>, vector<8x128xf32> -> vector<8x128xf32>
    %413 = vector.broadcast %10 : vector<1x128xf32> to vector<8x128xf32>
    %414 = arith.addf %412, %413 : vector<8x128xf32>
    %c0_155 = arith.constant 0 : index
    %c0_156 = arith.constant 0 : index
    %415 = vector.load %arg14[%c0_155, %c0_156] : memref<8x32xf32, #tpu.memory_space<vmem>>, vector<8x32xf32>
    %c0_157 = arith.constant 0 : index
    %c0_158 = arith.constant 0 : index
    %416 = vector.load %arg16[%c0_157, %c0_158] : memref<8x32xf32, #tpu.memory_space<vmem>>, vector<8x32xf32>
    %417 = arith.truncf %415 : vector<8x32xf32> to vector<8x32xbf16>
    %cst_159 = arith.constant dense<0.000000e+00> : vector<8x128xf32>
    %418 = tpu.matmul %417, %8, %cst_159 {dimension_numbers = #tpu.dot_dimension_numbers<[1], [0], [0], [1], [0, 0, 1, 1], [], []>} : vector<8x32xbf16>, vector<32x128xbf16>, vector<8x128xf32> -> vector<8x128xf32>
    %419 = arith.addf %414, %418 : vector<8x128xf32>
    %420 = arith.negf %419 : vector<8x128xf32>
    %421 = math.exp %420 : vector<8x128xf32>
    %cst_160 = arith.constant 1.000000e+00 : f32
    %422 = vector.broadcast %cst_160 : f32 to vector<8x128xf32>
    %423 = arith.addf %422, %421 : vector<8x128xf32>
    %424 = arith.divf %422, %423 : vector<8x128xf32>
    %425 = math.tanh %419 : vector<8x128xf32>
    %426 = vector.extract_strided_slice %424 {offsets = [0, 0], sizes = [8, 32], strides = [1, 1]} : vector<8x128xf32> to vector<8x32xf32>
    %427 = vector.extract_strided_slice %424 {offsets = [0, 32], sizes = [8, 32], strides = [1, 1]} : vector<8x128xf32> to vector<8x32xf32>
    %428 = vector.extract_strided_slice %425 {offsets = [0, 64], sizes = [8, 32], strides = [1, 1]} : vector<8x128xf32> to vector<8x32xf32>
    %429 = vector.extract_strided_slice %424 {offsets = [0, 96], sizes = [8, 32], strides = [1, 1]} : vector<8x128xf32> to vector<8x32xf32>
    %430 = arith.mulf %427, %416 : vector<8x32xf32>
    %431 = arith.mulf %426, %428 : vector<8x32xf32>
    %432 = arith.addf %430, %431 : vector<8x32xf32>
    %433 = math.tanh %432 : vector<8x32xf32>
    %434 = arith.mulf %429, %433 : vector<8x32xf32>
    %435 = vector.shape_cast %76 : vector<8x1xi1> to vector<8x1xi1>
    %436 = vector.broadcast %435 : vector<8x1xi1> to vector<8x32xi1>
    %437 = arith.select %436, %434, %415 : vector<8x32xi1>, vector<8x32xf32>
    %438 = vector.shape_cast %76 : vector<8x1xi1> to vector<8x1xi1>
    %439 = vector.broadcast %438 : vector<8x1xi1> to vector<8x32xi1>
    %440 = arith.select %439, %432, %416 : vector<8x32xi1>, vector<8x32xf32>
    %c0_161 = arith.constant 0 : index
    %c0_162 = arith.constant 0 : index
    %441 = vector.load %arg14[%c0_161, %c0_162] : memref<8x32xf32, #tpu.memory_space<vmem>>, vector<8x32xf32>
    tpu.vector_store %arg14[%c0_161, %c0_162], %437 {strides = array<i32>} : memref<8x32xf32, #tpu.memory_space<vmem>>, vector<8x32xf32>,
    %c0_163 = arith.constant 0 : index
    %c0_164 = arith.constant 0 : index
    %442 = vector.load %arg16[%c0_163, %c0_164] : memref<8x32xf32, #tpu.memory_space<vmem>>, vector<8x32xf32>
    tpu.vector_store %arg16[%c0_163, %c0_164], %440 {strides = array<i32>} : memref<8x32xf32, #tpu.memory_space<vmem>>, vector<8x32xf32>,
    %c0_165 = arith.constant 0 : index
    %c0_166 = arith.constant 0 : index
    %443 = vector.load %arg13[%c0_165, %c0_166] : memref<8x32xf32, #tpu.memory_space<vmem>>, vector<8x32xf32>
    %c0_167 = arith.constant 0 : index
    %c0_168 = arith.constant 0 : index
    %444 = vector.load %arg15[%c0_167, %c0_168] : memref<8x32xf32, #tpu.memory_space<vmem>>, vector<8x32xf32>
    %445 = arith.truncf %443 : vector<8x32xf32> to vector<8x32xbf16>
    %cst_169 = arith.constant dense<0.000000e+00> : vector<8x128xf32>
    %446 = tpu.matmul %445, %7, %cst_169 {dimension_numbers = #tpu.dot_dimension_numbers<[1], [0], [0], [1], [0, 0, 1, 1], [], []>} : vector<8x32xbf16>, vector<32x128xbf16>, vector<8x128xf32> -> vector<8x128xf32>
    %447 = arith.addf %52, %446 : vector<8x128xf32>
    %448 = arith.negf %447 : vector<8x128xf32>
    %449 = math.exp %448 : vector<8x128xf32>
    %cst_170 = arith.constant 1.000000e+00 : f32
    %450 = vector.broadcast %cst_170 : f32 to vector<8x128xf32>
    %451 = arith.addf %450, %449 : vector<8x128xf32>
    %452 = arith.divf %450, %451 : vector<8x128xf32>
    %453 = math.tanh %447 : vector<8x128xf32>
    %454 = vector.extract_strided_slice %452 {offsets = [0, 0], sizes = [8, 32], strides = [1, 1]} : vector<8x128xf32> to vector<8x32xf32>
    %455 = vector.extract_strided_slice %452 {offsets = [0, 32], sizes = [8, 32], strides = [1, 1]} : vector<8x128xf32> to vector<8x32xf32>
    %456 = vector.extract_strided_slice %453 {offsets = [0, 64], sizes = [8, 32], strides = [1, 1]} : vector<8x128xf32> to vector<8x32xf32>
    %457 = vector.extract_strided_slice %452 {offsets = [0, 96], sizes = [8, 32], strides = [1, 1]} : vector<8x128xf32> to vector<8x32xf32>
    %458 = arith.mulf %455, %444 : vector<8x32xf32>
    %459 = arith.mulf %454, %456 : vector<8x32xf32>
    %460 = arith.addf %458, %459 : vector<8x32xf32>
    %461 = math.tanh %460 : vector<8x32xf32>
    %462 = arith.mulf %457, %461 : vector<8x32xf32>
    %463 = vector.shape_cast %79 : vector<8x1xi1> to vector<8x1xi1>
    %464 = vector.broadcast %463 : vector<8x1xi1> to vector<8x32xi1>
    %465 = arith.select %464, %462, %443 : vector<8x32xi1>, vector<8x32xf32>
    %466 = vector.shape_cast %79 : vector<8x1xi1> to vector<8x1xi1>
    %467 = vector.broadcast %466 : vector<8x1xi1> to vector<8x32xi1>
    %468 = arith.select %467, %460, %444 : vector<8x32xi1>, vector<8x32xf32>
    %c0_171 = arith.constant 0 : index
    %c0_172 = arith.constant 0 : index
    %469 = vector.load %arg13[%c0_171, %c0_172] : memref<8x32xf32, #tpu.memory_space<vmem>>, vector<8x32xf32>
    tpu.vector_store %arg13[%c0_171, %c0_172], %465 {strides = array<i32>} : memref<8x32xf32, #tpu.memory_space<vmem>>, vector<8x32xf32>,
    %c0_173 = arith.constant 0 : index
    %c0_174 = arith.constant 0 : index
    %470 = vector.load %arg15[%c0_173, %c0_174] : memref<8x32xf32, #tpu.memory_space<vmem>>, vector<8x32xf32>
    tpu.vector_store %arg15[%c0_173, %c0_174], %468 {strides = array<i32>} : memref<8x32xf32, #tpu.memory_space<vmem>>, vector<8x32xf32>,
    %471 = arith.truncf %465 : vector<8x32xf32> to vector<8x32xbf16>
    %cst_175 = arith.constant dense<0.000000e+00> : vector<8x128xf32>
    %472 = tpu.matmul %471, %6, %cst_175 {dimension_numbers = #tpu.dot_dimension_numbers<[1], [0], [0], [1], [0, 0, 1, 1], [], []>} : vector<8x32xbf16>, vector<32x128xbf16>, vector<8x128xf32> -> vector<8x128xf32>
    %473 = vector.broadcast %10 : vector<1x128xf32> to vector<8x128xf32>
    %474 = arith.addf %472, %473 : vector<8x128xf32>
    %c0_176 = arith.constant 0 : index
    %c0_177 = arith.constant 0 : index
    %475 = vector.load %arg14[%c0_176, %c0_177] : memref<8x32xf32, #tpu.memory_space<vmem>>, vector<8x32xf32>
    %c0_178 = arith.constant 0 : index
    %c0_179 = arith.constant 0 : index
    %476 = vector.load %arg16[%c0_178, %c0_179] : memref<8x32xf32, #tpu.memory_space<vmem>>, vector<8x32xf32>
    %477 = arith.truncf %475 : vector<8x32xf32> to vector<8x32xbf16>
    %cst_180 = arith.constant dense<0.000000e+00> : vector<8x128xf32>
    %478 = tpu.matmul %477, %8, %cst_180 {dimension_numbers = #tpu.dot_dimension_numbers<[1], [0], [0], [1], [0, 0, 1, 1], [], []>} : vector<8x32xbf16>, vector<32x128xbf16>, vector<8x128xf32> -> vector<8x128xf32>
    %479 = arith.addf %474, %478 : vector<8x128xf32>
    %480 = arith.negf %479 : vector<8x128xf32>
    %481 = math.exp %480 : vector<8x128xf32>
    %cst_181 = arith.constant 1.000000e+00 : f32
    %482 = vector.broadcast %cst_181 : f32 to vector<8x128xf32>
    %483 = arith.addf %482, %481 : vector<8x128xf32>
    %484 = arith.divf %482, %483 : vector<8x128xf32>
    %485 = math.tanh %479 : vector<8x128xf32>
    %486 = vector.extract_strided_slice %484 {offsets = [0, 0], sizes = [8, 32], strides = [1, 1]} : vector<8x128xf32> to vector<8x32xf32>
    %487 = vector.extract_strided_slice %484 {offsets = [0, 32], sizes = [8, 32], strides = [1, 1]} : vector<8x128xf32> to vector<8x32xf32>
    %488 = vector.extract_strided_slice %485 {offsets = [0, 64], sizes = [8, 32], strides = [1, 1]} : vector<8x128xf32> to vector<8x32xf32>
    %489 = vector.extract_strided_slice %484 {offsets = [0, 96], sizes = [8, 32], strides = [1, 1]} : vector<8x128xf32> to vector<8x32xf32>
    %490 = arith.mulf %487, %476 : vector<8x32xf32>
    %491 = arith.mulf %486, %488 : vector<8x32xf32>
    %492 = arith.addf %490, %491 : vector<8x32xf32>
    %493 = math.tanh %492 : vector<8x32xf32>
    %494 = arith.mulf %489, %493 : vector<8x32xf32>
    %495 = vector.shape_cast %79 : vector<8x1xi1> to vector<8x1xi1>
    %496 = vector.broadcast %495 : vector<8x1xi1> to vector<8x32xi1>
    %497 = arith.select %496, %494, %475 : vector<8x32xi1>, vector<8x32xf32>
    %498 = vector.shape_cast %79 : vector<8x1xi1> to vector<8x1xi1>
    %499 = vector.broadcast %498 : vector<8x1xi1> to vector<8x32xi1>
    %500 = arith.select %499, %492, %476 : vector<8x32xi1>, vector<8x32xf32>
    %c0_182 = arith.constant 0 : index
    %c0_183 = arith.constant 0 : index
    %501 = vector.load %arg14[%c0_182, %c0_183] : memref<8x32xf32, #tpu.memory_space<vmem>>, vector<8x32xf32>
    tpu.vector_store %arg14[%c0_182, %c0_183], %497 {strides = array<i32>} : memref<8x32xf32, #tpu.memory_space<vmem>>, vector<8x32xf32>,
    %c0_184 = arith.constant 0 : index
    %c0_185 = arith.constant 0 : index
    %502 = vector.load %arg16[%c0_184, %c0_185] : memref<8x32xf32, #tpu.memory_space<vmem>>, vector<8x32xf32>
    tpu.vector_store %arg16[%c0_184, %c0_185], %500 {strides = array<i32>} : memref<8x32xf32, #tpu.memory_space<vmem>>, vector<8x32xf32>,
    %c0_186 = arith.constant 0 : index
    %c0_187 = arith.constant 0 : index
    %503 = vector.load %arg13[%c0_186, %c0_187] : memref<8x32xf32, #tpu.memory_space<vmem>>, vector<8x32xf32>
    %c0_188 = arith.constant 0 : index
    %c0_189 = arith.constant 0 : index
    %504 = vector.load %arg15[%c0_188, %c0_189] : memref<8x32xf32, #tpu.memory_space<vmem>>, vector<8x32xf32>
    %505 = arith.truncf %503 : vector<8x32xf32> to vector<8x32xbf16>
    %cst_190 = arith.constant dense<0.000000e+00> : vector<8x128xf32>
    %506 = tpu.matmul %505, %7, %cst_190 {dimension_numbers = #tpu.dot_dimension_numbers<[1], [0], [0], [1], [0, 0, 1, 1], [], []>} : vector<8x32xbf16>, vector<32x128xbf16>, vector<8x128xf32> -> vector<8x128xf32>
    %507 = arith.addf %58, %506 : vector<8x128xf32>
    %508 = arith.negf %507 : vector<8x128xf32>
    %509 = math.exp %508 : vector<8x128xf32>
    %cst_191 = arith.constant 1.000000e+00 : f32
    %510 = vector.broadcast %cst_191 : f32 to vector<8x128xf32>
    %511 = arith.addf %510, %509 : vector<8x128xf32>
    %512 = arith.divf %510, %511 : vector<8x128xf32>
    %513 = math.tanh %507 : vector<8x128xf32>
    %514 = vector.extract_strided_slice %512 {offsets = [0, 0], sizes = [8, 32], strides = [1, 1]} : vector<8x128xf32> to vector<8x32xf32>
    %515 = vector.extract_strided_slice %512 {offsets = [0, 32], sizes = [8, 32], strides = [1, 1]} : vector<8x128xf32> to vector<8x32xf32>
    %516 = vector.extract_strided_slice %513 {offsets = [0, 64], sizes = [8, 32], strides = [1, 1]} : vector<8x128xf32> to vector<8x32xf32>
    %517 = vector.extract_strided_slice %512 {offsets = [0, 96], sizes = [8, 32], strides = [1, 1]} : vector<8x128xf32> to vector<8x32xf32>
    %518 = arith.mulf %515, %504 : vector<8x32xf32>
    %519 = arith.mulf %514, %516 : vector<8x32xf32>
    %520 = arith.addf %518, %519 : vector<8x32xf32>
    %521 = math.tanh %520 : vector<8x32xf32>
    %522 = arith.mulf %517, %521 : vector<8x32xf32>
    %523 = vector.shape_cast %82 : vector<8x1xi1> to vector<8x1xi1>
    %524 = vector.broadcast %523 : vector<8x1xi1> to vector<8x32xi1>
    %525 = arith.select %524, %522, %503 : vector<8x32xi1>, vector<8x32xf32>
    %526 = vector.shape_cast %82 : vector<8x1xi1> to vector<8x1xi1>
    %527 = vector.broadcast %526 : vector<8x1xi1> to vector<8x32xi1>
    %528 = arith.select %527, %520, %504 : vector<8x32xi1>, vector<8x32xf32>
    %c0_192 = arith.constant 0 : index
    %c0_193 = arith.constant 0 : index
    %529 = vector.load %arg13[%c0_192, %c0_193] : memref<8x32xf32, #tpu.memory_space<vmem>>, vector<8x32xf32>
    tpu.vector_store %arg13[%c0_192, %c0_193], %525 {strides = array<i32>} : memref<8x32xf32, #tpu.memory_space<vmem>>, vector<8x32xf32>,
    %c0_194 = arith.constant 0 : index
    %c0_195 = arith.constant 0 : index
    %530 = vector.load %arg15[%c0_194, %c0_195] : memref<8x32xf32, #tpu.memory_space<vmem>>, vector<8x32xf32>
    tpu.vector_store %arg15[%c0_194, %c0_195], %528 {strides = array<i32>} : memref<8x32xf32, #tpu.memory_space<vmem>>, vector<8x32xf32>,
    %531 = arith.truncf %525 : vector<8x32xf32> to vector<8x32xbf16>
    %cst_196 = arith.constant dense<0.000000e+00> : vector<8x128xf32>
    %532 = tpu.matmul %531, %6, %cst_196 {dimension_numbers = #tpu.dot_dimension_numbers<[1], [0], [0], [1], [0, 0, 1, 1], [], []>} : vector<8x32xbf16>, vector<32x128xbf16>, vector<8x128xf32> -> vector<8x128xf32>
    %533 = vector.broadcast %10 : vector<1x128xf32> to vector<8x128xf32>
    %534 = arith.addf %532, %533 : vector<8x128xf32>
    %c0_197 = arith.constant 0 : index
    %c0_198 = arith.constant 0 : index
    %535 = vector.load %arg14[%c0_197, %c0_198] : memref<8x32xf32, #tpu.memory_space<vmem>>, vector<8x32xf32>
    %c0_199 = arith.constant 0 : index
    %c0_200 = arith.constant 0 : index
    %536 = vector.load %arg16[%c0_199, %c0_200] : memref<8x32xf32, #tpu.memory_space<vmem>>, vector<8x32xf32>
    %537 = arith.truncf %535 : vector<8x32xf32> to vector<8x32xbf16>
    %cst_201 = arith.constant dense<0.000000e+00> : vector<8x128xf32>
    %538 = tpu.matmul %537, %8, %cst_201 {dimension_numbers = #tpu.dot_dimension_numbers<[1], [0], [0], [1], [0, 0, 1, 1], [], []>} : vector<8x32xbf16>, vector<32x128xbf16>, vector<8x128xf32> -> vector<8x128xf32>
    %539 = arith.addf %534, %538 : vector<8x128xf32>
    %540 = arith.negf %539 : vector<8x128xf32>
    %541 = math.exp %540 : vector<8x128xf32>
    %cst_202 = arith.constant 1.000000e+00 : f32
    %542 = vector.broadcast %cst_202 : f32 to vector<8x128xf32>
    %543 = arith.addf %542, %541 : vector<8x128xf32>
    %544 = arith.divf %542, %543 : vector<8x128xf32>
    %545 = math.tanh %539 : vector<8x128xf32>
    %546 = vector.extract_strided_slice %544 {offsets = [0, 0], sizes = [8, 32], strides = [1, 1]} : vector<8x128xf32> to vector<8x32xf32>
    %547 = vector.extract_strided_slice %544 {offsets = [0, 32], sizes = [8, 32], strides = [1, 1]} : vector<8x128xf32> to vector<8x32xf32>
    %548 = vector.extract_strided_slice %545 {offsets = [0, 64], sizes = [8, 32], strides = [1, 1]} : vector<8x128xf32> to vector<8x32xf32>
    %549 = vector.extract_strided_slice %544 {offsets = [0, 96], sizes = [8, 32], strides = [1, 1]} : vector<8x128xf32> to vector<8x32xf32>
    %550 = arith.mulf %547, %536 : vector<8x32xf32>
    %551 = arith.mulf %546, %548 : vector<8x32xf32>
    %552 = arith.addf %550, %551 : vector<8x32xf32>
    %553 = math.tanh %552 : vector<8x32xf32>
    %554 = arith.mulf %549, %553 : vector<8x32xf32>
    %555 = vector.shape_cast %82 : vector<8x1xi1> to vector<8x1xi1>
    %556 = vector.broadcast %555 : vector<8x1xi1> to vector<8x32xi1>
    %557 = arith.select %556, %554, %535 : vector<8x32xi1>, vector<8x32xf32>
    %558 = vector.shape_cast %82 : vector<8x1xi1> to vector<8x1xi1>
    %559 = vector.broadcast %558 : vector<8x1xi1> to vector<8x32xi1>
    %560 = arith.select %559, %552, %536 : vector<8x32xi1>, vector<8x32xf32>
    %c0_203 = arith.constant 0 : index
    %c0_204 = arith.constant 0 : index
    %561 = vector.load %arg14[%c0_203, %c0_204] : memref<8x32xf32, #tpu.memory_space<vmem>>, vector<8x32xf32>
    tpu.vector_store %arg14[%c0_203, %c0_204], %557 {strides = array<i32>} : memref<8x32xf32, #tpu.memory_space<vmem>>, vector<8x32xf32>,
    %c0_205 = arith.constant 0 : index
    %c0_206 = arith.constant 0 : index
    %562 = vector.load %arg16[%c0_205, %c0_206] : memref<8x32xf32, #tpu.memory_space<vmem>>, vector<8x32xf32>
    tpu.vector_store %arg16[%c0_205, %c0_206], %560 {strides = array<i32>} : memref<8x32xf32, #tpu.memory_space<vmem>>, vector<8x32xf32>,
    %c0_i32_207 = arith.constant 0 : i32
    %563 = arith.cmpi eq, %arg1, %c0_i32_207 : i32
    %564 = arith.extui %563 : i1 to i32
    %c0_i32_208 = arith.constant 0 : i32
    %565 = arith.cmpi ne, %564, %c0_i32_208 : i32
    scf.if %565 {
      %c0_209 = arith.constant 0 : index
      %c0_210 = arith.constant 0 : index
      %566 = vector.load %arg14[%c0_209, %c0_210] : memref<8x32xf32, #tpu.memory_space<vmem>>, vector<8x32xf32>
      %c0_211 = arith.constant 0 : index
      %c0_212 = arith.constant 0 : index
      %567 = vector.load %arg10[%c0_211, %c0_212] : memref<32x1xf32, #tpu.memory_space<vmem>>, vector<32x1xf32>
      %cst_213 = arith.constant dense<0.000000e+00> : vector<8x1xf32>
      %568 = tpu.matmul %566, %567, %cst_213 {dimension_numbers = #tpu.dot_dimension_numbers<[1], [0], [0], [1], [0, 0, 1, 1], [], []>} : vector<8x32xf32>, vector<32x1xf32>, vector<8x1xf32> -> vector<8x1xf32>
      %c0_214 = arith.constant 0 : index
      %c0_215 = arith.constant 0 : index
      %569 = vector.load %arg11[%c0_214, %c0_215] : memref<1x1xf32, #tpu.memory_space<vmem>>, vector<1x1xf32>
      %570 = vector.broadcast %569 : vector<1x1xf32> to vector<8x1xf32>
      %571 = arith.addf %568, %570 : vector<8x1xf32>
      %572 = arith.negf %571 : vector<8x1xf32>
      %573 = math.exp %572 : vector<8x1xf32>
      %cst_216 = arith.constant 1.000000e+00 : f32
      %574 = vector.broadcast %cst_216 : f32 to vector<8x1xf32>
      %575 = arith.addf %574, %573 : vector<8x1xf32>
      %576 = arith.divf %574, %575 : vector<8x1xf32>
      %c0_217 = arith.constant 0 : index
      %c0_218 = arith.constant 0 : index
      %577 = vector.load %arg12[%c0_217, %c0_218] : memref<8x1xf32, #tpu.memory_space<vmem>>, vector<8x1xf32>
      tpu.vector_store %arg12[%c0_217, %c0_218], %576 {strides = array<i32>} : memref<8x1xf32, #tpu.memory_space<vmem>>, vector<8x1xf32>,
    } else {
    }
    return
  }
  func.func @transform_0(%arg0: i32, %arg1: i32) -> (i32, i32, i32) {
    %c0_i32 = arith.constant 0 : i32
    %c0_i32_0 = arith.constant 0 : i32
    return %arg1, %arg0, %c0_i32 : i32, i32, i32
  }
  func.func @transform_1(%arg0: i32, %arg1: i32) -> (i32, i32) {
    %c0_i32 = arith.constant 0 : i32
    %c0_i32_0 = arith.constant 0 : i32
    return %arg0, %c0_i32 : i32, i32
  }
  func.func @transform_2(%arg0: i32, %arg1: i32) -> (i32, i32) {
    %c0_i32 = arith.constant 0 : i32
    %c0_i32_0 = arith.constant 0 : i32
    %c0_i32_1 = arith.constant 0 : i32
    return %c0_i32, %c0_i32_0 : i32, i32
  }
  func.func @transform_3(%arg0: i32, %arg1: i32) -> (i32, i32) {
    %c0_i32 = arith.constant 0 : i32
    %c0_i32_0 = arith.constant 0 : i32
    %c0_i32_1 = arith.constant 0 : i32
    return %c0_i32, %c0_i32_0 : i32, i32
  }
  func.func @transform_4(%arg0: i32, %arg1: i32) -> (i32, i32) {
    %c0_i32 = arith.constant 0 : i32
    %c0_i32_0 = arith.constant 0 : i32
    %c0_i32_1 = arith.constant 0 : i32
    return %c0_i32, %c0_i32_0 : i32, i32
  }
  func.func @transform_5(%arg0: i32, %arg1: i32) -> (i32, i32) {
    %c0_i32 = arith.constant 0 : i32
    %c0_i32_0 = arith.constant 0 : i32
    %c0_i32_1 = arith.constant 0 : i32
    return %c0_i32, %c0_i32_0 : i32, i32
  }
  func.func @transform_6(%arg0: i32, %arg1: i32) -> (i32, i32) {
    %c0_i32 = arith.constant 0 : i32
    %c0_i32_0 = arith.constant 0 : i32
    %c0_i32_1 = arith.constant 0 : i32
    return %c0_i32, %c0_i32_0 : i32, i32
  }
  func.func @transform_7(%arg0: i32, %arg1: i32) -> (i32, i32) {
    %c0_i32 = arith.constant 0 : i32
    %c0_i32_0 = arith.constant 0 : i32
    %c0_i32_1 = arith.constant 0 : i32
    return %c0_i32, %c0_i32_0 : i32, i32
  }
  func.func @transform_8(%arg0: i32, %arg1: i32) -> (i32, i32) {
    %c0_i32 = arith.constant 0 : i32
    %c0_i32_0 = arith.constant 0 : i32
    %c0_i32_1 = arith.constant 0 : i32
    return %c0_i32, %c0_i32_0 : i32, i32
  }
  func.func @transform_9(%arg0: i32, %arg1: i32) -> (i32, i32) {
    %c0_i32 = arith.constant 0 : i32
    %c0_i32_0 = arith.constant 0 : i32
    %c0_i32_1 = arith.constant 0 : i32
    return %c0_i32, %c0_i32_0 : i32, i32
  }
  func.func @transform_10(%arg0: i32, %arg1: i32) -> (i32, i32) {
    %c0_i32 = arith.constant 0 : i32
    %c0_i32_0 = arith.constant 0 : i32
    return %arg0, %c0_i32 : i32, i32
  }
}

</mosaic_0001>

<bundles_post_ra>
// kernel: rnn_model_forward.1
= control target key start
LH: loop header
LB: loop body
LE: loop exit
PB: predicated region body
PF: predicated region fallthrough
CT: control target
= control target key end

     0   :  { %vm42_vm0 = vcmask 261120   ;;  %v3058_v0 = vmov 0.0   ;;  %vm3059_vm1 = vmmov 0   ;;  %vm79_vm2 = vcmask 130048   ;;  %s3061_s28 = smov 64   ;;  %s3062_s29 = smov 32   ;;  %s3854_s2 = inlined_call_operand.vmem [shape: bf16[16,128], index: 2, kind: input, shape index: {}]   ;;  %s3855_s0 = inlined_call_operand.vmem [shape: f32[8,8,16], index: 0, kind: input, shape index: {}]   ;;  %s3856_s3 = inlined_call_operand.vmem [shape: bf16[32,128], index: 3, kind: input, shape index: {}]   ;;  %s3857_s4 = inlined_call_operand.vmem [shape: f32[1,128], index: 4, kind: input, shape index: {}]   ;;  %s3858_s1 = inlined_call_operand.vmem [shape: s32[8,1], index: 1, kind: input, shape index: {}]   ;;  %s3859_s6 = inlined_call_operand.vmem [shape: bf16[32,128], index: 6, kind: input, shape index: {}]   ;;  %s3860_s5 = inlined_call_operand.vmem [shape: bf16[32,128], index: 5, kind: input, shape index: {}]   ;;  %s3861_s7 = inlined_call_operand.vmem [shape: f32[1,128], index: 7, kind: input, shape index: {}]   ;;  %s3862_s8 = inlined_call_operand.vmem [shape: f32[32,1], index: 8, kind: input, shape index: {}]   ;;  %s3863_s9 = inlined_call_operand.<no memory space> [shape: f32[1,1], index: 9, kind: input, shape index: {}]   ;;  %s3864_s10 = inlined_call_operand.vmem [shape: f32[8,1], index: 10, kind: output, shape index: {}]  }
   0x1   :  { %2651 = vmatprep.subr.bf16.mxu0 %v3058_v0  ;;  %v3123_v1 = vld [vmem:[%s3854_s2] sm:$0xff]   ;;  %2653 = vmatprep.mubr.msk.bf16.mxu0 %vm3059_vm1, %v3058_v0  ;;  %43 = vst.msk [vmem:[#allocation2] sm:$0xff] %vm42_vm0, %v3058_v0  ;;  %44 = vst.msk [vmem:[#allocation4] sm:$0xff] %vm42_vm0, %v3058_v0  ;;  %v2488_v4 = vld [vmem:[%s3855_s0 + $0x10] sm:$0xff]  ;;  %v3060_v37 = vmov 0   ;;  %s3063_s12 = smov 96  }
   0x2   :  { %45 = vst.msk [vmem:[#allocation3] sm:$0xff] %vm42_vm0, %v3058_v0  ;;  %46 = vst.msk [vmem:[#allocation5] sm:$0xff] %vm42_vm0, %v3058_v0  ;;  %v65_v2 = vld [vmem:[%s3855_s0] sm:$0xff]  ;;  %2657 = vmatprep.subr.bf16.mxu1 %v3058_v0  ;;  %2659 = vmatprep.mubr.msk.bf16.mxu1 %vm3059_vm1, %v3058_v0  ;;  %v171_v5 = vpack.c.bf16 %v2488_v4, %v2488_v4  ;;  %v2496_v8 = vld [vmem:[%s3855_s0 + $0x30] sm:$0xff] }
   0x3   :  { %2652 = vmatpush3.bf16.msra.mxu0 %v3123_v1  ;;  %v66_v3 = vpack.c.bf16 %v65_v2, %v65_v2  ;;  %2658 = vmatpush3.bf16.msra.mxu1 %v3123_v1  ;;  %v2492_v6 = vld [vmem:[%s3855_s0 + $0x20] sm:$0xff]  ;;  %v355_v9 = vpack.c.bf16 %v2496_v8, %v2496_v8  ;;  %v3172_v10 = vld [vmem:[%s3856_s3 + $0x8] sm:$0xff]   ;;  %v2490_v55 = vld [vmem:[%s3855_s0 + $0x18] sm:$0xff] }
   0x4   :  { %2663 = vmatprep.subr.bf16.mxu0 %v3058_v0  ;;  %2669 = vmatprep.subr.bf16.mxu1 %v3058_v0  ;;  %v263_v7 = vpack.c.bf16 %v2492_v6, %v2492_v6  ;;  %v3179_v11 = vld [vmem:[%s3856_s3] sm:$0xff]   ;;  %v2486_v52 = vld [vmem:[%s3855_s0 + $0x8] sm:$0xff]  ;;  %v217_v59 = vpack.c.bf16 %v2490_v55, %v2490_v55 }
   0x5   :  { %v3198_v28 = vld [vmem:[%s3857_s4] ss:$0 sm:$0xff]  ;;  %2908 = vset.pattern.permute.xlu1 %v3060_v37  ;;  %2909 = vset.pattern.permute.xlu0 %v3060_v37  ;;  %v125_v53 = vpack.c.bf16 %v2486_v52, %v2486_v52  ;;  %v3224_v54 = vld [vmem:[%s3859_s6 + $0x8] sm:$0xff]  }
   0x6   :  { %2654 = vmatmul.mubr.msk.bf16.vlgmr.msra.gmra.mxu0 %vm79_vm2, %v66_v3  ;;  %v3208_v43 = vld [vmem:[%s3858_s1] sm:$0xff]  ;;  %v2494_v61 = vld [vmem:[%s3855_s0 + $0x28] sm:$0xff]  ;;  %v2498_v3 = vld [vmem:[%s3855_s0 + $0x38] sm:$0xff] }
   0x7   :  { %2664 = vmatpush3.bf16.msra.mxu0 %v3123_v1  ;;  %2665 = vmatprep.mubr.msk.bf16.mxu0 %vm3059_vm1, %v3058_v0  ;;  %vm2500_vm3 = vcmp.gt.s32.totalorder %v3208_v43, 0  ;;  %v3238_v57 = vld [vmem:[%s3859_s6] sm:$0xff]   ;;  %v3258_v62 = vld [vmem:[%s3860_s5 + $0x8] sm:$0xff]   ;;  %v309_v63 = vpack.c.bf16 %v2494_v61, %v2494_v61  ;;  %v401_v4 = vpack.c.bf16 %v2498_v3, %v2498_v3  ;;  %vm2501_vm5 = vcmp.gt.s32.totalorder %v3208_v43, 1 }
   0x8   :  { %2675 = vmatprep.subr.bf16.mxu0 %v3058_v0  ;;  %v468_v12 = vld [vmem:[#allocation2] sm:$0xff]  ;;  %v469_v39 = vld [vmem:[#allocation4] sm:$0xff]  ;;  %v556_v47 = vsel %vm2500_vm3, 1, %v3060_v37  ;;  %2660 = vmatmul.mubr.msk.bf16.vlgmr.msra.gmra.mxu1 %vm79_vm2, %v125_v53  ;;  %vm2502_vm7 = vcmp.gt.s32.totalorder %v3208_v43, 2  ;;  %vm2503_vm9 = vcmp.gt.s32.totalorder %v3208_v43, 3  ;;  %vm2504_vm11 = vcmp.gt.s32.totalorder %v3208_v43, 4 }
   0x9   :  { %v470_v13 = vpack.c.bf16 %v468_v12, %v468_v12  ;;  %2670 = vmatpush3.bf16.msra.mxu1 %v3123_v1  ;;  %2671 = vmatprep.mubr.msk.bf16.mxu1 %vm3059_vm1, %v3058_v0  ;;  %v3242_v58 = vld [vmem:[#allocation3] sm:$0xff]  ;;  %v3269_v2 = vld [vmem:[%s3860_s5] sm:$0xff]   ;;  %v643_v61 = vld [vmem:[#allocation5] sm:$0xff] }
   0xa   :  { %2681 = vmatprep.subr.bf16.mxu1 %v3058_v0  ;;  %v644_v60 = vpack.c.bf16 %v3242_v58, %v3242_v58 }
   0xe   :  { %2666 = vmatmul.mubr.msk.bf16.vlgmr.msra.gmra.mxu0 %vm79_vm2, %v171_v5 }
   0xf   :  { %2676 = vmatpush3.bf16.msra.mxu0 %v3123_v1  ;;  %2677 = vmatprep.mubr.msk.bf16.mxu0 %vm3059_vm1, %v3058_v0 }
  0x10   :  { %2687 = vmatprep.subr.bf16.mxu0 %v3058_v0  ;;  %2672 = vmatmul.mubr.msk.bf16.vlgmr.msra.gmra.mxu1 %vm79_vm2, %v217_v59 }
  0x11   :  { %2682 = vmatpush3.bf16.msra.mxu1 %v3123_v1  ;;  %2683 = vmatprep.mubr.msk.bf16.mxu1 %vm3059_vm1, %v3058_v0 }
  0x12   :  { %2693 = vmatprep.subr.bf16.mxu1 %v3058_v0 }
  0x16   :  { %2678 = vmatmul.mubr.msk.bf16.vlgmr.msra.gmra.mxu0 %vm79_vm2, %v263_v7 }
  0x17   :  { %2688 = vmatpush3.bf16.msra.mxu0 %v3123_v1  ;;  %2689 = vmatprep.mubr.msk.bf16.mxu0 %vm3059_vm1, %v3058_v0 }
  0x18   :  { %2699 = vmatprep.subr.bf16.mxu0 %v3058_v0  ;;  %2684 = vmatmul.mubr.msk.bf16.vlgmr.msra.gmra.mxu1 %vm79_vm2, %v309_v63 }
  0x19   :  { %2694 = vmatpush3.bf16.msra.mxu1 %v3123_v1  ;;  %2695 = vmatprep.mubr.msk.bf16.mxu1 %vm3059_vm1, %v3058_v0 }
  0x1a   :  { %2707 = vmatprep.subr.bf16.mxu1 %v3058_v0 }
  0x1e   :  { %2690 = vmatmul.mubr.msk.bf16.vlgmr.msra.gmra.mxu0 %vm79_vm2, %v355_v9 }
  0x1f   :  { %2700 = vmatpush3.bf16.msra.mxu0 %v3172_v10  ;;  %2703 = vmatprep.mubr.msk.bf16.mxu0 %vm3059_vm1, %v3058_v0 }
  0x20   :  { %2701 = vmatprep.subr.bf16.mxu0 %v3058_v0  ;;  %2696 = vmatmul.mubr.msk.bf16.vlgmr.msra.gmra.mxu1 %vm79_vm2, %v401_v4 }
  0x21   :  { %2708 = vmatpush3.bf16.msra.mxu1 %v3258_v62  ;;  %2711 = vmatprep.mubr.msk.bf16.mxu1 %vm3059_vm1, %v3058_v0 }
  0x22   :  { %2709 = vmatprep.subr.bf16.mxu1 %v3058_v0 }
  0x23   :  { %2702 = vmatpush3.bf16.msra.mxu0 %v3179_v11 }
  0x24   :  { %2715 = vmatprep.subr.bf16.mxu0 %v3058_v0 }
  0x25   :  { %2710 = vmatpush3.bf16.msra.mxu1 %v3269_v2 }
  0x26   :  { %2704 = vmatmul.mubr.msk.bf16.vlgmr.msra.gmra.mxu0 %vm42_vm0, %v470_v13  ;;  %2723 = vmatprep.subr.bf16.mxu1 %v3058_v0 }
  0x27   :  { %2719 = vmatprep.mubr.msk.bf16.mxu0 %vm3059_vm1, %v3058_v0  ;;  %2716 = vmatpush3.bf16.msra.mxu0 %v3224_v54 }
  0x28   :  { %2717 = vmatprep.subr.bf16.mxu0 %v3058_v0 }
  0x2b   :  { %2718 = vmatpush3.bf16.msra.mxu0 %v3238_v57 }
  0x2c   :  { %2731 = vmatprep.subr.bf16.mxu0 %v3058_v0 }
  0x2e   :  { %2720 = vmatmul.mubr.msk.bf16.vlgmr.msra.gmra.mxu0 %vm42_vm0, %v644_v60 }
  0x2f   :  { %2732 = vmatpush3.bf16.msra.mxu0 %v3258_v62  ;;  %2735 = vmatprep.mubr.msk.bf16.mxu0 %vm3059_vm1, %v3058_v0 }
  0x30   :  { %2733 = vmatprep.subr.bf16.mxu0 %v3058_v0 }
  0x33   :  { %2734 = vmatpush3.bf16.msra.mxu0 %v3269_v2 }
  0x34   :  { %2747 = vmatprep.subr.bf16.mxu0 %v3058_v0 }
  0xc6   :  { %v117_v14 = vpop.f32.mrf.mxu0 }
  0xc7   :  { %v118_v31 = vadd.f32 %v3198_v28, %v117_v14 }
  0xc8   :  { %v2655_v15 = vpop.f32.mrf.mxu0  ;;  %v163_v13 = vpop.f32.mrf.mxu1 }
  0xca   :  { %v120_v16 = vpop.f32.mrf.mxu0  ;;  %v2661_v14 = vpop.f32.mrf.mxu1 }
  0xcc   :  { %v2656_v17 = vpop.f32.mrf.mxu0  ;;  %v166_v15 = vpop.f32.mrf.mxu1 }
  0xce   :  { %v3189_v18 = vpop.f32.mrf.mxu0  ;;  %v2662_v16 = vpop.f32.mrf.mxu1 }
  0xd0   :  { %v2667_v19 = vpop.f32.mrf.mxu0  ;;  %v3299_v17 = vpop.f32.mrf.mxu1 }
  0xd2   :  { %v212_v20 = vpop.f32.mrf.mxu0  ;;  %v2673_v19 = vpop.f32.mrf.mxu1 }
  0xd4   :  { %v2668_v21 = vpop.f32.mrf.mxu0 }
  0xd5   :  { %v258_v21 = vpop.f32.mrf.mxu1 }
  0xd6   :  { %v3191_v22 = vpop.f32.mrf.mxu0 }
  0xd8   :  { %v2679_v23 = vpop.f32.mrf.mxu0 }
  0xda   :  { %v304_v24 = vpop.f32.mrf.mxu0 }
  0xdb   :  { %v2674_v24 = vpop.f32.mrf.mxu1 }
  0xdc   :  { %v2680_v25 = vpop.f32.mrf.mxu0 }
  0xde   :  { %v3193_v26 = vpop.f32.mrf.mxu0 }
  0xe0   :  { %v2691_v27 = vpop.f32.mrf.mxu0 }
  0xe1   :  { %v3301_v27 = vpop.f32.mrf.mxu1 }
  0xe2   :  { %v396_v29 = vpop.f32.mrf.mxu0 }
  0xe4   :  { %v2692_v30 = vpop.f32.mrf.mxu0 }
  0xe5   :  { %v2685_v30 = vpop.f32.mrf.mxu1 }
  0xe6   :  { %v521_v32 = vpop.f32.mrf.mxu0 }
  0xe7   :  { %v527_v33 = vadd.f32 %v521_v32, %v118_v31  ;;  %v350_v31 = vpop.f32.mrf.mxu1 }
  0xe8   :  { %v2705_v34 = vpop.f32.mrf.mxu0 }
  0xe9   :  { %2917 = vtanh.f32 %v527_v33  ;;  %v2511_v40 = vmul.f32 -1.442695, %v527_v33  ;;  %v2686_v32 = vpop.f32.mrf.mxu1 }
  0xea   :  { %v524_v35 = vpop.f32.mrf.mxu0 }
  0xeb   :  { %2919 = vpow2.f32 %v2511_v40  ;;  %v3303_v33 = vpop.f32.mrf.mxu1 }
  0xec   :  { %v2706_v36 = vpop.f32.mrf.mxu0 }
  0xed   :  { %v2697_v34 = vpop.f32.mrf.mxu1 }
  0xee   :  { %v694_v20 = vpop.f32.mrf.mxu0  ;;  %v820_v34 = vsel %vm2501_vm5, 1, %v3060_v37 }
  0xef   :  { %v442_v35 = vpop.f32.mrf.mxu1 }
  0xf0   :  { %v2721_v23 = vpop.f32.mrf.mxu0 }
  0xf1   :  { %v2698_v36 = vpop.f32.mrf.mxu1 }
  0xf2   :  { %v697_v25 = vpop.f32.mrf.mxu0 }
  0xf4   :  { %v2722_v29 = vpop.f32.mrf.mxu0 }
  0xf6   :  { %v2918_v38 = vpop.eup %2917 }
  0xf7   :  { %541 = vrot.lane.b32.xlu0 %v2918_v38, %s3061_s28 }
  0xf8   :  { %v2920_v41 = vpop.eup %2919 }
  0xf9   :  { %v531_v42 = vadd.f32 1.0, %v2920_v41 }
  0xfb   :  { %536 = vrot.lane.b32.xlu0 %v469_v39, %s3062_s29  ;;  %2921 = vrcp.f32 %v531_v42 }
 0x108   :  { %v3210_v44 = vpop.eup %2921 }
 0x169   :  { %v542_v45 = vpop.permute.xlu0 %541 }
 0x16a   :  { %v544_v46 = vmul.f32 %v3210_v44, %v542_v45 }
 0x16c   :  { %546 = vrot.lane.b32.xlu1 %v544_v46, %s3062_s29 }
 0x16d   :  { %v537_v48 = vpop.permute.xlu0 %536 }
 0x16e   :  { %v539_v49 = vmul.f32 %v3210_v44, %v537_v48 }
 0x170   :  { %558 = vperm.xlu1 %2908, %v556_v47  }
 0x174   :  { %562 = vrot.lane.b32.xlu1 %v468_v12, %s3063_s12 }
 0x1de   :  { %v547_v50 = vpop.permute.xlu1 %546 }
 0x1df   :  { %v549_v51 = vadd.f32 %v547_v50, %v539_v49 }
 0x1e1   :  { %2923 = vtanh.f32 %v549_v51 }
 0x1eb   :  { %v3288_v1 = vpop.permute.xlu1 %558 }
 0x1ec   :  { %vm560_vm4 = vcmp.eq.s32.totalorder %v3288_v1, 1 }
 0x1ed   :  { %v566_v12 = vsel %vm560_vm4, %v549_v51, %v537_v48  ;;  %v164_v51 = vadd.f32 %v3198_v28, %v163_v13 }
 0x1ee   :  { %v2924_v56 = vpop.eup %2923 }
 0x1ef   :  { %552 = vrot.lane.b32.xlu0 %v2924_v56, %s3061_s28  ;;  %v563_v6 = vpop.permute.xlu1 %562 }
 0x261   :  { %v553_v5 = vpop.permute.xlu0 %552 }
 0x262   :  { %v555_v7 = vmul.f32 %v3210_v44, %v553_v5  ;;  %v3328_v44 = vld [vmem:[%s3861_s7] ss:$0 sm:$0xff] }
 0x264   :  { %v565_v8 = vsel %vm560_vm4, %v555_v7, %v563_v6 }
 0x265   :  { %568 = vrot.lane.b32.xlu0 %v565_v8, %s3062_s29  ;;  %v577_v9 = vpack.c.bf16 %v565_v8, %v565_v8 }
 0x267   :  { %585 = vrot.lane.b32.xlu1 %v577_v9, %s3062_s29 }
 0x269   :  { %573 = vrot.lane.b32.xlu0 %v566_v12, %s3063_s12 }
 0x2d7   :  { %v569_v38 = vpop.permute.xlu0 %568 }
 0x2d8   :  { %571 = vst.msk [vmem:[#allocation2] sm:$0xff] %vm42_vm0, %v569_v38 }
 0x2d9   :  { %v586_v39 = vpop.permute.xlu1 %585 }
 0x2da   :  { %2712 = vmatmul.mubr.msk.bf16.vlgmr.msra.gmra.mxu1 %vm42_vm0, %v586_v39 }
 0x2db   :  { %v574_v40 = vpop.permute.xlu0 %573  ;;  %2724 = vmatpush3.bf16.msra.mxu1 %v3172_v10  ;;  %2727 = vmatprep.mubr.msk.bf16.mxu1 %vm3059_vm1, %v3058_v0 }
 0x2dc   :  { %576 = vst.msk [vmem:[#allocation4] sm:$0xff] %vm42_vm0, %v574_v40  ;;  %2725 = vmatprep.subr.bf16.mxu1 %v3058_v0 }
 0x2df   :  { %2726 = vmatpush3.bf16.msra.mxu1 %v3179_v11  ;;  %v3313_v41 = vld [vmem:[#allocation2] sm:$0xff] }
 0x2e0   :  { %v747_v42 = vpack.c.bf16 %v3313_v41, %v3313_v41  ;;  %2739 = vmatprep.subr.bf16.mxu1 %v3058_v0 }
 0x2e2   :  { %2728 = vmatmul.mubr.msk.bf16.vlgmr.msra.gmra.mxu1 %vm42_vm0, %v747_v42 }
 0x2e3   :  { %2740 = vmatpush3.bf16.msra.mxu1 %v3224_v54  ;;  %2743 = vmatprep.mubr.msk.bf16.mxu1 %vm3059_vm1, %v3058_v0  ;;  %v746_v3 = vld [vmem:[#allocation4] sm:$0xff] }
 0x2e4   :  { %2741 = vmatprep.subr.bf16.mxu1 %v3058_v0 }
 0x2e7   :  { %2742 = vmatpush3.bf16.msra.mxu1 %v3238_v57 }
 0x2e8   :  { %2755 = vmatprep.subr.bf16.mxu1 %v3058_v0 }
 0x39a   :  { %v636_v45 = vpop.f32.mrf.mxu1 }
 0x39b   :  { %v637_v46 = vadd.f32 %v3328_v44, %v636_v45 }
 0x39c   :  { %v2713_v47 = vpop.f32.mrf.mxu1 }
 0x39d   :  { %v700_v48 = vadd.f32 %v694_v20, %v637_v46 }
 0x39e   :  { %v639_v49 = vpop.f32.mrf.mxu1 }
 0x39f   :  { %2925 = vtanh.f32 %v700_v48  ;;  %v2519_v4 = vmul.f32 -1.442695, %v700_v48 }
 0x3a0   :  { %v2714_v50 = vpop.f32.mrf.mxu1 }
 0x3a2   :  { %v785_v52 = vpop.f32.mrf.mxu1 }
 0x3a3   :  { %v791_v53 = vadd.f32 %v785_v52, %v164_v51 }
 0x3a4   :  { %v2729_v55 = vpop.f32.mrf.mxu1 }
 0x3a5   :  { %2927 = vtanh.f32 %v791_v53  ;;  %v2521_v5 = vmul.f32 -1.442695, %v791_v53 }
 0x3a6   :  { %v788_v56 = vpop.f32.mrf.mxu1  ;;  %2929 = vpow2.f32 %v2519_v4 }
 0x3a7   :  { %2931 = vpow2.f32 %v2521_v5 }
 0x3a8   :  { %v2730_v59 = vpop.f32.mrf.mxu1 }
 0x3ac   :  { %v2926_v60 = vpop.eup %2925 }
 0x3ad   :  { %714 = vrot.lane.b32.xlu1 %v2926_v60, %s3061_s28 }
 0x3b1   :  { %709 = vrot.lane.b32.xlu1 %v643_v61, %s3062_s29 }
 0x3b2   :  { %v2928_v63 = vpop.eup %2927 }
 0x3b3   :  { %805 = vrot.lane.b32.xlu0 %v2928_v63, %s3061_s28  ;;  %v2930_v6 = vpop.eup %2929 }
 0x3b4   :  { %v704_v7 = vadd.f32 1.0, %v2930_v6  ;;  %v2932_v8 = vpop.eup %2931 }
 0x3b5   :  { %800 = vrot.lane.b32.xlu1 %v746_v3, %s3062_s29  ;;  %v795_v9 = vadd.f32 1.0, %v2932_v8 }
 0x3b6   :  { %2933 = vrcp.f32 %v704_v7 }
 0x3b7   :  { %2935 = vrcp.f32 %v795_v9 }
 0x3c3   :  { %v2934_v12 = vpop.eup %2933 }
 0x3c4   :  { %v2936_v15 = vpop.eup %2935 }
 0x41f   :  { %v715_v13 = vpop.permute.xlu1 %714 }
 0x420   :  { %v717_v14 = vmul.f32 %v2934_v12, %v715_v13  ;;  %v210_v13 = vadd.f32 %v3198_v28, %v3189_v18 }
 0x422   :  { %719 = vrot.lane.b32.xlu0 %v717_v14, %s3062_s29 }
 0x423   :  { %v710_v20 = vpop.permute.xlu1 %709 }
 0x424   :  { %v712_v21 = vmul.f32 %v2934_v12, %v710_v20 }
 0x425   :  { %v806_v16 = vpop.permute.xlu0 %805 }
 0x426   :  { %v808_v19 = vmul.f32 %v2936_v15, %v806_v16 }
 0x427   :  { %v801_v25 = vpop.permute.xlu1 %800 }
 0x428   :  { %810 = vrot.lane.b32.xlu0 %v808_v19, %s3062_s29  ;;  %v803_v29 = vmul.f32 %v2936_v15, %v801_v25 }
 0x42c   :  { %730 = vrot.lane.b32.xlu0 %v3242_v58, %s3063_s12 }
 0x494   :  { %v720_v23 = vpop.permute.xlu0 %719 }
 0x495   :  { %v722_v24 = vadd.f32 %v720_v23, %v712_v21 }
 0x497   :  { %2937 = vtanh.f32 %v722_v24  ;;  %v734_v48 = vsel %vm560_vm4, %v722_v24, %v710_v20 }
 0x49a   :  { %v811_v30 = vpop.permute.xlu0 %810 }
 0x49b   :  { %v813_v31 = vadd.f32 %v811_v30, %v803_v29 }
 0x49d   :  { %2939 = vtanh.f32 %v813_v31 }
 0x49e   :  { %v731_v36 = vpop.permute.xlu0 %730 }
 0x4a4   :  { %v2938_v32 = vpop.eup %2937 }
 0x4a5   :  { %725 = vrot.lane.b32.xlu1 %v2938_v32, %s3061_s28 }
 0x4a9   :  { %822 = vperm.xlu1 %2908, %v820_v34  }
 0x4aa   :  { %v2940_v35 = vpop.eup %2939 }
 0x4ab   :  { %816 = vrot.lane.b32.xlu0 %v2940_v35, %s3061_s28 }
 0x4ad   :  { %826 = vrot.lane.b32.xlu1 %v3313_v41, %s3063_s12 }
 0x517   :  { %v726_v58 = vpop.permute.xlu1 %725 }
 0x518   :  { %v728_v38 = vmul.f32 %v2934_v12, %v726_v58 }
 0x51a   :  { %v733_v39 = vsel %vm560_vm4, %v728_v38, %v731_v36 }
 0x51b   :  { %736 = vrot.lane.b32.xlu0 %v733_v39, %s3062_s29 }
 0x51d   :  { %v817_v40 = vpop.permute.xlu0 %816 }
 0x51e   :  { %v819_v45 = vmul.f32 %v2936_v15, %v817_v40 }
 0x524   :  { %v3349_v42 = vpop.permute.xlu1 %822 }
 0x525   :  { %vm824_vm6 = vcmp.eq.s32.totalorder %v3349_v42, 1 }
 0x526   :  { %v830_v49 = vsel %vm824_vm6, %v813_v31, %v801_v25 }
 0x528   :  { %v827_v46 = vpop.permute.xlu1 %826 }
 0x529   :  { %v829_v47 = vsel %vm824_vm6, %v819_v45, %v827_v46 }
 0x52a   :  { %832 = vrot.lane.b32.xlu1 %v829_v47, %s3062_s29  ;;  %v841_v41 = vpack.c.bf16 %v829_v47, %v829_v47 }
 0x52c   :  { %843 = vrot.lane.b32.xlu0 %v841_v41, %s3062_s29 }
 0x52e   :  { %741 = vrot.lane.b32.xlu1 %v734_v48, %s3063_s12 }
 0x530   :  { %837 = vrot.lane.b32.xlu0 %v830_v49, %s3063_s12 }
 0x58d   :  { %v737_v50 = vpop.permute.xlu0 %736 }
 0x58e   :  { %739 = vst.msk [vmem:[#allocation3] sm:$0xff] %vm42_vm0, %v737_v50 }
 0x595   :  { %v3363_v51 = vld [vmem:[#allocation3] sm:$0xff] }
 0x596   :  { %v890_v52 = vpack.c.bf16 %v3363_v51, %v3363_v51 }
 0x598   :  { %2744 = vmatmul.mubr.msk.bf16.vlgmr.msra.gmra.mxu1 %vm42_vm0, %v890_v52 }
 0x599   :  { %2756 = vmatpush3.bf16.msra.mxu1 %v3258_v62  ;;  %2759 = vmatprep.mubr.msk.bf16.mxu1 %vm3059_vm1, %v3058_v0 }
 0x59a   :  { %2757 = vmatprep.subr.bf16.mxu1 %v3058_v0 }
 0x59c   :  { %v833_v1 = vpop.permute.xlu1 %832 }
 0x59d   :  { %835 = vst.msk [vmem:[#allocation2] sm:$0xff] %vm42_vm0, %v833_v1  ;;  %2758 = vmatpush3.bf16.msra.mxu1 %v3269_v2 }
 0x59e   :  { %v844_v53 = vpop.permute.xlu0 %843  ;;  %2771 = vmatprep.subr.bf16.mxu1 %v3058_v0 }
 0x59f   :  { %2736 = vmatmul.mubr.msk.bf16.vlgmr.msra.gmra.mxu0 %vm42_vm0, %v844_v53  ;;  %v1054_v53 = vsel %vm2502_vm7, 1, %v3060_v37 }
 0x5a0   :  { %v742_v55 = vpop.permute.xlu1 %741  ;;  %2748 = vmatpush3.bf16.msra.mxu0 %v3172_v10  ;;  %2751 = vmatprep.mubr.msk.bf16.mxu0 %vm3059_vm1, %v3058_v0 }
 0x5a1   :  { %744 = vst.msk [vmem:[#allocation5] sm:$0xff] %vm42_vm0, %v742_v55  ;;  %2749 = vmatprep.subr.bf16.mxu0 %v3058_v0 }
 0x5a2   :  { %v838_v56 = vpop.permute.xlu0 %837 }
 0x5a3   :  { %840 = vst.msk [vmem:[#allocation4] sm:$0xff] %vm42_vm0, %v838_v56 }
 0x5a4   :  { %2750 = vmatpush3.bf16.msra.mxu0 %v3179_v11  ;;  %v3383_v59 = vld [vmem:[#allocation2] sm:$0xff] }
 0x5a5   :  { %v981_v60 = vpack.c.bf16 %v3383_v59, %v3383_v59  ;;  %2763 = vmatprep.subr.bf16.mxu0 %v3058_v0 }
 0x5a7   :  { %2752 = vmatmul.mubr.msk.bf16.vlgmr.msra.gmra.mxu0 %vm42_vm0, %v981_v60 }
 0x5a8   :  { %2764 = vmatpush3.bf16.msra.mxu0 %v3224_v54  ;;  %2767 = vmatprep.mubr.msk.bf16.mxu0 %vm3059_vm1, %v3058_v0  ;;  %v889_v23 = vld [vmem:[#allocation5] sm:$0xff] }
 0x5a9   :  { %2765 = vmatprep.subr.bf16.mxu0 %v3058_v0 }
 0x5aa   :  { %v980_v25 = vld [vmem:[#allocation4] sm:$0xff] }
 0x5ac   :  { %2766 = vmatpush3.bf16.msra.mxu0 %v3238_v57 }
 0x5ad   :  { %2779 = vmatprep.subr.bf16.mxu0 %v3058_v0 }
 0x658   :  { %v928_v61 = vpop.f32.mrf.mxu1 }
 0x65a   :  { %v2745_v63 = vpop.f32.mrf.mxu1 }
 0x65c   :  { %v931_v3 = vpop.f32.mrf.mxu1 }
 0x65e   :  { %v2746_v4 = vpop.f32.mrf.mxu1 }
 0x65f   :  { %v882_v5 = vpop.f32.mrf.mxu0 }
 0x660   :  { %v883_v6 = vadd.f32 %v3328_v44, %v882_v5 }
 0x661   :  { %v2737_v7 = vpop.f32.mrf.mxu0 }
 0x662   :  { %v934_v8 = vadd.f32 %v928_v61, %v883_v6 }
 0x663   :  { %v885_v9 = vpop.f32.mrf.mxu0 }
 0x664   :  { %2941 = vtanh.f32 %v934_v8  ;;  %v2524_v29 = vmul.f32 -1.442695, %v934_v8 }
 0x665   :  { %v2738_v12 = vpop.f32.mrf.mxu0 }
 0x667   :  { %v1019_v14 = vpop.f32.mrf.mxu0 }
 0x668   :  { %v1025_v15 = vadd.f32 %v1019_v14, %v210_v13 }
 0x669   :  { %v2753_v16 = vpop.f32.mrf.mxu0 }
 0x66a   :  { %2943 = vtanh.f32 %v1025_v15  ;;  %v2526_v18 = vmul.f32 -1.442695, %v1025_v15 }
 0x66b   :  { %v1022_v19 = vpop.f32.mrf.mxu0  ;;  %2945 = vpow2.f32 %v2524_v29 }
 0x66c   :  { %2947 = vpow2.f32 %v2526_v18 }
 0x66d   :  { %v2754_v20 = vpop.f32.mrf.mxu0 }
 0x671   :  { %v2942_v21 = vpop.eup %2941 }
 0x672   :  { %948 = vrot.lane.b32.xlu1 %v2942_v21, %s3061_s28 }
 0x676   :  { %943 = vrot.lane.b32.xlu1 %v889_v23, %s3062_s29 }
 0x677   :  { %v2944_v24 = vpop.eup %2943 }
 0x678   :  { %1039 = vrot.lane.b32.xlu0 %v2944_v24, %s3061_s28  ;;  %v2946_v30 = vpop.eup %2945 }
 0x679   :  { %v938_v31 = vadd.f32 1.0, %v2946_v30  ;;  %v2948_v32 = vpop.eup %2947 }
 0x67a   :  { %1034 = vrot.lane.b32.xlu1 %v980_v25, %s3062_s29  ;;  %v1029_v34 = vadd.f32 1.0, %v2948_v32 }
 0x67b   :  { %2949 = vrcp.f32 %v938_v31 }
 0x67c   :  { %2951 = vrcp.f32 %v1029_v34 }
 0x688   :  { %v2950_v35 = vpop.eup %2949 }
 0x689   :  { %v2952_v38 = vpop.eup %2951 }
 0x6e4   :  { %v949_v58 = vpop.permute.xlu1 %948 }
 0x6e5   :  { %v951_v36 = vmul.f32 %v2950_v35, %v949_v58 }
 0x6e7   :  { %953 = vrot.lane.b32.xlu0 %v951_v36, %s3062_s29 }
 0x6e8   :  { %v944_v45 = vpop.permute.xlu1 %943 }
 0x6e9   :  { %v946_v46 = vmul.f32 %v2950_v35, %v944_v45 }
 0x6ea   :  { %v1040_v39 = vpop.permute.xlu0 %1039 }
 0x6eb   :  { %v1042_v40 = vmul.f32 %v2952_v38, %v1040_v39 }
 0x6ec   :  { %v1035_v48 = vpop.permute.xlu1 %1034 }
 0x6ed   :  { %1044 = vrot.lane.b32.xlu0 %v1042_v40, %s3062_s29  ;;  %v1037_v49 = vmul.f32 %v2952_v38, %v1035_v48 }
 0x6f1   :  { %964 = vrot.lane.b32.xlu0 %v3363_v51, %s3063_s12 }
 0x759   :  { %v954_v47 = vpop.permute.xlu0 %953 }
 0x75a   :  { %v956_v41 = vadd.f32 %v954_v47, %v946_v46 }
 0x75c   :  { %2953 = vtanh.f32 %v956_v41  ;;  %v968_v7 = vsel %vm824_vm6, %v956_v41, %v944_v45 }
 0x75f   :  { %v1045_v50 = vpop.permute.xlu0 %1044 }
 0x760   :  { %v1047_v52 = vadd.f32 %v1045_v50, %v1037_v49 }
 0x762   :  { %2955 = vtanh.f32 %v1047_v52 }
 0x763   :  { %v965_v60 = vpop.permute.xlu0 %964 }
 0x769   :  { %v2954_v1 = vpop.eup %2953 }
 0x76a   :  { %959 = vrot.lane.b32.xlu1 %v2954_v1, %s3061_s28 }
 0x76e   :  { %1056 = vperm.xlu1 %2908, %v1054_v53  }
 0x76f   :  { %v2956_v55 = vpop.eup %2955 }
 0x770   :  { %1050 = vrot.lane.b32.xlu0 %v2956_v55, %s3061_s28 }
 0x772   :  { %1060 = vrot.lane.b32.xlu1 %v3383_v59, %s3063_s12 }
 0x7dc   :  { %v960_v51 = vpop.permute.xlu1 %959 }
 0x7dd   :  { %v962_v56 = vmul.f32 %v2950_v35, %v960_v51  ;;  %v256_v35 = vadd.f32 %v3198_v28, %v3299_v17 }
 0x7df   :  { %v967_v61 = vsel %vm824_vm6, %v962_v56, %v965_v60 }
 0x7e0   :  { %970 = vrot.lane.b32.xlu0 %v967_v61, %s3062_s29 }
 0x7e2   :  { %v1051_v63 = vpop.permute.xlu0 %1050 }
 0x7e3   :  { %v1053_v4 = vmul.f32 %v2952_v38, %v1051_v63 }
 0x7e9   :  { %v3415_v3 = vpop.permute.xlu1 %1056 }
 0x7ea   :  { %vm1058_vm8 = vcmp.eq.s32.totalorder %v3415_v3, 1 }
 0x7eb   :  { %v1064_v8 = vsel %vm1058_vm8, %v1047_v52, %v1035_v48 }
 0x7ed   :  { %v1061_v5 = vpop.permute.xlu1 %1060 }
 0x7ee   :  { %v1063_v6 = vsel %vm1058_vm8, %v1053_v4, %v1061_v5 }
 0x7ef   :  { %1066 = vrot.lane.b32.xlu1 %v1063_v6, %s3062_s29  ;;  %v1075_v59 = vpack.c.bf16 %v1063_v6, %v1063_v6 }
 0x7f1   :  { %1077 = vrot.lane.b32.xlu0 %v1075_v59, %s3062_s29 }
 0x7f3   :  { %975 = vrot.lane.b32.xlu1 %v968_v7, %s3063_s12 }
 0x7f5   :  { %1071 = vrot.lane.b32.xlu0 %v1064_v8, %s3063_s12 }
 0x852   :  { %v971_v9 = vpop.permute.xlu0 %970 }
 0x853   :  { %973 = vst.msk [vmem:[#allocation3] sm:$0xff] %vm42_vm0, %v971_v9 }
 0x85a   :  { %v3429_v12 = vld [vmem:[#allocation3] sm:$0xff] }
 0x85b   :  { %v1124_v13 = vpack.c.bf16 %v3429_v12, %v3429_v12 }
 0x85d   :  { %2768 = vmatmul.mubr.msk.bf16.vlgmr.msra.gmra.mxu0 %vm42_vm0, %v1124_v13 }
 0x85e   :  { %2780 = vmatpush3.bf16.msra.mxu0 %v3258_v62  ;;  %2783 = vmatprep.mubr.msk.bf16.mxu0 %vm3059_vm1, %v3058_v0 }
 0x85f   :  { %2781 = vmatprep.subr.bf16.mxu0 %v3058_v0 }
 0x861   :  { %v1067_v42 = vpop.permute.xlu1 %1066 }
 0x862   :  { %1069 = vst.msk [vmem:[#allocation2] sm:$0xff] %vm42_vm0, %v1067_v42  ;;  %2782 = vmatpush3.bf16.msra.mxu0 %v3269_v2  ;;  %v1288_v42 = vsel %vm2503_vm9, 1, %v3060_v37 }
 0x863   :  { %v1078_v14 = vpop.permute.xlu0 %1077  ;;  %2795 = vmatprep.subr.bf16.mxu0 %v3058_v0 }
 0x864   :  { %2760 = vmatmul.mubr.msk.bf16.vlgmr.msra.gmra.mxu1 %vm42_vm0, %v1078_v14 }
 0x865   :  { %v976_v15 = vpop.permute.xlu1 %975  ;;  %2772 = vmatpush3.bf16.msra.mxu1 %v3172_v10  ;;  %2775 = vmatprep.mubr.msk.bf16.mxu1 %vm3059_vm1, %v3058_v0 }
 0x866   :  { %978 = vst.msk [vmem:[#allocation5] sm:$0xff] %vm42_vm0, %v976_v15  ;;  %2773 = vmatprep.subr.bf16.mxu1 %v3058_v0 }
 0x867   :  { %v1072_v16 = vpop.permute.xlu0 %1071 }
 0x868   :  { %1074 = vst.msk [vmem:[#allocation4] sm:$0xff] %vm42_vm0, %v1072_v16 }
 0x869   :  { %2774 = vmatpush3.bf16.msra.mxu1 %v3179_v11  ;;  %v3449_v19 = vld [vmem:[#allocation2] sm:$0xff] }
 0x86a   :  { %v1215_v20 = vpack.c.bf16 %v3449_v19, %v3449_v19  ;;  %2787 = vmatprep.subr.bf16.mxu1 %v3058_v0 }
 0x86c   :  { %2776 = vmatmul.mubr.msk.bf16.vlgmr.msra.gmra.mxu1 %vm42_vm0, %v1215_v20 }
 0x86d   :  { %2788 = vmatpush3.bf16.msra.mxu1 %v3224_v54  ;;  %2791 = vmatprep.mubr.msk.bf16.mxu1 %vm3059_vm1, %v3058_v0  ;;  %v1123_v46 = vld [vmem:[#allocation5] sm:$0xff] }
 0x86e   :  { %2789 = vmatprep.subr.bf16.mxu1 %v3058_v0 }
 0x86f   :  { %v1214_v41 = vld [vmem:[#allocation4] sm:$0xff] }
 0x871   :  { %2790 = vmatpush3.bf16.msra.mxu1 %v3238_v57 }
 0x872   :  { %2803 = vmatprep.subr.bf16.mxu1 %v3058_v0 }
 0x91d   :  { %v1162_v21 = vpop.f32.mrf.mxu0 }
 0x91f   :  { %v2769_v23 = vpop.f32.mrf.mxu0 }
 0x921   :  { %v1165_v24 = vpop.f32.mrf.mxu0 }
 0x923   :  { %v2770_v25 = vpop.f32.mrf.mxu0 }
 0x924   :  { %v1116_v29 = vpop.f32.mrf.mxu1 }
 0x925   :  { %v1117_v18 = vadd.f32 %v3328_v44, %v1116_v29 }
 0x926   :  { %v2761_v30 = vpop.f32.mrf.mxu1 }
 0x927   :  { %v1168_v31 = vadd.f32 %v1162_v21, %v1117_v18 }
 0x928   :  { %v1119_v32 = vpop.f32.mrf.mxu1 }
 0x929   :  { %2957 = vtanh.f32 %v1168_v31  ;;  %v2529_v48 = vmul.f32 -1.442695, %v1168_v31 }
 0x92a   :  { %v2762_v34 = vpop.f32.mrf.mxu1 }
 0x92c   :  { %v1253_v58 = vpop.f32.mrf.mxu1 }
 0x92d   :  { %v1259_v36 = vadd.f32 %v1253_v58, %v256_v35 }
 0x92e   :  { %v2777_v38 = vpop.f32.mrf.mxu1 }
 0x92f   :  { %2959 = vtanh.f32 %v1259_v36  ;;  %v2531_v17 = vmul.f32 -1.442695, %v1259_v36 }
 0x930   :  { %v1256_v39 = vpop.f32.mrf.mxu1  ;;  %2961 = vpow2.f32 %v2529_v48 }
 0x931   :  { %2963 = vpow2.f32 %v2531_v17 }
 0x932   :  { %v2778_v40 = vpop.f32.mrf.mxu1 }
 0x936   :  { %v2958_v45 = vpop.eup %2957 }
 0x937   :  { %1182 = vrot.lane.b32.xlu1 %v2958_v45, %s3061_s28 }
 0x93b   :  { %1177 = vrot.lane.b32.xlu1 %v1123_v46, %s3062_s29 }
 0x93c   :  { %v2960_v47 = vpop.eup %2959 }
 0x93d   :  { %1273 = vrot.lane.b32.xlu0 %v2960_v47, %s3061_s28  ;;  %v2962_v49 = vpop.eup %2961 }
 0x93e   :  { %v1172_v50 = vadd.f32 1.0, %v2962_v49  ;;  %v2964_v52 = vpop.eup %2963  ;;  %v302_v49 = vadd.f32 %v3198_v28, %v3191_v22 }
 0x93f   :  { %1268 = vrot.lane.b32.xlu1 %v1214_v41, %s3062_s29  ;;  %v1263_v1 = vadd.f32 1.0, %v2964_v52 }
 0x940   :  { %2965 = vrcp.f32 %v1172_v50 }
 0x941   :  { %2967 = vrcp.f32 %v1263_v1 }
 0x94d   :  { %v2966_v53 = vpop.eup %2965 }
 0x94e   :  { %v2968_v56 = vpop.eup %2967 }
 0x9a9   :  { %v1183_v55 = vpop.permute.xlu1 %1182 }
 0x9aa   :  { %v1185_v51 = vmul.f32 %v2966_v53, %v1183_v55 }
 0x9ac   :  { %1187 = vrot.lane.b32.xlu0 %v1185_v51, %s3062_s29 }
 0x9ad   :  { %v1178_v63 = vpop.permute.xlu1 %1177 }
 0x9ae   :  { %v1180_v4 = vmul.f32 %v2966_v53, %v1178_v63 }
 0x9af   :  { %v1274_v60 = vpop.permute.xlu0 %1273 }
 0x9b0   :  { %v1276_v61 = vmul.f32 %v2968_v56, %v1274_v60 }
 0x9b1   :  { %v1269_v59 = vpop.permute.xlu1 %1268 }
 0x9b2   :  { %1278 = vrot.lane.b32.xlu0 %v1276_v61, %s3062_s29  ;;  %v1271_v7 = vmul.f32 %v2968_v56, %v1269_v59 }
 0x9b6   :  { %1198 = vrot.lane.b32.xlu0 %v3429_v12, %s3063_s12 }
 0xa1e   :  { %v1188_v5 = vpop.permute.xlu0 %1187 }
 0xa1f   :  { %v1190_v6 = vadd.f32 %v1188_v5, %v1180_v4 }
 0xa21   :  { %2969 = vtanh.f32 %v1190_v6  ;;  %v1202_v18 = vsel %vm1058_vm8, %v1190_v6, %v1178_v63 }
 0xa24   :  { %v1279_v8 = vpop.permute.xlu0 %1278 }
 0xa25   :  { %v1281_v9 = vadd.f32 %v1279_v8, %v1271_v7 }
 0xa27   :  { %2971 = vtanh.f32 %v1281_v9 }
 0xa28   :  { %v1199_v16 = vpop.permute.xlu0 %1198 }
 0xa2e   :  { %v2970_v13 = vpop.eup %2969 }
 0xa2f   :  { %1193 = vrot.lane.b32.xlu1 %v2970_v13, %s3061_s28 }
 0xa33   :  { %1290 = vperm.xlu1 %2908, %v1288_v42  }
 0xa34   :  { %v2972_v14 = vpop.eup %2971 }
 0xa35   :  { %1284 = vrot.lane.b32.xlu0 %v2972_v14, %s3061_s28 }
 0xa37   :  { %1294 = vrot.lane.b32.xlu1 %v3449_v19, %s3063_s12 }
 0xaa1   :  { %v1194_v12 = vpop.permute.xlu1 %1193 }
 0xaa2   :  { %v1196_v15 = vmul.f32 %v2966_v53, %v1194_v12 }
 0xaa4   :  { %v1201_v20 = vsel %vm1058_vm8, %v1196_v15, %v1199_v16 }
 0xaa5   :  { %1204 = vrot.lane.b32.xlu0 %v1201_v20, %s3062_s29 }
 0xaa7   :  { %v1285_v21 = vpop.permute.xlu0 %1284 }
 0xaa8   :  { %v1287_v24 = vmul.f32 %v2968_v56, %v1285_v21 }
 0xaae   :  { %v3481_v23 = vpop.permute.xlu1 %1290 }
 0xaaf   :  { %vm1292_vm10 = vcmp.eq.s32.totalorder %v3481_v23, 1 }
 0xab0   :  { %v1298_v30 = vsel %vm1292_vm10, %v1281_v9, %v1269_v59 }
 0xab2   :  { %v1295_v25 = vpop.permute.xlu1 %1294 }
 0xab3   :  { %v1297_v29 = vsel %vm1292_vm10, %v1287_v24, %v1295_v25 }
 0xab4   :  { %1300 = vrot.lane.b32.xlu1 %v1297_v29, %s3062_s29  ;;  %v1309_v19 = vpack.c.bf16 %v1297_v29, %v1297_v29  ;;  %v1522_v29 = vsel %vm2504_vm11, 1, %v3060_v37 }
 0xab6   :  { %1311 = vrot.lane.b32.xlu0 %v1309_v19, %s3062_s29 }
 0xab8   :  { %1209 = vrot.lane.b32.xlu1 %v1202_v18, %s3063_s12 }
 0xaba   :  { %1305 = vrot.lane.b32.xlu0 %v1298_v30, %s3063_s12 }
 0xb17   :  { %v1205_v31 = vpop.permute.xlu0 %1204 }
 0xb18   :  { %1207 = vst.msk [vmem:[#allocation3] sm:$0xff] %vm42_vm0, %v1205_v31 }
 0xb1f   :  { %v3495_v32 = vld [vmem:[#allocation3] sm:$0xff] }
 0xb20   :  { %v1358_v34 = vpack.c.bf16 %v3495_v32, %v3495_v32 }
 0xb22   :  { %2792 = vmatmul.mubr.msk.bf16.vlgmr.msra.gmra.mxu1 %vm42_vm0, %v1358_v34 }
 0xb23   :  { %2804 = vmatpush3.bf16.msra.mxu1 %v3258_v62  ;;  %2807 = vmatprep.mubr.msk.bf16.mxu1 %vm3059_vm1, %v3058_v0 }
 0xb24   :  { %2805 = vmatprep.subr.bf16.mxu1 %v3058_v0 }
 0xb26   :  { %v1301_v3 = vpop.permute.xlu1 %1300 }
 0xb27   :  { %1303 = vst.msk [vmem:[#allocation2] sm:$0xff] %vm42_vm0, %v1301_v3  ;;  %2806 = vmatpush3.bf16.msra.mxu1 %v3269_v2 }
 0xb28   :  { %v1312_v35 = vpop.permute.xlu0 %1311  ;;  %2819 = vmatprep.subr.bf16.mxu1 %v3058_v0 }
 0xb29   :  { %2784 = vmatmul.mubr.msk.bf16.vlgmr.msra.gmra.mxu0 %vm42_vm0, %v1312_v35 }
 0xb2a   :  { %v1210_v58 = vpop.permute.xlu1 %1209  ;;  %2796 = vmatpush3.bf16.msra.mxu0 %v3172_v10  ;;  %2799 = vmatprep.mubr.msk.bf16.mxu0 %vm3059_vm1, %v3058_v0 }
 0xb2b   :  { %1212 = vst.msk [vmem:[#allocation5] sm:$0xff] %vm42_vm0, %v1210_v58  ;;  %2797 = vmatprep.subr.bf16.mxu0 %v3058_v0 }
 0xb2c   :  { %v1306_v36 = vpop.permute.xlu0 %1305 }
 0xb2d   :  { %1308 = vst.msk [vmem:[#allocation4] sm:$0xff] %vm42_vm0, %v1306_v36 }
 0xb2e   :  { %2798 = vmatpush3.bf16.msra.mxu0 %v3179_v11  ;;  %v3515_v38 = vld [vmem:[#allocation2] sm:$0xff] }
 0xb2f   :  { %v1449_v39 = vpack.c.bf16 %v3515_v38, %v3515_v38  ;;  %2811 = vmatprep.subr.bf16.mxu0 %v3058_v0 }
 0xb31   :  { %2800 = vmatmul.mubr.msk.bf16.vlgmr.msra.gmra.mxu0 %vm42_vm0, %v1449_v39 }
 0xb32   :  { %2812 = vmatpush3.bf16.msra.mxu0 %v3224_v54  ;;  %2815 = vmatprep.mubr.msk.bf16.mxu0 %vm3059_vm1, %v3058_v0  ;;  %v1357_v51 = vld [vmem:[#allocation5] sm:$0xff] }
 0xb33   :  { %2813 = vmatprep.subr.bf16.mxu0 %v3058_v0 }
 0xb34   :  { %v1448_v60 = vld [vmem:[#allocation4] sm:$0xff] }
 0xb36   :  { %2814 = vmatpush3.bf16.msra.mxu0 %v3238_v57 }
 0xb37   :  { %2827 = vmatprep.subr.bf16.mxu0 %v3058_v0 }
 0xbe2   :  { %v1396_v10 = vpop.f32.mrf.mxu1 }
 0xbe4   :  { %v2793_v11 = vpop.f32.mrf.mxu1 }
 0xbe6   :  { %v1399_v40 = vpop.f32.mrf.mxu1 }
 0xbe8   :  { %v2794_v45 = vpop.f32.mrf.mxu1 }
 0xbe9   :  { %v1350_v46 = vpop.f32.mrf.mxu0 }
 0xbea   :  { %v1351_v47 = vadd.f32 %v3328_v44, %v1350_v46 }
 0xbeb   :  { %v2785_v41 = vpop.f32.mrf.mxu0 }
 0xbec   :  { %v1402_v48 = vadd.f32 %v1396_v10, %v1351_v47  ;;  %v3588_v47 = vld [vmem:[%s3856_s3] sm:$0xff]  }
 0xbed   :  { %v1353_v17 = vpop.f32.mrf.mxu0 }
 0xbee   :  { %2973 = vtanh.f32 %v1402_v48  ;;  %v2534_v61 = vmul.f32 -1.442695, %v1402_v48  ;;  %v3600_v17 = vld [vmem:[%s3859_s6 + $0x8] sm:$0xff]  }
 0xbef   :  { %v2786_v54 = vpop.f32.mrf.mxu0 }
 0xbf0   :  { %v3609_v54 = vld [vmem:[%s3859_s6] sm:$0xff]  }
 0xbf1   :  { %v1487_v50 = vpop.f32.mrf.mxu0 }
 0xbf2   :  { %v1493_v52 = vadd.f32 %v1487_v50, %v302_v49 }
 0xbf3   :  { %v2801_v57 = vpop.f32.mrf.mxu0 }
 0xbf4   :  { %2975 = vtanh.f32 %v1493_v52  ;;  %v2536_v22 = vmul.f32 -1.442695, %v1493_v52 }
 0xbf5   :  { %v1490_v1 = vpop.f32.mrf.mxu0  ;;  %2977 = vpow2.f32 %v2534_v61  ;;  %v3617_v61 = vld [vmem:[%s3857_s4] ss:$0 sm:$0xff] }
 0xbf6   :  { %2979 = vpow2.f32 %v2536_v22  ;;  %v348_v22 = vadd.f32 %v3617_v61, %v3301_v27 }
 0xbf7   :  { %v2802_v53 = vpop.f32.mrf.mxu0 }
 0xbfb   :  { %v2974_v55 = vpop.eup %2973 }
 0xbfc   :  { %1416 = vrot.lane.b32.xlu1 %v2974_v55, %s3061_s28 }
 0xc00   :  { %1411 = vrot.lane.b32.xlu1 %v1357_v51, %s3062_s29 }
 0xc01   :  { %v2976_v56 = vpop.eup %2975 }
 0xc02   :  { %1507 = vrot.lane.b32.xlu0 %v2976_v56, %s3061_s28  ;;  %v2978_v28 = vpop.eup %2977 }
 0xc03   :  { %v1406_v63 = vadd.f32 1.0, %v2978_v28  ;;  %v2980_v4 = vpop.eup %2979 }
 0xc04   :  { %1502 = vrot.lane.b32.xlu1 %v1448_v60, %s3062_s29  ;;  %v1497_v5 = vadd.f32 1.0, %v2980_v4 }
 0xc05   :  { %2981 = vrcp.f32 %v1406_v63 }
 0xc06   :  { %2983 = vrcp.f32 %v1497_v5 }
 0xc12   :  { %v2982_v6 = vpop.eup %2981 }
 0xc13   :  { %v2984_v8 = vpop.eup %2983 }
 0xc6e   :  { %v1417_v59 = vpop.permute.xlu1 %1416 }
 0xc6f   :  { %v1419_v7 = vmul.f32 %v2982_v6, %v1417_v59 }
 0xc71   :  { %1421 = vrot.lane.b32.xlu0 %v1419_v7, %s3062_s29 }
 0xc72   :  { %v1412_v42 = vpop.permute.xlu1 %1411 }
 0xc73   :  { %v1414_v14 = vmul.f32 %v2982_v6, %v1412_v42 }
 0xc74   :  { %v1508_v9 = vpop.permute.xlu0 %1507 }
 0xc75   :  { %v1510_v13 = vmul.f32 %v2984_v8, %v1508_v9 }
 0xc76   :  { %v1503_v16 = vpop.permute.xlu1 %1502 }
 0xc77   :  { %1512 = vrot.lane.b32.xlu0 %v1510_v13, %s3062_s29  ;;  %v1505_v20 = vmul.f32 %v2984_v8, %v1503_v16 }
 0xc7b   :  { %1432 = vrot.lane.b32.xlu0 %v3495_v32, %s3063_s12 }
 0xce3   :  { %v1422_v12 = vpop.permute.xlu0 %1421 }
 0xce4   :  { %v1424_v15 = vadd.f32 %v1422_v12, %v1414_v14 }
 0xce6   :  { %2985 = vtanh.f32 %v1424_v15 }
 0xce9   :  { %v1513_v21 = vpop.permute.xlu0 %1512 }
 0xcea   :  { %v1515_v24 = vadd.f32 %v1513_v21, %v1505_v20 }
 0xcec   :  { %2987 = vtanh.f32 %v1515_v24 }
 0xced   :  { %v1433_v31 = vpop.permute.xlu0 %1432 }
 0xcf3   :  { %v2986_v25 = vpop.eup %2985 }
 0xcf4   :  { %1427 = vrot.lane.b32.xlu1 %v2986_v25, %s3061_s28 }
 0xcf8   :  { %1524 = vperm.xlu1 %2908, %v1522_v29  }
 0xcf9   :  { %v2988_v19 = vpop.eup %2987 }
 0xcfa   :  { %1518 = vrot.lane.b32.xlu0 %v2988_v19, %s3061_s28 }
 0xcfc   :  { %1528 = vrot.lane.b32.xlu1 %v3515_v38, %s3063_s12  ;;  %v1436_v38 = vsel %vm1292_vm10, %v1424_v15, %v1412_v42 }
 0xd66   :  { %v1428_v18 = vpop.permute.xlu1 %1427 }
 0xd67   :  { %v1430_v30 = vmul.f32 %v2982_v6, %v1428_v18 }
 0xd69   :  { %v1435_v32 = vsel %vm1292_vm10, %v1430_v30, %v1433_v31 }
 0xd6a   :  { %1438 = vrot.lane.b32.xlu0 %v1435_v32, %s3062_s29 }
 0xd6c   :  { %v1519_v43 = vpop.permute.xlu0 %1518 }
 0xd6d   :  { %v1521_v3 = vmul.f32 %v2984_v8, %v1519_v43 }
 0xd73   :  { %v3547_v34 = vpop.permute.xlu1 %1524 }
 0xd74   :  { %vm1526_vm12 = vcmp.eq.s32.totalorder %v3547_v34, 1  ;;  %v3665_v34 = vld [vmem:[%s3860_s5 + $0x8] sm:$0xff]  }
 0xd75   :  { %v1532_v39 = vsel %vm1526_vm12, %v1515_v24, %v1503_v16 }
 0xd77   :  { %v1529_v35 = vpop.permute.xlu1 %1528 }
 0xd78   :  { %v1531_v58 = vsel %vm1526_vm12, %v1521_v3, %v1529_v35  ;;  %v3632_v35 = vld [vmem:[%s3858_s1] sm:$0xff] }
 0xd79   :  { %1534 = vrot.lane.b32.xlu1 %v1531_v58, %s3062_s29  ;;  %v1543_v36 = vpack.c.bf16 %v1531_v58, %v1531_v58  ;;  %vm2505_vm13 = vcmp.gt.s32.totalorder %v3632_v35, 5  ;;  %vm2506_vm15 = vcmp.gt.s32.totalorder %v3632_v35, 6  ;;  %vm2507_vm3 = vcmp.gt.s32.totalorder %v3632_v35, 7 }
 0xd7b   :  { %1545 = vrot.lane.b32.xlu0 %v1543_v36, %s3062_s29  ;;  %v1756_v36 = vsel %vm2505_vm13, 1, %v3060_v37 }
 0xd7d   :  { %1443 = vrot.lane.b32.xlu1 %v1436_v38, %s3063_s12 }
 0xd7f   :  { %1539 = vrot.lane.b32.xlu0 %v1532_v39, %s3063_s12 }
 0xddc   :  { %v1439_v10 = vpop.permute.xlu0 %1438 }
 0xddd   :  { %1441 = vst.msk [vmem:[#allocation3] sm:$0xff] %vm42_vm0, %v1439_v10 }
 0xde4   :  { %v3561_v11 = vld [vmem:[#allocation3] sm:$0xff] }
 0xde5   :  { %v1592_v40 = vpack.c.bf16 %v3561_v11, %v3561_v11 }
 0xde7   :  { %2816 = vmatmul.mubr.msk.bf16.vlgmr.msra.gmra.mxu0 %vm42_vm0, %v1592_v40 }
 0xde8   :  { %2828 = vmatpush3.bf16.msra.mxu0 %v3258_v62  ;;  %2831 = vmatprep.mubr.msk.bf16.mxu0 %vm3059_vm1, %v3058_v0  ;;  %v3577_v62 = vld [vmem:[%s3856_s3 + $0x8] sm:$0xff]  }
 0xde9   :  { %2829 = vmatprep.subr.bf16.mxu0 %v3058_v0 }
 0xdeb   :  { %v1535_v23 = vpop.permute.xlu1 %1534 }
 0xdec   :  { %1537 = vst.msk [vmem:[#allocation2] sm:$0xff] %vm42_vm0, %v1535_v23  ;;  %2830 = vmatpush3.bf16.msra.mxu0 %v3269_v2 }
 0xded   :  { %v1546_v45 = vpop.permute.xlu0 %1545  ;;  %2843 = vmatprep.subr.bf16.mxu0 %v3058_v0 }
 0xdee   :  { %2808 = vmatmul.mubr.msk.bf16.vlgmr.msra.gmra.mxu1 %vm42_vm0, %v1546_v45 }
 0xdef   :  { %v1444_v46 = vpop.permute.xlu1 %1443  ;;  %2820 = vmatpush3.bf16.msra.mxu1 %v3577_v62  ;;  %2823 = vmatprep.mubr.msk.bf16.mxu1 %vm3059_vm1, %v3058_v0 }
 0xdf0   :  { %1446 = vst.msk [vmem:[#allocation5] sm:$0xff] %vm42_vm0, %v1444_v46  ;;  %2821 = vmatprep.subr.bf16.mxu1 %v3058_v0 }
 0xdf1   :  { %v1540_v2 = vpop.permute.xlu0 %1539 }
 0xdf2   :  { %1542 = vst.msk [vmem:[#allocation4] sm:$0xff] %vm42_vm0, %v1540_v2 }
 0xdf3   :  { %2822 = vmatpush3.bf16.msra.mxu1 %v3588_v47  ;;  %v3591_v41 = vld [vmem:[#allocation2] sm:$0xff] }
 0xdf4   :  { %v1683_v48 = vpack.c.bf16 %v3591_v41, %v3591_v41  ;;  %2835 = vmatprep.subr.bf16.mxu1 %v3058_v0 }
 0xdf6   :  { %2824 = vmatmul.mubr.msk.bf16.vlgmr.msra.gmra.mxu1 %vm42_vm0, %v1683_v48 }
 0xdf7   :  { %2836 = vmatpush3.bf16.msra.mxu1 %v3600_v17  ;;  %2839 = vmatprep.mubr.msk.bf16.mxu1 %vm3059_vm1, %v3058_v0  ;;  %v1591_v59 = vld [vmem:[#allocation5] sm:$0xff] }
 0xdf8   :  { %2837 = vmatprep.subr.bf16.mxu1 %v3058_v0 }
 0xdf9   :  { %v1682_v8 = vld [vmem:[#allocation4] sm:$0xff] }
 0xdfb   :  { %2838 = vmatpush3.bf16.msra.mxu1 %v3609_v54 }
 0xdfc   :  { %2851 = vmatprep.subr.bf16.mxu1 %v3058_v0 }
 0xea7   :  { %v1630_v49 = vpop.f32.mrf.mxu0 }
 0xea9   :  { %v2817_v50 = vpop.f32.mrf.mxu0 }
 0xeab   :  { %v1633_v52 = vpop.f32.mrf.mxu0 }
 0xead   :  { %v2818_v57 = vpop.f32.mrf.mxu0 }
 0xeae   :  { %v1584_v1 = vpop.f32.mrf.mxu1 }
 0xeaf   :  { %v1585_v53 = vadd.f32 %v3328_v44, %v1584_v1 }
 0xeb0   :  { %v2809_v55 = vpop.f32.mrf.mxu1 }
 0xeb1   :  { %v1636_v51 = vadd.f32 %v1630_v49, %v1585_v53  ;;  %v3675_v55 = vld [vmem:[%s3860_s5] sm:$0xff]  }
 0xeb2   :  { %v1587_v56 = vpop.f32.mrf.mxu1 }
 0xeb3   :  { %2989 = vtanh.f32 %v1636_v51  ;;  %v2539_v9 = vmul.f32 -1.442695, %v1636_v51 }
 0xeb4   :  { %v2810_v60 = vpop.f32.mrf.mxu1 }
 0xeb6   :  { %v1721_v28 = vpop.f32.mrf.mxu1 }
 0xeb7   :  { %v1727_v63 = vadd.f32 %v1721_v28, %v348_v22 }
 0xeb8   :  { %v2825_v4 = vpop.f32.mrf.mxu1 }
 0xeb9   :  { %2991 = vtanh.f32 %v1727_v63  ;;  %v2541_v27 = vmul.f32 -1.442695, %v1727_v63 }
 0xeba   :  { %v1724_v5 = vpop.f32.mrf.mxu1  ;;  %2993 = vpow2.f32 %v2539_v9 }
 0xebb   :  { %2995 = vpow2.f32 %v2541_v27 }
 0xebc   :  { %v2826_v6 = vpop.f32.mrf.mxu1 }
 0xec0   :  { %v2990_v44 = vpop.eup %2989 }
 0xec1   :  { %1650 = vrot.lane.b32.xlu1 %v2990_v44, %s3061_s28 }
 0xec5   :  { %1645 = vrot.lane.b32.xlu1 %v1591_v59, %s3062_s29  ;;  %v3702_v59 = vld [vmem:[%s3861_s7] ss:$0 sm:$0xff] }
 0xec6   :  { %v2992_v7 = vpop.eup %2991 }
 0xec7   :  { %1741 = vrot.lane.b32.xlu0 %v2992_v7, %s3061_s28  ;;  %v2994_v13 = vpop.eup %2993 }
 0xec8   :  { %v1640_v42 = vadd.f32 1.0, %v2994_v13  ;;  %v2996_v14 = vpop.eup %2995 }
 0xec9   :  { %1736 = vrot.lane.b32.xlu1 %v1682_v8, %s3062_s29  ;;  %v1731_v12 = vadd.f32 1.0, %v2996_v14 }
 0xeca   :  { %2997 = vrcp.f32 %v1640_v42  ;;  %v394_v42 = vadd.f32 %v3617_v61, %v3193_v26 }
 0xecb   :  { %2999 = vrcp.f32 %v1731_v12 }
 0xed7   :  { %v2998_v15 = vpop.eup %2997 }
 0xed8   :  { %v3000_v21 = vpop.eup %2999 }
 0xf33   :  { %v1651_v16 = vpop.permute.xlu1 %1650 }
 0xf34   :  { %v1653_v20 = vmul.f32 %v2998_v15, %v1651_v16 }
 0xf36   :  { %1655 = vrot.lane.b32.xlu0 %v1653_v20, %s3062_s29 }
 0xf37   :  { %v1646_v29 = vpop.permute.xlu1 %1645 }
 0xf38   :  { %v1648_v19 = vmul.f32 %v2998_v15, %v1646_v29 }
 0xf39   :  { %v1742_v24 = vpop.permute.xlu0 %1741 }
 0xf3a   :  { %v1744_v25 = vmul.f32 %v3000_v21, %v1742_v24 }
 0xf3b   :  { %v1737_v31 = vpop.permute.xlu1 %1736 }
 0xf3c   :  { %1746 = vrot.lane.b32.xlu0 %v1744_v25, %s3062_s29  ;;  %v1739_v32 = vmul.f32 %v3000_v21, %v1737_v31 }
 0xf40   :  { %1666 = vrot.lane.b32.xlu0 %v3561_v11, %s3063_s12 }
 0xfa8   :  { %v1656_v18 = vpop.permute.xlu0 %1655 }
 0xfa9   :  { %v1658_v30 = vadd.f32 %v1656_v18, %v1648_v19 }
 0xfab   :  { %3001 = vtanh.f32 %v1658_v30  ;;  %v1670_v49 = vsel %vm1526_vm12, %v1658_v30, %v1646_v29 }
 0xfae   :  { %v1747_v43 = vpop.permute.xlu0 %1746 }
 0xfaf   :  { %v1749_v3 = vadd.f32 %v1747_v43, %v1739_v32 }
 0xfb1   :  { %3003 = vtanh.f32 %v1749_v3 }
 0xfb2   :  { %v1667_v11 = vpop.permute.xlu0 %1666 }
 0xfb8   :  { %v3002_v58 = vpop.eup %3001 }
 0xfb9   :  { %1661 = vrot.lane.b32.xlu1 %v3002_v58, %s3061_s28 }
 0xfbd   :  { %1758 = vperm.xlu1 %2908, %v1756_v36  }
 0xfbe   :  { %v3004_v38 = vpop.eup %3003 }
 0xfbf   :  { %1752 = vrot.lane.b32.xlu0 %v3004_v38, %s3061_s28 }
 0xfc1   :  { %1762 = vrot.lane.b32.xlu1 %v3591_v41, %s3063_s12 }
0x102b   :  { %v1662_v39 = vpop.permute.xlu1 %1661 }
0x102c   :  { %v1664_v10 = vmul.f32 %v2998_v15, %v1662_v39 }
0x102e   :  { %v1669_v40 = vsel %vm1526_vm12, %v1664_v10, %v1667_v11 }
0x102f   :  { %1672 = vrot.lane.b32.xlu0 %v1669_v40, %s3062_s29 }
0x1031   :  { %v1753_v23 = vpop.permute.xlu0 %1752 }
0x1032   :  { %v1755_v46 = vmul.f32 %v3000_v21, %v1753_v23 }
0x1038   :  { %v3643_v45 = vpop.permute.xlu1 %1758 }
0x1039   :  { %vm1760_vm14 = vcmp.eq.s32.totalorder %v3643_v45, 1 }
0x103a   :  { %v1766_v50 = vsel %vm1760_vm14, %v1749_v3, %v1737_v31 }
0x103c   :  { %v1763_v2 = vpop.permute.xlu1 %1762 }
0x103d   :  { %v1765_v48 = vsel %vm1760_vm14, %v1755_v46, %v1763_v2 }
0x103e   :  { %1768 = vrot.lane.b32.xlu1 %v1765_v48, %s3062_s29  ;;  %v1777_v41 = vpack.c.bf16 %v1765_v48, %v1765_v48 }
0x1040   :  { %1779 = vrot.lane.b32.xlu0 %v1777_v41, %s3062_s29 }
0x1042   :  { %1677 = vrot.lane.b32.xlu1 %v1670_v49, %s3063_s12 }
0x1044   :  { %1773 = vrot.lane.b32.xlu0 %v1766_v50, %s3063_s12  ;;  %v1990_v50 = vsel %vm2506_vm15, 1, %v3060_v37 }
0x10a1   :  { %v1673_v52 = vpop.permute.xlu0 %1672 }
0x10a2   :  { %1675 = vst.msk [vmem:[#allocation3] sm:$0xff] %vm42_vm0, %v1673_v52 }
0x10a9   :  { %v3657_v57 = vld [vmem:[#allocation3] sm:$0xff] }
0x10aa   :  { %v1826_v1 = vpack.c.bf16 %v3657_v57, %v3657_v57 }
0x10ac   :  { %2840 = vmatmul.mubr.msk.bf16.vlgmr.msra.gmra.mxu1 %vm42_vm0, %v1826_v1 }
0x10ad   :  { %2852 = vmatpush3.bf16.msra.mxu1 %v3665_v34  ;;  %2855 = vmatprep.mubr.msk.bf16.mxu1 %vm3059_vm1, %v3058_v0 }
0x10ae   :  { %2853 = vmatprep.subr.bf16.mxu1 %v3058_v0 }
0x10b0   :  { %v1769_v53 = vpop.permute.xlu1 %1768 }
0x10b1   :  { %1771 = vst.msk [vmem:[#allocation2] sm:$0xff] %vm42_vm0, %v1769_v53  ;;  %2854 = vmatpush3.bf16.msra.mxu1 %v3675_v55 }
0x10b2   :  { %v1780_v51 = vpop.permute.xlu0 %1779  ;;  %2867 = vmatprep.subr.bf16.mxu1 %v3058_v0 }
0x10b3   :  { %2832 = vmatmul.mubr.msk.bf16.vlgmr.msra.gmra.mxu0 %vm42_vm0, %v1780_v51 }
0x10b4   :  { %v1678_v56 = vpop.permute.xlu1 %1677  ;;  %2844 = vmatpush3.bf16.msra.mxu0 %v3577_v62  ;;  %2847 = vmatprep.mubr.msk.bf16.mxu0 %vm3059_vm1, %v3058_v0 }
0x10b5   :  { %1680 = vst.msk [vmem:[#allocation5] sm:$0xff] %vm42_vm0, %v1678_v56  ;;  %2845 = vmatprep.subr.bf16.mxu0 %v3058_v0 }
0x10b6   :  { %v1774_v60 = vpop.permute.xlu0 %1773 }
0x10b7   :  { %1776 = vst.msk [vmem:[#allocation4] sm:$0xff] %vm42_vm0, %v1774_v60 }
0x10b8   :  { %2846 = vmatpush3.bf16.msra.mxu0 %v3588_v47  ;;  %v3687_v22 = vld [vmem:[#allocation2] sm:$0xff] }
0x10b9   :  { %v1917_v28 = vpack.c.bf16 %v3687_v22, %v3687_v22  ;;  %2859 = vmatprep.subr.bf16.mxu0 %v3058_v0 }
0x10bb   :  { %2848 = vmatmul.mubr.msk.bf16.vlgmr.msra.gmra.mxu0 %vm42_vm0, %v1917_v28 }
0x10bc   :  { %2860 = vmatpush3.bf16.msra.mxu0 %v3600_v17  ;;  %2863 = vmatprep.mubr.msk.bf16.mxu0 %vm3059_vm1, %v3058_v0  ;;  %v1825_v24 = vld [vmem:[#allocation5] sm:$0xff] }
0x10bd   :  { %2861 = vmatprep.subr.bf16.mxu0 %v3058_v0 }
0x10be   :  { %v1916_v29 = vld [vmem:[#allocation4] sm:$0xff] }
0x10c0   :  { %2862 = vmatpush3.bf16.msra.mxu0 %v3609_v54 }
0x10c1   :  { %2875 = vmatprep.subr.bf16.mxu0 %v3058_v0 }
0x116c   :  { %v1864_v63 = vpop.f32.mrf.mxu1 }
0x116e   :  { %v2841_v4 = vpop.f32.mrf.mxu1 }
0x1170   :  { %v1867_v5 = vpop.f32.mrf.mxu1 }
0x1172   :  { %v2842_v6 = vpop.f32.mrf.mxu1 }
0x1173   :  { %v1818_v44 = vpop.f32.mrf.mxu0 }
0x1174   :  { %v1819_v7 = vadd.f32 %v3702_v59, %v1818_v44 }
0x1175   :  { %v2833_v8 = vpop.f32.mrf.mxu0 }
0x1176   :  { %v1870_v9 = vadd.f32 %v1864_v63, %v1819_v7 }
0x1177   :  { %v1821_v27 = vpop.f32.mrf.mxu0 }
0x1178   :  { %3005 = vtanh.f32 %v1870_v9  ;;  %v2544_v19 = vmul.f32 -1.442695, %v1870_v9 }
0x1179   :  { %v2834_v13 = vpop.f32.mrf.mxu0 }
0x117b   :  { %v1955_v14 = vpop.f32.mrf.mxu0 }
0x117c   :  { %v1961_v12 = vadd.f32 %v1955_v14, %v394_v42 }
0x117d   :  { %v2849_v15 = vpop.f32.mrf.mxu0 }
0x117e   :  { %3007 = vtanh.f32 %v1961_v12  ;;  %v2546_v26 = vmul.f32 -1.442695, %v1961_v12 }
0x117f   :  { %v1958_v16 = vpop.f32.mrf.mxu0  ;;  %3009 = vpow2.f32 %v2544_v19 }
0x1180   :  { %3011 = vpow2.f32 %v2546_v26 }
0x1181   :  { %v2850_v20 = vpop.f32.mrf.mxu0 }
0x1185   :  { %v3006_v21 = vpop.eup %3005 }
0x1186   :  { %1884 = vrot.lane.b32.xlu1 %v3006_v21, %s3061_s28 }
0x118a   :  { %1879 = vrot.lane.b32.xlu1 %v1825_v24, %s3062_s29 }
0x118b   :  { %v3008_v25 = vpop.eup %3007 }
0x118c   :  { %1975 = vrot.lane.b32.xlu0 %v3008_v25, %s3061_s28  ;;  %v3010_v18 = vpop.eup %3009 }
0x118d   :  { %v1874_v30 = vadd.f32 1.0, %v3010_v18  ;;  %v3012_v31 = vpop.eup %3011 }
0x118e   :  { %1970 = vrot.lane.b32.xlu1 %v1916_v29, %s3062_s29  ;;  %v1965_v32 = vadd.f32 1.0, %v3012_v31 }
0x118f   :  { %3013 = vrcp.f32 %v1874_v30 }
0x1190   :  { %3015 = vrcp.f32 %v1965_v32 }
0x119c   :  { %v3014_v43 = vpop.eup %3013 }
0x119d   :  { %v3016_v36 = vpop.eup %3015 }
0x11f8   :  { %v1885_v3 = vpop.permute.xlu1 %1884 }
0x11f9   :  { %v1887_v58 = vmul.f32 %v3014_v43, %v1885_v3 }
0x11fb   :  { %1889 = vrot.lane.b32.xlu0 %v1887_v58, %s3062_s29 }
0x11fc   :  { %v1880_v10 = vpop.permute.xlu1 %1879 }
0x11fd   :  { %v1882_v11 = vmul.f32 %v3014_v43, %v1880_v10 }
0x11fe   :  { %v1976_v38 = vpop.permute.xlu0 %1975 }
0x11ff   :  { %v1978_v39 = vmul.f32 %v3016_v36, %v1976_v38 }
0x1200   :  { %v1971_v46 = vpop.permute.xlu1 %1970 }
0x1201   :  { %1980 = vrot.lane.b32.xlu0 %v1978_v39, %s3062_s29  ;;  %v1973_v2 = vmul.f32 %v3016_v36, %v1971_v46 }
0x1205   :  { %1900 = vrot.lane.b32.xlu0 %v3657_v57, %s3063_s12 }
0x126d   :  { %v1890_v40 = vpop.permute.xlu0 %1889 }
0x126e   :  { %v1892_v23 = vadd.f32 %v1890_v40, %v1882_v11 }
0x1270   :  { %3017 = vtanh.f32 %v1892_v23 }
0x1273   :  { %v1981_v48 = vpop.permute.xlu0 %1980 }
0x1274   :  { %v1983_v41 = vadd.f32 %v1981_v48, %v1973_v2 }
0x1276   :  { %3019 = vtanh.f32 %v1983_v41 }
0x1277   :  { %v1901_v53 = vpop.permute.xlu0 %1900 }
0x127d   :  { %v3018_v49 = vpop.eup %3017 }
0x127e   :  { %1895 = vrot.lane.b32.xlu1 %v3018_v49, %s3061_s28 }
0x1282   :  { %1992 = vperm.xlu1 %2908, %v1990_v50  }
0x1283   :  { %v3020_v52 = vpop.eup %3019 }
0x1284   :  { %1986 = vrot.lane.b32.xlu0 %v3020_v52, %s3061_s28 }
0x1286   :  { %1996 = vrot.lane.b32.xlu1 %v3687_v22, %s3063_s12  ;;  %v1904_v22 = vsel %vm1760_vm14, %v1892_v23, %v1880_v10 }
0x12f0   :  { %v1896_v57 = vpop.permute.xlu1 %1895 }
0x12f1   :  { %v1898_v1 = vmul.f32 %v3014_v43, %v1896_v57 }
0x12f3   :  { %v1903_v51 = vsel %vm1760_vm14, %v1898_v1, %v1901_v53  ;;  %v2224_v53 = vsel %vm2507_vm3, 1, %v3060_v37 }
0x12f4   :  { %1906 = vrot.lane.b32.xlu0 %v1903_v51, %s3062_s29 }
0x12f6   :  { %v1987_v56 = vpop.permute.xlu0 %1986 }
0x12f7   :  { %v1989_v28 = vmul.f32 %v3016_v36, %v1987_v56 }
0x12fd   :  { %v3724_v60 = vpop.permute.xlu1 %1992 }
0x12fe   :  { %vm1994_vm2 = vcmp.eq.s32.totalorder %v3724_v60, 1 }
0x12ff   :  { %v2000_v6 = vsel %vm1994_vm2, %v1983_v41, %v1971_v46 }
0x1301   :  { %v1997_v63 = vpop.permute.xlu1 %1996 }
0x1302   :  { %v1999_v4 = vsel %vm1994_vm2, %v1989_v28, %v1997_v63 }
0x1303   :  { %v2011_v5 = vpack.c.bf16 %v1999_v4, %v1999_v4  ;;  %2002 = vrot.lane.b32.xlu1 %v1999_v4, %s3062_s29 }
0x1305   :  { %2013 = vrot.lane.b32.xlu0 %v2011_v5, %s3062_s29 }
0x1307   :  { %1911 = vrot.lane.b32.xlu1 %v1904_v22, %s3063_s12 }
0x1309   :  { %2007 = vrot.lane.b32.xlu0 %v2000_v6, %s3063_s12 }
0x1366   :  { %v1907_v44 = vpop.permute.xlu0 %1906 }
0x1367   :  { %1909 = vst.msk [vmem:[#allocation3] sm:$0xff] %vm42_vm0, %v1907_v44 }
0x136e   :  { %v3738_v7 = vld [vmem:[#allocation3] sm:$0xff] }
0x136f   :  { %v2060_v8 = vpack.c.bf16 %v3738_v7, %v3738_v7 }
0x1371   :  { %2864 = vmatmul.mubr.msk.bf16.vlgmr.msra.gmra.mxu0 %vm42_vm0, %v2060_v8 }
0x1372   :  { %2876 = vmatpush3.bf16.msra.mxu0 %v3665_v34  ;;  %2879 = vmatprep.mubr.msk.bf16.mxu0 %vm3059_vm1, %v3058_v0 }
0x1373   :  { %2877 = vmatprep.subr.bf16.mxu0 %v3058_v0 }
0x1375   :  { %v2003_v45 = vpop.permute.xlu1 %2002 }
0x1376   :  { %2005 = vst.msk [vmem:[#allocation2] sm:$0xff] %vm42_vm0, %v2003_v45  ;;  %2878 = vmatpush3.bf16.msra.mxu0 %v3675_v55 }
0x1377   :  { %v2014_v9 = vpop.permute.xlu0 %2013  ;;  %2891 = vmatprep.subr.mxu0 %v3058_v0 }
0x1378   :  { %2856 = vmatmul.mubr.msk.bf16.vlgmr.msra.gmra.mxu1 %vm42_vm0, %v2014_v9 }
0x1379   :  { %v1912_v27 = vpop.permute.xlu1 %1911  ;;  %2868 = vmatpush3.bf16.msra.mxu1 %v3577_v62  ;;  %2871 = vmatprep.mubr.msk.bf16.mxu1 %vm3059_vm1, %v3058_v0 }
0x137a   :  { %1914 = vst.msk [vmem:[#allocation5] sm:$0xff] %vm42_vm0, %v1912_v27  ;;  %2869 = vmatprep.subr.bf16.mxu1 %v3058_v0 }
0x137b   :  { %v2008_v34 = vpop.permute.xlu0 %2007 }
0x137c   :  { %2010 = vst.msk [vmem:[#allocation4] sm:$0xff] %vm42_vm0, %v2008_v34 }
0x137d   :  { %2870 = vmatpush3.bf16.msra.mxu1 %v3588_v47  ;;  %v3758_v55 = vld [vmem:[#allocation2] sm:$0xff] }
0x137e   :  { %v2151_v13 = vpack.c.bf16 %v3758_v55, %v3758_v55  ;;  %2883 = vmatprep.subr.bf16.mxu1 %v3058_v0 }
0x1380   :  { %2872 = vmatmul.mubr.msk.bf16.vlgmr.msra.gmra.mxu1 %vm42_vm0, %v2151_v13 }
0x1381   :  { %2884 = vmatpush3.bf16.msra.mxu1 %v3600_v17  ;;  %2887 = vmatprep.mubr.msk.bf16.mxu1 %vm3059_vm1, %v3058_v0  ;;  %v440_v17 = vadd.f32 %v3617_v61, %v3303_v33  ;;  %v2059_v30 = vld [vmem:[#allocation5] sm:$0xff] }
0x1382   :  { %2885 = vmatprep.subr.bf16.mxu1 %v3058_v0 }
0x1383   :  { %v2150_v32 = vld [vmem:[#allocation4] sm:$0xff] }
0x1385   :  { %2886 = vmatpush3.bf16.msra.mxu1 %v3609_v54 }
0x1431   :  { %v2098_v62 = vpop.f32.mrf.mxu0 }
0x1433   :  { %v2865_v47 = vpop.f32.mrf.mxu0 }
0x1435   :  { %v2101_v42 = vpop.f32.mrf.mxu0 }
0x1437   :  { %v2866_v14 = vpop.f32.mrf.mxu0 }
0x1438   :  { %v2052_v12 = vpop.f32.mrf.mxu1 }
0x1439   :  { %v2053_v15 = vadd.f32 %v3702_v59, %v2052_v12 }
0x143a   :  { %v2857_v16 = vpop.f32.mrf.mxu1 }
0x143b   :  { %v2104_v20 = vadd.f32 %v2098_v62, %v2053_v15 }
0x143c   :  { %v2055_v21 = vpop.f32.mrf.mxu1 }
0x143d   :  { %3021 = vtanh.f32 %v2104_v20  ;;  %v2549_v43 = vmul.f32 -1.442695, %v2104_v20 }
0x143e   :  { %v2858_v24 = vpop.f32.mrf.mxu1 }
0x1440   :  { %v2189_v25 = vpop.f32.mrf.mxu1 }
0x1441   :  { %v2195_v29 = vadd.f32 %v2189_v25, %v440_v17 }
0x1442   :  { %v2873_v19 = vpop.f32.mrf.mxu1 }
0x1443   :  { %3023 = vtanh.f32 %v2195_v29  ;;  %v2551_v33 = vmul.f32 -1.442695, %v2195_v29 }
0x1444   :  { %v2192_v54 = vpop.f32.mrf.mxu1  ;;  %3025 = vpow2.f32 %v2549_v43 }
0x1445   :  { %3027 = vpow2.f32 %v2551_v33 }
0x1446   :  { %v2874_v26 = vpop.f32.mrf.mxu1 }
0x144a   :  { %v3022_v18 = vpop.eup %3021 }
0x144b   :  { %2118 = vrot.lane.b32.xlu1 %v3022_v18, %s3061_s28 }
0x144f   :  { %2113 = vrot.lane.b32.xlu1 %v2059_v30, %s3062_s29 }
0x1450   :  { %v3024_v31 = vpop.eup %3023 }
0x1451   :  { %2209 = vrot.lane.b32.xlu0 %v3024_v31, %s3061_s28  ;;  %v3026_v61 = vpop.eup %3025 }
0x1452   :  { %v2108_v3 = vadd.f32 1.0, %v3026_v61  ;;  %v3028_v58 = vpop.eup %3027 }
0x1453   :  { %2204 = vrot.lane.b32.xlu1 %v2150_v32, %s3062_s29  ;;  %v2199_v36 = vadd.f32 1.0, %v3028_v58  ;;  %v2389_v58 = vld [vmem:[%s3862_s8 + $0x10] sm:$0xff] }
0x1454   :  { %3029 = vrcp.f32 %v2108_v3  ;;  %v2390_v3 = vld [vmem:[%s3862_s8 + $0x18] sm:$0xff] }
0x1455   :  { %3031 = vrcp.f32 %v2199_v36  ;;  %v2388_v36 = vld [vmem:[%s3862_s8 + $0x8] sm:$0xff] }
0x1461   :  { %v3030_v38 = vpop.eup %3029 }
0x1462   :  { %v3032_v11 = vpop.eup %3031 }
0x14bd   :  { %v2119_v39 = vpop.permute.xlu1 %2118 }
0x14be   :  { %v2121_v10 = vmul.f32 %v3030_v38, %v2119_v39 }
0x14c0   :  { %2123 = vrot.lane.b32.xlu0 %v2121_v10, %s3062_s29  ;;  %v15_v10 = vstv %s3863_s9 }
0x14c1   :  { %v2114_v46 = vpop.permute.xlu1 %2113  ;;  %16 = vst [vmem:[#allocation6] sm:$0x1] %v15_v10 }
0x14c2   :  { %v2116_v2 = vmul.f32 %v3030_v38, %v2114_v46 }
0x14c3   :  { %v2210_v40 = vpop.permute.xlu0 %2209 }
0x14c4   :  { %v2212_v23 = vmul.f32 %v3032_v11, %v2210_v40 }
0x14c5   :  { %v3780_v49 = vpop.permute.xlu1 %2204 }
0x14c6   :  { %2214 = vrot.lane.b32.xlu0 %v2212_v23, %s3062_s29  ;;  %v2207_v50 = vmul.f32 %v3032_v11, %v3780_v49 }
0x14ca   :  { %2134 = vrot.lane.b32.xlu0 %v3738_v7, %s3063_s12 }
0x1532   :  { %v2124_v48 = vpop.permute.xlu0 %2123 }
0x1533   :  { %v2126_v41 = vadd.f32 %v2124_v48, %v2116_v2  ;;  %v2555_v48 = vld [vmem:[#allocation6] ss:$0 sm:$0xff] }
0x1535   :  { %3033 = vtanh.f32 %v2126_v41  ;;  %v2138_v35 = vsel %vm1994_vm2, %v2126_v41, %v2114_v46 }
0x1538   :  { %v2215_v52 = vpop.permute.xlu0 %2214 }
0x1539   :  { %v3783_v57 = vadd.f32 %v2215_v52, %v2207_v50 }
0x153b   :  { %3035 = vtanh.f32 %v3783_v57 }
0x153c   :  { %v2135_v63 = vpop.permute.xlu0 %2134 }
0x1542   :  { %v3034_v1 = vpop.eup %3033 }
0x1543   :  { %2129 = vrot.lane.b32.xlu1 %v3034_v1, %s3061_s28 }
0x1547   :  { %2226 = vperm.xlu1 %2908, %v2224_v53  }
0x1548   :  { %v3036_v51 = vpop.eup %3035 }
0x1549   :  { %2220 = vrot.lane.b32.xlu0 %v3036_v51, %s3061_s28 }
0x154b   :  { %2230 = vrot.lane.b32.xlu1 %v3758_v55, %s3063_s12 }
0x15b5   :  { %v2130_v56 = vpop.permute.xlu1 %2129 }
0x15b6   :  { %v2132_v28 = vmul.f32 %v3030_v38, %v2130_v56  ;;  %v2387_v38 = vld [vmem:[%s3862_s8] sm:$0xff] }
0x15b8   :  { %v2137_v4 = vsel %vm1994_vm2, %v2132_v28, %v2135_v63 }
0x15b9   :  { %2140 = vrot.lane.b32.xlu0 %v2137_v4, %s3062_s29 }
0x15bb   :  { %v2221_v37 = vpop.permute.xlu0 %2220 }
0x15bc   :  { %v2223_v22 = vmul.f32 %v3032_v11, %v2221_v37 }
0x15bd   :  { %2145 = vrot.lane.b32.xlu0 %v2138_v35, %s3063_s12 }
0x15c2   :  { %v3798_v5 = vpop.permute.xlu1 %2226 }
0x15c3   :  { %vm2228_vm4 = vcmp.eq.s32.totalorder %v3798_v5, 1 }
0x15c4   :  { %v2234_v23 = vsel %vm2228_vm4, %v3783_v57, %v3780_v49 }
0x15c6   :  { %v2231_v6 = vpop.permute.xlu1 %2230 }
0x15c7   :  { %v2233_v44 = vsel %vm2228_vm4, %v2223_v22, %v2231_v6 }
0x15c8   :  { %v2245_v7 = vpack.c.bf16 %v2233_v44, %v2233_v44 }
0x15ca   :  { %2247 = vrot.lane.b32.xlu1 %v2245_v7, %s3062_s29 }
0x162b   :  { %v2141_v8 = vpop.permute.xlu0 %2140 }
0x162c   :  { %2143 = vst.msk [vmem:[#allocation3] sm:$0xff] %vm42_vm0, %v2141_v8 }
0x162f   :  { %v2146_v60 = vpop.permute.xlu0 %2145 }
0x1630   :  { %2148 = vst.msk [vmem:[#allocation5] sm:$0xff] %vm42_vm0, %v2146_v60 }
0x1633   :  { %v2292_v45 = vld [vmem:[#allocation3] sm:$0xff] }
0x1634   :  { %v2294_v9 = vpack.c.bf16 %v2292_v45, %v2292_v45 }
0x1636   :  { %2888 = vmatmul.mubr.msk.bf16.vlgmr.msra.gmra.mxu1 %vm42_vm0, %v2294_v9 }
0x1637   :  { %v2293_v27 = vld [vmem:[#allocation5] sm:$0xff] }
0x1638   :  { %2347 = vrot.lane.b32.xlu0 %v2293_v27, %s3062_s29 }
0x163c   :  { %v2248_v34 = vpop.permute.xlu1 %2247 }
0x163d   :  { %2880 = vmatmul.mubr.msk.bf16.vlgmr.msra.gmra.mxu0 %vm42_vm0, %v2248_v34 }
0x163e   :  { %2899 = vmatprep.mubr.msk.f32.mxu0 %vm3059_vm1, %v3058_v0  ;;  %2892 = vmatpush3.msra.mxu0 %v2390_v3  ;;  %vm2477_vm1 = vcmask 7168  }
0x163f   :  { %2893 = vmatprep.subr.mxu0 %v3058_v0 }
0x1640   :  { %2894 = vmatpush3.msra.mxu0 %v2389_v58 }
0x1641   :  { %2895 = vmatprep.subr.mxu0 %v3058_v0 }
0x1642   :  { %2896 = vmatpush3.msra.mxu0 %v2388_v36 }
0x1643   :  { %2897 = vmatprep.subr.mxu0 %v3058_v0 }
0x1644   :  { %2898 = vmatpush3.msra.mxu0 %v2387_v38 }
0x16f6   :  { %v2332_v55 = vpop.f32.mrf.mxu1 }
0x16f8   :  { %v2889_v13 = vpop.f32.mrf.mxu1 }
0x16fa   :  { %v2335_v62 = vpop.f32.mrf.mxu1 }
0x16fc   :  { %v2890_v47 = vpop.f32.mrf.mxu1 }
0x16fd   :  { %v2286_v42 = vpop.f32.mrf.mxu0 }
0x16fe   :  { %v2287_v14 = vadd.f32 %v3702_v59, %v2286_v42  ;;  %v2348_v59 = vpop.permute.xlu0 %2347 }
0x16ff   :  { %v2881_v12 = vpop.f32.mrf.mxu0 }
0x1700   :  { %v2338_v15 = vadd.f32 %v2332_v55, %v2287_v14 }
0x1701   :  { %v2289_v16 = vpop.f32.mrf.mxu0 }
0x1702   :  { %3037 = vtanh.f32 %v2338_v15  ;;  %v2554_v24 = vmul.f32 -1.442695, %v2338_v15 }
0x1703   :  { %v2882_v20 = vpop.f32.mrf.mxu0 }
0x1704   :  { %3039 = vpow2.f32 %v2554_v24 }
0x170f   :  { %v3038_v21 = vpop.eup %3037 }
0x1710   :  { %2352 = vrot.lane.b32.xlu1 %v3038_v21, %s3061_s28 }
0x1711   :  { %v3040_v17 = vpop.eup %3039 }
0x1712   :  { %v2342_v25 = vadd.f32 1.0, %v3040_v17 }
0x1714   :  { %3041 = vrcp.f32 %v2342_v25 }
0x1721   :  { %v3042_v29 = vpop.eup %3041 }
0x1722   :  { %v2350_v26 = vmul.f32 %v3042_v29, %v2348_v59 }
0x1782   :  { %v2353_v19 = vpop.permute.xlu1 %2352 }
0x1783   :  { %v2355_v54 = vmul.f32 %v3042_v29, %v2353_v19 }
0x1785   :  { %2357 = vrot.lane.b32.xlu1 %v2355_v54, %s3062_s29 }
0x1789   :  { %2368 = vrot.lane.b32.xlu1 %v2292_v45, %s3063_s12 }
0x178d   :  { %2236 = vrot.lane.b32.xlu1 %v2233_v44, %s3062_s29 }
0x17f7   :  { %v2358_v18 = vpop.permute.xlu1 %2357 }
0x17f8   :  { %v2360_v30 = vadd.f32 %v2358_v18, %v2350_v26 }
0x17fa   :  { %3043 = vtanh.f32 %v2360_v30  ;;  %v2372_v31 = vsel %vm2228_vm4, %v2360_v30, %v2348_v59 }
0x17fb   :  { %v2369_v32 = vpop.permute.xlu1 %2368  ;;  %2379 = vrot.lane.b32.xlu1 %v2372_v31, %s3063_s12 }
0x17ff   :  { %v2237_v43 = vpop.permute.xlu1 %2236 }
0x1800   :  { %2239 = vst.msk [vmem:[#allocation2] sm:$0xff] %vm42_vm0, %v2237_v43 }
0x1807   :  { %v3044_v33 = vpop.eup %3043 }
0x1808   :  { %2363 = vrot.lane.b32.xlu0 %v3044_v33, %s3061_s28 }
0x186d   :  { %v2380_v61 = vpop.permute.xlu1 %2379 }
0x186e   :  { %2382 = vst.msk [vmem:[#allocation5] sm:$0xff] %vm42_vm0, %v2380_v61 }
0x187a   :  { %v2364_v39 = vpop.permute.xlu0 %2363 }
0x187b   :  { %v2366_v11 = vmul.f32 %v3042_v29, %v2364_v39 }
0x187d   :  { %v2371_v40 = vsel %vm2228_vm4, %v2366_v11, %v2369_v32 }
0x187e   :  { %2374 = vrot.lane.b32.xlu0 %v2371_v40, %s3062_s29 }
0x1882   :  { %2241 = vrot.lane.b32.xlu0 %v2234_v23, %s3063_s12 }
0x18f0   :  { %v2375_v0 = vpop.permute.xlu0 %2374 }
0x18f1   :  { %2377 = vst.msk [vmem:[#allocation3] sm:$0xff] %vm42_vm0, %v2375_v0 }
0x18f4   :  { %v2242_v46 = vpop.permute.xlu0 %2241 }
0x18f5   :  { %2244 = vst.msk [vmem:[#allocation4] sm:$0xff] %vm42_vm0, %v2242_v46 }
0x18f8   :  { %v2386_v2 = vld [vmem:[#allocation3] sm:$0xff] }
0x18f9   :  { %2900 = vmatmul.mubr.msk.f32.vlgmr.msra.gmra.mxu0 %vm42_vm0, %v2386_v2 }
0x19b9   :  { %v2467_v41 = vpop.f32.mrf.mxu0 }
0x19ba   :  { %v2468_v50 = vadd.f32 %v2555_v48, %v2467_v41 }
0x19bb   :  { %v2901_v52 = vpop.f32.mrf.mxu0 }
0x19bc   :  { %v2557_v1 = vmul.f32 -1.442695, %v2468_v50 }
0x19be   :  { %3045 = vpow2.f32 %v2557_v1 }
0x19cb   :  { %v3046_v53 = vpop.eup %3045 }
0x19cc   :  { %v2474_v51 = vadd.f32 1.0, %v3046_v53 }
0x19ce   :  { %3047 = vrcp.f32 %v2474_v51 }
0x19db   :  { %v3048_v49 = vpop.eup %3047 }
0x19dc   :  { %2478 = vst.msk [vmem:[%s3864_s10] sm:$0xff] %vm2477_vm1, %v3048_v49 }

</bundles_post_ra>
